<compile_context>
chip_gen: v5e
topology: v5e:2x2
jax: 0.10.0
libtpu: 0.0.40
codegen_flags: <defaults>
</compile_context>

<pallas_src>
import jax
import jax.numpy as jnp
from jax.experimental import pallas as pl
from jax.experimental.pallas import tpu as pltpu


def _vmem_estimate(H, W, Cin, Cmid, Cout, th):
    """Rough per-step VMEM working set in bytes (double-buffered blocks + scratch)."""
    f32, bf16 = 4, 2
    in_block = H * W * Cin * f32 * 2                      # full-image input block, 2 bufs
    out_block = th * W * Cout * f32 * 2                   # output row-tile, 2 bufs
    weights = (9 * Cin * Cmid + 9 * Cmid * Cout) * bf16 * 2
    biases = (Cmid + Cout) * f32 * 2
    scratch = ((th + 4) * (W + 2) * Cin + (th + 2) * (W + 2) * Cmid) * bf16
    live = ((th + 2) * W * Cmid + th * W * Cout) * f32    # f32 accumulators
    return in_block + out_block + weights + biases + scratch + live


def _choose_row_tile(H, W, Cin, Cmid, Cout, budget_bytes=48 * 1024 * 1024):
    """Largest row tile (divisor of H, >=2) whose working set fits the v7x budget."""
    best = None
    for th in range(2, H + 1):
        if H % th:
            continue
        if _vmem_estimate(H, W, Cin, Cmid, Cout, th) <= budget_bytes:
            best = th
    if best is None:
        best = 2 if (H % 2 == 0 and H >= 2) else H  # TODO(synk): add W tiling too
    return best


def _fused_unet_conv2_kernel(H, W, Cin, Cmid, Cout, TH, NH):
    """One (batch, row-tile) step: conv3x3+bias+ReLU twice, fully fused in VMEM."""
    M1 = (TH + 2) * W   # conv1 output rows for this tile (incl. 1-row recompute halo)
    M2 = TH * W         # conv2 / final output rows for this tile

    def kernel(x_ref, w1_ref, b1_ref, w2_ref, b2_ref, o_ref, xpad1, xpad2):
        # x_ref : (1, H, W, Cin) f32   full image for this batch (resident across h)
        # w1_ref: (9, Cin, Cmid) bf16  per-tap conv1 weights
        # b1_ref: (1, Cmid)      f32
        # w2_ref: (9, Cmid, Cout) bf16
        # b2_ref: (1, Cout)      f32
        # o_ref : (1, TH, W, Cout) f32 output row tile (unpadded channels)
        # xpad1 : (TH+4, W+2, Cin) bf16  zero-halo'd conv1 input strip
        # xpad2 : (TH+2, W+2, Cmid) bf16 zero-halo'd conv1 output strip
        h = pl.program_id(1)
        row0 = h * TH

        # ---- stage conv1 input strip (rows row0-2 .. row0+TH+1) in bf16 -------
        # Only the halo border is written with zeros; the interior is always
        # fully overwritten (no full-buffer zeroing).
        xpad1[2:TH + 2, 1:W + 1, :] = (
            x_ref[0, pl.ds(row0, TH), :, :].astype(jnp.bfloat16))

        @pl.when(h > 0)
        def _():
            xpad1[0:2, 1:W + 1, :] = (
                x_ref[0, pl.ds(row0 - 2, 2), :, :].astype(jnp.bfloat16))

        @pl.when(h == 0)
        def _():
            xpad1[0:2, 1:W + 1, :] = jnp.zeros((2, W, Cin), jnp.bfloat16)

        @pl.when(h < NH - 1)
        def _():
            xpad1[TH + 2:TH + 4, 1:W + 1, :] = (
                x_ref[0, pl.ds(row0 + TH, 2), :, :].astype(jnp.bfloat16))

        @pl.when(h == NH - 1)
        def _():
            xpad1[TH + 2:TH + 4, 1:W + 1, :] = jnp.zeros((2, W, Cin), jnp.bfloat16)

        # zero 'same'-padding side columns (1-px each side; cheap per step)
        xpad1[:, 0:1, :] = jnp.zeros((TH + 4, 1, Cin), jnp.bfloat16)
        xpad1[:, W + 1:W + 2, :] = jnp.zeros((TH + 4, 1, Cin), jnp.bfloat16)

        # ---- conv1: 9 accumulated tap matmuls (bf16 x bf16 -> f32) ------------
        acc1 = jnp.zeros((M1, Cmid), jnp.float32)
        for kh in range(3):
            for kw in range(3):
                lhs = xpad1[kh:kh + TH + 2, kw:kw + W, :].reshape(M1, Cin)
                acc1 = acc1 + jnp.dot(lhs, w1_ref[kh * 3 + kw],
                                      preferred_element_type=jnp.float32)
        y1 = jnp.maximum(acc1 + b1_ref[...], 0.0)         # bias + ReLU in f32

        # Intermediate activation never leaves VMEM (stored bf16).
        xpad2[:, 1:W + 1, :] = y1.astype(jnp.bfloat16).reshape(TH + 2, W, Cmid)
        xpad2[:, 0:1, :] = jnp.zeros((TH + 2, 1, Cmid), jnp.bfloat16)
        xpad2[:, W + 1:W + 2, :] = jnp.zeros((TH + 2, 1, Cmid), jnp.bfloat16)

        # conv2's zero 'same' padding at the global image top/bottom edge:
        @pl.when(h == 0)
        def _():
            xpad2[0:1, :, :] = jnp.zeros((1, W + 2, Cmid), jnp.bfloat16)

        @pl.when(h == NH - 1)
        def _():
            xpad2[TH + 1:TH + 2, :, :] = jnp.zeros((1, W + 2, Cmid), jnp.bfloat16)

        # ---- conv2: 9 accumulated tap matmuls ---------------------------------
        acc2 = jnp.zeros((M2, Cout), jnp.float32)
        for kh in range(3):
            for kw in range(3):
                lhs = xpad2[kh:kh + TH, kw:kw + W, :].reshape(M2, Cmid)
                acc2 = acc2 + jnp.dot(lhs, w2_ref[kh * 3 + kw],
                                      preferred_element_type=jnp.float32)
        y2 = jnp.maximum(acc2 + b2_ref[...], 0.0)

        o_ref[0] = y2.reshape(TH, W, Cout).astype(o_ref.dtype)

    return kernel


def fused_unet_conv2_nhwc(x_nhwc, w1p, b1p, w2p, b2p, th=None):
    """x_nhwc: (B,H,W,Cin) f32.  Returns (B,H,W,Cout) f32 (unpadded channels)."""
    B, H, W, Cin = x_nhwc.shape
    Cmid = w1p.shape[-1]
    Cout = w2p.shape[-1]
    if th is None:
        th = _choose_row_tile(H, W, Cin, Cmid, Cout)
    assert th >= 2 and H % th == 0, (H, th)
    n_h = H // th

    kernel = _fused_unet_conv2_kernel(H, W, Cin, Cmid, Cout, th, n_h)
    vmem_bytes = int(min(max(2 * _vmem_estimate(H, W, Cin, Cmid, Cout, th),
                             4 * 1024 * 1024),
                         100 * 1024 * 1024))

    return pl.pallas_call(
        kernel,
        out_shape=jax.ShapeDtypeStruct((B, H, W, Cout), jnp.float32),
        grid_spec=pltpu.PrefetchScalarGridSpec(
            num_scalar_prefetch=0,
            grid=(B, n_h),
            in_specs=[
                pl.BlockSpec((1, H, W, Cin), lambda b, h: (b, 0, 0, 0)),
                pl.BlockSpec((9, Cin, Cmid), lambda b, h: (0, 0, 0)),
                pl.BlockSpec((1, Cmid), lambda b, h: (0, 0)),
                pl.BlockSpec((9, Cmid, Cout), lambda b, h: (0, 0, 0)),
                pl.BlockSpec((1, Cout), lambda b, h: (0, 0)),
            ],
            out_specs=pl.BlockSpec((1, th, W, Cout), lambda b, h: (b, h, 0, 0)),
            scratch_shapes=[
                pltpu.VMEM((th + 4, W + 2, Cin), jnp.bfloat16),
                pltpu.VMEM((th + 2, W + 2, Cmid), jnp.bfloat16),
            ],
        ),
        compiler_params=pltpu.CompilerParams(
            dimension_semantics=("parallel", "parallel"),
            vmem_limit_bytes=vmem_bytes,
        ),
    )(x_nhwc, w1p, b1p, w2p, b2p)


def pack_params(w1, b1, w2, b2):
    """Pack conv weights per-tap in bf16 (done once at init).

    w1: (3,3,Cin,Cmid), b1: (Cmid,), w2: (3,3,Cmid,Cout), b2: (Cout,)
    """
    Cin, Cmid = w1.shape[2], w1.shape[3]
    Cout = w2.shape[3]
    w1p = w1.reshape(9, Cin, Cmid).astype(jnp.bfloat16)
    b1p = b1.reshape(1, Cmid).astype(jnp.float32)
    w2p = w2.reshape(9, Cmid, Cout).astype(jnp.bfloat16)
    b2p = b2.reshape(1, Cout).astype(jnp.float32)
    return (w1p, b1p, w2p, b2p, Cout)


def unet_conv2_forward(x_nchw, packed, th=None):
    """Reproduces unetConv2.forward (norm_layer=None, need_bias=True, pad=1)."""
    w1p, b1p, w2p, b2p, Cout = packed
    B, _, H, W = x_nchw.shape
    x = jnp.transpose(x_nchw, (0, 2, 3, 1))                   # NCHW -> NHWC
    y = fused_unet_conv2_nhwc(x, w1p, b1p, w2p, b2p, th=th)   # (B, H, W, Cout)
    return jnp.transpose(y, (0, 3, 1, 2))                     # NHWC -> NCHW


def init_params(key, in_size, out_size):
    """Kaiming-uniform-ish init matching nn.Conv2d shapes.
    PyTorch conv weight is (Cout, Cin, 3, 3); we store (3, 3, Cin, Cout)."""
    k1, k2, k3, k4 = jax.random.split(key, 4)
    bound1 = 1.0 / jnp.sqrt(in_size * 9)
    bound2 = 1.0 / jnp.sqrt(out_size * 9)
    w1 = jax.random.uniform(k1, (3, 3, in_size, out_size), jnp.float32, -bound1, bound1)
    b1 = jax.random.uniform(k2, (out_size,), jnp.float32, -bound1, bound1)
    w2 = jax.random.uniform(k3, (3, 3, out_size, out_size), jnp.float32, -bound2, bound2)
    b2 = jax.random.uniform(k4, (out_size,), jnp.float32, -bound2, bound2)
    return (w1, b1, w2, b2)


def ref_forward(x_nchw, params):
    """Plain-JAX reference with the same bf16-operand / f32-accumulate math."""
    w1, b1, w2, b2 = params

    def conv(xx, w, b):
        w_oihw = jnp.transpose(w, (3, 2, 0, 1)).astype(jnp.bfloat16)
        y = jax.lax.conv_general_dilated(
            xx.astype(jnp.bfloat16), w_oihw, window_strides=(1, 1), padding="SAME",
            dimension_numbers=("NCHW", "OIHW", "NCHW"),
            preferred_element_type=jnp.float32)
        return jax.nn.relu(y + b[None, :, None, None].astype(jnp.float32))

    return conv(conv(x_nchw, w1, b1), w2, b2)


if __name__ == "__main__":
    # Small shapes consistent with the module: batch=2, in=4, out=8, spatial=16.
    B, Cin, Cout, H, W = 2, 4, 8, 16, 16
    key = jax.random.PRNGKey(0)
    kx, kp = jax.random.split(key)
    x = jax.random.normal(kx, (B, Cin, H, W), dtype=jnp.float32)
    raw = init_params(kp, Cin, Cout)
    packed = pack_params(*raw)

    # th=8 -> two row tiles per image, exercising the halo / boundary handling.
    out = unet_conv2_forward(x, packed, th=8)
    out = jax.block_until_ready(out)
    assert out.shape == (B, Cout, H, W), out.shape

    ref = jax.block_until_ready(ref_forward(x, raw))
    err = float(jnp.max(jnp.abs(out - ref)))
    assert err < 1e-2, f"max abs err {err}"

    print("KERNEL_OK")
</pallas_src>

<mosaic_0001>
module attributes {stable_mosaic.version = 11 : i64} {
  func.func @kernel(%arg0: i32, %arg1: i32, %arg2: memref<1x16x16x4xf32, #tpu.memory_space<vmem>>, %arg3: memref<9x4x8xbf16, #tpu.memory_space<vmem>>, %arg4: memref<1x8xf32, #tpu.memory_space<vmem>>, %arg5: memref<9x8x8xbf16, #tpu.memory_space<vmem>>, %arg6: memref<1x8xf32, #tpu.memory_space<vmem>>, %arg7: memref<1x8x16x8xf32, #tpu.memory_space<vmem>>, %arg8: memref<12x18x4xbf16, #tpu.memory_space<vmem>>, %arg9: memref<10x18x8xbf16, #tpu.memory_space<vmem>>) attributes {dimension_semantics = [#tpu.dimension_semantics<parallel>, #tpu.dimension_semantics<parallel>], iteration_bounds = array<i64: 2, 2>, scalar_prefetch = 0 : i64, scratch_operands = 2 : i64, tpu.core_type = #tpu.core_type<tc>, window_params = [{transform_indices = @transform_0, window_bounds = array<i64: 1, 16, 16, 4>}, {pipeline_mode = #tpu.pipeline_mode<synchronous>, transform_indices = @transform_1, window_bounds = array<i64: 9, 4, 8>}, {pipeline_mode = #tpu.pipeline_mode<synchronous>, transform_indices = @transform_2, window_bounds = array<i64: 1, 8>}, {pipeline_mode = #tpu.pipeline_mode<synchronous>, transform_indices = @transform_3, window_bounds = array<i64: 9, 8, 8>}, {pipeline_mode = #tpu.pipeline_mode<synchronous>, transform_indices = @transform_4, window_bounds = array<i64: 1, 8>}, {transform_indices = @transform_5, window_bounds = array<i64: 1, 8, 16, 8>}]} {
    %c8_i32 = arith.constant 8 : i32
    %0 = arith.muli %arg1, %c8_i32 : i32
    %c0 = arith.constant 0 : index
    %1 = arith.index_cast %0 : i32 to index
    %c0_0 = arith.constant 0 : index
    %c0_1 = arith.constant 0 : index
    %2 = vector.load %arg2[%c0, %1, %c0_0, %c0_1] : memref<1x16x16x4xf32, #tpu.memory_space<vmem>>, vector<1x8x16x4xf32>
    %3 = vector.shape_cast %2 : vector<1x8x16x4xf32> to vector<8x16x4xf32>
    %4 = arith.truncf %3 : vector<8x16x4xf32> to vector<8x16x4xbf16>
    %c2 = arith.constant 2 : index
    %c1 = arith.constant 1 : index
    %c0_2 = arith.constant 0 : index
    %5 = vector.load %arg8[%c2, %c1, %c0_2] : memref<12x18x4xbf16, #tpu.memory_space<vmem>>, vector<8x16x4xbf16>
    tpu.vector_store %arg8[%c2, %c1, %c0_2], %4 {strides = array<i32>} : memref<12x18x4xbf16, #tpu.memory_space<vmem>>, vector<8x16x4xbf16>,
    %c0_i32 = arith.constant 0 : i32
    %6 = arith.cmpi sgt, %arg1, %c0_i32 : i32
    %7 = arith.extui %6 : i1 to i32
    %c0_i32_3 = arith.constant 0 : i32
    %8 = arith.cmpi ne, %7, %c0_i32_3 : i32
    scf.if %8 {
      %c2_i32 = arith.constant 2 : i32
      %159 = arith.subi %0, %c2_i32 : i32
      %c0_162 = arith.constant 0 : index
      %160 = arith.index_cast %159 : i32 to index
      %c0_163 = arith.constant 0 : index
      %c0_164 = arith.constant 0 : index
      %161 = vector.load %arg2[%c0_162, %160, %c0_163, %c0_164] : memref<1x16x16x4xf32, #tpu.memory_space<vmem>>, vector<1x2x16x4xf32>
      %162 = vector.shape_cast %161 : vector<1x2x16x4xf32> to vector<2x16x4xf32>
      %163 = arith.truncf %162 : vector<2x16x4xf32> to vector<2x16x4xbf16>
      %c0_165 = arith.constant 0 : index
      %c1_166 = arith.constant 1 : index
      %c0_167 = arith.constant 0 : index
      %164 = vector.load %arg8[%c0_165, %c1_166, %c0_167] : memref<12x18x4xbf16, #tpu.memory_space<vmem>>, vector<2x16x4xbf16>
      tpu.vector_store %arg8[%c0_165, %c1_166, %c0_167], %163 {strides = array<i32>} : memref<12x18x4xbf16, #tpu.memory_space<vmem>>, vector<2x16x4xbf16>,
    } else {
    }
    %c0_i32_4 = arith.constant 0 : i32
    %9 = arith.cmpi eq, %arg1, %c0_i32_4 : i32
    %10 = arith.extui %9 : i1 to i32
    %c0_i32_5 = arith.constant 0 : i32
    %11 = arith.cmpi ne, %10, %c0_i32_5 : i32
    scf.if %11 {
      %cst_162 = arith.constant 0.000000e+00 : bf16
      %159 = vector.broadcast %cst_162 : bf16 to vector<2x16x4xbf16>
      %c0_163 = arith.constant 0 : index
      %c1_164 = arith.constant 1 : index
      %c0_165 = arith.constant 0 : index
      %160 = vector.load %arg8[%c0_163, %c1_164, %c0_165] : memref<12x18x4xbf16, #tpu.memory_space<vmem>>, vector<2x16x4xbf16>
      tpu.vector_store %arg8[%c0_163, %c1_164, %c0_165], %159 {strides = array<i32>} : memref<12x18x4xbf16, #tpu.memory_space<vmem>>, vector<2x16x4xbf16>,
    } else {
    }
    %c1_i32 = arith.constant 1 : i32
    %12 = arith.cmpi slt, %arg1, %c1_i32 : i32
    %13 = arith.extui %12 : i1 to i32
    %c0_i32_6 = arith.constant 0 : i32
    %14 = arith.cmpi ne, %13, %c0_i32_6 : i32
    scf.if %14 {
      %c8_i32_162 = arith.constant 8 : i32
      %159 = arith.addi %0, %c8_i32_162 : i32
      %c0_163 = arith.constant 0 : index
      %160 = arith.index_cast %159 : i32 to index
      %c0_164 = arith.constant 0 : index
      %c0_165 = arith.constant 0 : index
      %161 = vector.load %arg2[%c0_163, %160, %c0_164, %c0_165] : memref<1x16x16x4xf32, #tpu.memory_space<vmem>>, vector<1x2x16x4xf32>
      %162 = vector.shape_cast %161 : vector<1x2x16x4xf32> to vector<2x16x4xf32>
      %163 = arith.truncf %162 : vector<2x16x4xf32> to vector<2x16x4xbf16>
      %c10 = arith.constant 10 : index
      %c1_166 = arith.constant 1 : index
      %c0_167 = arith.constant 0 : index
      %164 = vector.load %arg8[%c10, %c1_166, %c0_167] : memref<12x18x4xbf16, #tpu.memory_space<vmem>>, vector<2x16x4xbf16>
      tpu.vector_store %arg8[%c10, %c1_166, %c0_167], %163 {strides = array<i32>} : memref<12x18x4xbf16, #tpu.memory_space<vmem>>, vector<2x16x4xbf16>,
    } else {
    }
    %c1_i32_7 = arith.constant 1 : i32
    %15 = arith.cmpi eq, %arg1, %c1_i32_7 : i32
    %16 = arith.extui %15 : i1 to i32
    %c0_i32_8 = arith.constant 0 : i32
    %17 = arith.cmpi ne, %16, %c0_i32_8 : i32
    scf.if %17 {
      %cst_162 = arith.constant 0.000000e+00 : bf16
      %159 = vector.broadcast %cst_162 : bf16 to vector<2x16x4xbf16>
      %c10 = arith.constant 10 : index
      %c1_163 = arith.constant 1 : index
      %c0_164 = arith.constant 0 : index
      %160 = vector.load %arg8[%c10, %c1_163, %c0_164] : memref<12x18x4xbf16, #tpu.memory_space<vmem>>, vector<2x16x4xbf16>
      tpu.vector_store %arg8[%c10, %c1_163, %c0_164], %159 {strides = array<i32>} : memref<12x18x4xbf16, #tpu.memory_space<vmem>>, vector<2x16x4xbf16>,
    } else {
    }
    %cst = arith.constant 0.000000e+00 : bf16
    %18 = vector.broadcast %cst : bf16 to vector<12x1x4xbf16>
    %c0_9 = arith.constant 0 : index
    %c0_10 = arith.constant 0 : index
    %c0_11 = arith.constant 0 : index
    %19 = vector.load %arg8[%c0_9, %c0_10, %c0_11] : memref<12x18x4xbf16, #tpu.memory_space<vmem>>, vector<12x1x4xbf16>
    tpu.vector_store %arg8[%c0_9, %c0_10, %c0_11], %18 {strides = array<i32>} : memref<12x18x4xbf16, #tpu.memory_space<vmem>>, vector<12x1x4xbf16>,
    %cst_12 = arith.constant 0.000000e+00 : bf16
    %20 = vector.broadcast %cst_12 : bf16 to vector<12x1x4xbf16>
    %c0_13 = arith.constant 0 : index
    %c17 = arith.constant 17 : index
    %c0_14 = arith.constant 0 : index
    %21 = vector.load %arg8[%c0_13, %c17, %c0_14] : memref<12x18x4xbf16, #tpu.memory_space<vmem>>, vector<12x1x4xbf16>
    tpu.vector_store %arg8[%c0_13, %c17, %c0_14], %20 {strides = array<i32>} : memref<12x18x4xbf16, #tpu.memory_space<vmem>>, vector<12x1x4xbf16>,
    %cst_15 = arith.constant 0.000000e+00 : f32
    %22 = vector.broadcast %cst_15 : f32 to vector<160x8xf32>
    %c0_16 = arith.constant 0 : index
    %c0_17 = arith.constant 0 : index
    %c0_18 = arith.constant 0 : index
    %23 = vector.load %arg8[%c0_16, %c0_17, %c0_18] : memref<12x18x4xbf16, #tpu.memory_space<vmem>>, vector<10x16x4xbf16>
    %24 = vector.shape_cast %23 : vector<10x16x4xbf16> to vector<160x4xbf16>
    %c0_19 = arith.constant 0 : index
    %c0_20 = arith.constant 0 : index
    %c0_21 = arith.constant 0 : index
    %25 = vector.load %arg3[%c0_19, %c0_20, %c0_21] : memref<9x4x8xbf16, #tpu.memory_space<vmem>>, vector<1x4x8xbf16>
    %26 = vector.shape_cast %25 : vector<1x4x8xbf16> to vector<4x8xbf16>
    %cst_22 = arith.constant dense<0.000000e+00> : vector<160x8xf32>
    %27 = tpu.matmul %24, %26, %cst_22 {dimension_numbers = #tpu.dot_dimension_numbers<[1], [0], [0], [1], [0, 0, 1, 1], [], []>} : vector<160x4xbf16>, vector<4x8xbf16>, vector<160x8xf32> -> vector<160x8xf32>
    %28 = arith.addf %22, %27 : vector<160x8xf32>
    %c0_23 = arith.constant 0 : index
    %c1_24 = arith.constant 1 : index
    %c0_25 = arith.constant 0 : index
    %29 = vector.load %arg8[%c0_23, %c1_24, %c0_25] : memref<12x18x4xbf16, #tpu.memory_space<vmem>>, vector<10x16x4xbf16>
    %30 = vector.shape_cast %29 : vector<10x16x4xbf16> to vector<160x4xbf16>
    %c1_26 = arith.constant 1 : index
    %c0_27 = arith.constant 0 : index
    %c0_28 = arith.constant 0 : index
    %31 = vector.load %arg3[%c1_26, %c0_27, %c0_28] : memref<9x4x8xbf16, #tpu.memory_space<vmem>>, vector<1x4x8xbf16>
    %32 = vector.shape_cast %31 : vector<1x4x8xbf16> to vector<4x8xbf16>
    %cst_29 = arith.constant dense<0.000000e+00> : vector<160x8xf32>
    %33 = tpu.matmul %30, %32, %cst_29 {dimension_numbers = #tpu.dot_dimension_numbers<[1], [0], [0], [1], [0, 0, 1, 1], [], []>} : vector<160x4xbf16>, vector<4x8xbf16>, vector<160x8xf32> -> vector<160x8xf32>
    %34 = arith.addf %28, %33 : vector<160x8xf32>
    %c0_30 = arith.constant 0 : index
    %c2_31 = arith.constant 2 : index
    %c0_32 = arith.constant 0 : index
    %35 = vector.load %arg8[%c0_30, %c2_31, %c0_32] : memref<12x18x4xbf16, #tpu.memory_space<vmem>>, vector<10x16x4xbf16>
    %36 = vector.shape_cast %35 : vector<10x16x4xbf16> to vector<160x4xbf16>
    %c2_33 = arith.constant 2 : index
    %c0_34 = arith.constant 0 : index
    %c0_35 = arith.constant 0 : index
    %37 = vector.load %arg3[%c2_33, %c0_34, %c0_35] : memref<9x4x8xbf16, #tpu.memory_space<vmem>>, vector<1x4x8xbf16>
    %38 = vector.shape_cast %37 : vector<1x4x8xbf16> to vector<4x8xbf16>
    %cst_36 = arith.constant dense<0.000000e+00> : vector<160x8xf32>
    %39 = tpu.matmul %36, %38, %cst_36 {dimension_numbers = #tpu.dot_dimension_numbers<[1], [0], [0], [1], [0, 0, 1, 1], [], []>} : vector<160x4xbf16>, vector<4x8xbf16>, vector<160x8xf32> -> vector<160x8xf32>
    %40 = arith.addf %34, %39 : vector<160x8xf32>
    %c1_37 = arith.constant 1 : index
    %c0_38 = arith.constant 0 : index
    %c0_39 = arith.constant 0 : index
    %41 = vector.load %arg8[%c1_37, %c0_38, %c0_39] : memref<12x18x4xbf16, #tpu.memory_space<vmem>>, vector<10x16x4xbf16>
    %42 = vector.shape_cast %41 : vector<10x16x4xbf16> to vector<160x4xbf16>
    %c3 = arith.constant 3 : index
    %c0_40 = arith.constant 0 : index
    %c0_41 = arith.constant 0 : index
    %43 = vector.load %arg3[%c3, %c0_40, %c0_41] : memref<9x4x8xbf16, #tpu.memory_space<vmem>>, vector<1x4x8xbf16>
    %44 = vector.shape_cast %43 : vector<1x4x8xbf16> to vector<4x8xbf16>
    %cst_42 = arith.constant dense<0.000000e+00> : vector<160x8xf32>
    %45 = tpu.matmul %42, %44, %cst_42 {dimension_numbers = #tpu.dot_dimension_numbers<[1], [0], [0], [1], [0, 0, 1, 1], [], []>} : vector<160x4xbf16>, vector<4x8xbf16>, vector<160x8xf32> -> vector<160x8xf32>
    %46 = arith.addf %40, %45 : vector<160x8xf32>
    %c1_43 = arith.constant 1 : index
    %c1_44 = arith.constant 1 : index
    %c0_45 = arith.constant 0 : index
    %47 = vector.load %arg8[%c1_43, %c1_44, %c0_45] : memref<12x18x4xbf16, #tpu.memory_space<vmem>>, vector<10x16x4xbf16>
    %48 = vector.shape_cast %47 : vector<10x16x4xbf16> to vector<160x4xbf16>
    %c4 = arith.constant 4 : index
    %c0_46 = arith.constant 0 : index
    %c0_47 = arith.constant 0 : index
    %49 = vector.load %arg3[%c4, %c0_46, %c0_47] : memref<9x4x8xbf16, #tpu.memory_space<vmem>>, vector<1x4x8xbf16>
    %50 = vector.shape_cast %49 : vector<1x4x8xbf16> to vector<4x8xbf16>
    %cst_48 = arith.constant dense<0.000000e+00> : vector<160x8xf32>
    %51 = tpu.matmul %48, %50, %cst_48 {dimension_numbers = #tpu.dot_dimension_numbers<[1], [0], [0], [1], [0, 0, 1, 1], [], []>} : vector<160x4xbf16>, vector<4x8xbf16>, vector<160x8xf32> -> vector<160x8xf32>
    %52 = arith.addf %46, %51 : vector<160x8xf32>
    %c1_49 = arith.constant 1 : index
    %c2_50 = arith.constant 2 : index
    %c0_51 = arith.constant 0 : index
    %53 = vector.load %arg8[%c1_49, %c2_50, %c0_51] : memref<12x18x4xbf16, #tpu.memory_space<vmem>>, vector<10x16x4xbf16>
    %54 = vector.shape_cast %53 : vector<10x16x4xbf16> to vector<160x4xbf16>
    %c5 = arith.constant 5 : index
    %c0_52 = arith.constant 0 : index
    %c0_53 = arith.constant 0 : index
    %55 = vector.load %arg3[%c5, %c0_52, %c0_53] : memref<9x4x8xbf16, #tpu.memory_space<vmem>>, vector<1x4x8xbf16>
    %56 = vector.shape_cast %55 : vector<1x4x8xbf16> to vector<4x8xbf16>
    %cst_54 = arith.constant dense<0.000000e+00> : vector<160x8xf32>
    %57 = tpu.matmul %54, %56, %cst_54 {dimension_numbers = #tpu.dot_dimension_numbers<[1], [0], [0], [1], [0, 0, 1, 1], [], []>} : vector<160x4xbf16>, vector<4x8xbf16>, vector<160x8xf32> -> vector<160x8xf32>
    %58 = arith.addf %52, %57 : vector<160x8xf32>
    %c2_55 = arith.constant 2 : index
    %c0_56 = arith.constant 0 : index
    %c0_57 = arith.constant 0 : index
    %59 = vector.load %arg8[%c2_55, %c0_56, %c0_57] : memref<12x18x4xbf16, #tpu.memory_space<vmem>>, vector<10x16x4xbf16>
    %60 = vector.shape_cast %59 : vector<10x16x4xbf16> to vector<160x4xbf16>
    %c6 = arith.constant 6 : index
    %c0_58 = arith.constant 0 : index
    %c0_59 = arith.constant 0 : index
    %61 = vector.load %arg3[%c6, %c0_58, %c0_59] : memref<9x4x8xbf16, #tpu.memory_space<vmem>>, vector<1x4x8xbf16>
    %62 = vector.shape_cast %61 : vector<1x4x8xbf16> to vector<4x8xbf16>
    %cst_60 = arith.constant dense<0.000000e+00> : vector<160x8xf32>
    %63 = tpu.matmul %60, %62, %cst_60 {dimension_numbers = #tpu.dot_dimension_numbers<[1], [0], [0], [1], [0, 0, 1, 1], [], []>} : vector<160x4xbf16>, vector<4x8xbf16>, vector<160x8xf32> -> vector<160x8xf32>
    %64 = arith.addf %58, %63 : vector<160x8xf32>
    %c2_61 = arith.constant 2 : index
    %c1_62 = arith.constant 1 : index
    %c0_63 = arith.constant 0 : index
    %65 = vector.load %arg8[%c2_61, %c1_62, %c0_63] : memref<12x18x4xbf16, #tpu.memory_space<vmem>>, vector<10x16x4xbf16>
    %66 = vector.shape_cast %65 : vector<10x16x4xbf16> to vector<160x4xbf16>
    %c7 = arith.constant 7 : index
    %c0_64 = arith.constant 0 : index
    %c0_65 = arith.constant 0 : index
    %67 = vector.load %arg3[%c7, %c0_64, %c0_65] : memref<9x4x8xbf16, #tpu.memory_space<vmem>>, vector<1x4x8xbf16>
    %68 = vector.shape_cast %67 : vector<1x4x8xbf16> to vector<4x8xbf16>
    %cst_66 = arith.constant dense<0.000000e+00> : vector<160x8xf32>
    %69 = tpu.matmul %66, %68, %cst_66 {dimension_numbers = #tpu.dot_dimension_numbers<[1], [0], [0], [1], [0, 0, 1, 1], [], []>} : vector<160x4xbf16>, vector<4x8xbf16>, vector<160x8xf32> -> vector<160x8xf32>
    %70 = arith.addf %64, %69 : vector<160x8xf32>
    %c2_67 = arith.constant 2 : index
    %c2_68 = arith.constant 2 : index
    %c0_69 = arith.constant 0 : index
    %71 = vector.load %arg8[%c2_67, %c2_68, %c0_69] : memref<12x18x4xbf16, #tpu.memory_space<vmem>>, vector<10x16x4xbf16>
    %72 = vector.shape_cast %71 : vector<10x16x4xbf16> to vector<160x4xbf16>
    %c8 = arith.constant 8 : index
    %c0_70 = arith.constant 0 : index
    %c0_71 = arith.constant 0 : index
    %73 = vector.load %arg3[%c8, %c0_70, %c0_71] : memref<9x4x8xbf16, #tpu.memory_space<vmem>>, vector<1x4x8xbf16>
    %74 = vector.shape_cast %73 : vector<1x4x8xbf16> to vector<4x8xbf16>
    %cst_72 = arith.constant dense<0.000000e+00> : vector<160x8xf32>
    %75 = tpu.matmul %72, %74, %cst_72 {dimension_numbers = #tpu.dot_dimension_numbers<[1], [0], [0], [1], [0, 0, 1, 1], [], []>} : vector<160x4xbf16>, vector<4x8xbf16>, vector<160x8xf32> -> vector<160x8xf32>
    %76 = arith.addf %70, %75 : vector<160x8xf32>
    %c0_73 = arith.constant 0 : index
    %c0_74 = arith.constant 0 : index
    %77 = vector.load %arg4[%c0_73, %c0_74] : memref<1x8xf32, #tpu.memory_space<vmem>>, vector<1x8xf32>
    %78 = vector.broadcast %77 : vector<1x8xf32> to vector<160x8xf32>
    %79 = arith.addf %76, %78 : vector<160x8xf32>
    %cst_75 = arith.constant 0.000000e+00 : f32
    %80 = vector.broadcast %cst_75 : f32 to vector<160x8xf32>
    %81 = arith.maximumf %79, %80 : vector<160x8xf32>
    %82 = arith.truncf %81 : vector<160x8xf32> to vector<160x8xbf16>
    %83 = vector.shape_cast %82 : vector<160x8xbf16> to vector<10x16x8xbf16>
    %c0_76 = arith.constant 0 : index
    %c1_77 = arith.constant 1 : index
    %c0_78 = arith.constant 0 : index
    %84 = vector.load %arg9[%c0_76, %c1_77, %c0_78] : memref<10x18x8xbf16, #tpu.memory_space<vmem>>, vector<10x16x8xbf16>
    tpu.vector_store %arg9[%c0_76, %c1_77, %c0_78], %83 {strides = array<i32>} : memref<10x18x8xbf16, #tpu.memory_space<vmem>>, vector<10x16x8xbf16>,
    %cst_79 = arith.constant 0.000000e+00 : bf16
    %85 = vector.broadcast %cst_79 : bf16 to vector<10x1x8xbf16>
    %c0_80 = arith.constant 0 : index
    %c0_81 = arith.constant 0 : index
    %c0_82 = arith.constant 0 : index
    %86 = vector.load %arg9[%c0_80, %c0_81, %c0_82] : memref<10x18x8xbf16, #tpu.memory_space<vmem>>, vector<10x1x8xbf16>
    tpu.vector_store %arg9[%c0_80, %c0_81, %c0_82], %85 {strides = array<i32>} : memref<10x18x8xbf16, #tpu.memory_space<vmem>>, vector<10x1x8xbf16>,
    %cst_83 = arith.constant 0.000000e+00 : bf16
    %87 = vector.broadcast %cst_83 : bf16 to vector<10x1x8xbf16>
    %c0_84 = arith.constant 0 : index
    %c17_85 = arith.constant 17 : index
    %c0_86 = arith.constant 0 : index
    %88 = vector.load %arg9[%c0_84, %c17_85, %c0_86] : memref<10x18x8xbf16, #tpu.memory_space<vmem>>, vector<10x1x8xbf16>
    tpu.vector_store %arg9[%c0_84, %c17_85, %c0_86], %87 {strides = array<i32>} : memref<10x18x8xbf16, #tpu.memory_space<vmem>>, vector<10x1x8xbf16>,
    %c0_i32_87 = arith.constant 0 : i32
    %89 = arith.cmpi eq, %arg1, %c0_i32_87 : i32
    %90 = arith.extui %89 : i1 to i32
    %c0_i32_88 = arith.constant 0 : i32
    %91 = arith.cmpi ne, %90, %c0_i32_88 : i32
    scf.if %91 {
      %cst_162 = arith.constant 0.000000e+00 : bf16
      %159 = vector.broadcast %cst_162 : bf16 to vector<1x18x8xbf16>
      %c0_163 = arith.constant 0 : index
      %c0_164 = arith.constant 0 : index
      %c0_165 = arith.constant 0 : index
      %160 = vector.load %arg9[%c0_163, %c0_164, %c0_165] : memref<10x18x8xbf16, #tpu.memory_space<vmem>>, vector<1x18x8xbf16>
      tpu.vector_store %arg9[%c0_163, %c0_164, %c0_165], %159 {strides = array<i32>} : memref<10x18x8xbf16, #tpu.memory_space<vmem>>, vector<1x18x8xbf16>,
    } else {
    }
    %c1_i32_89 = arith.constant 1 : i32
    %92 = arith.cmpi eq, %arg1, %c1_i32_89 : i32
    %93 = arith.extui %92 : i1 to i32
    %c0_i32_90 = arith.constant 0 : i32
    %94 = arith.cmpi ne, %93, %c0_i32_90 : i32
    scf.if %94 {
      %cst_162 = arith.constant 0.000000e+00 : bf16
      %159 = vector.broadcast %cst_162 : bf16 to vector<1x18x8xbf16>
      %c9 = arith.constant 9 : index
      %c0_163 = arith.constant 0 : index
      %c0_164 = arith.constant 0 : index
      %160 = vector.load %arg9[%c9, %c0_163, %c0_164] : memref<10x18x8xbf16, #tpu.memory_space<vmem>>, vector<1x18x8xbf16>
      tpu.vector_store %arg9[%c9, %c0_163, %c0_164], %159 {strides = array<i32>} : memref<10x18x8xbf16, #tpu.memory_space<vmem>>, vector<1x18x8xbf16>,
    } else {
    }
    %cst_91 = arith.constant 0.000000e+00 : f32
    %95 = vector.broadcast %cst_91 : f32 to vector<128x8xf32>
    %c0_92 = arith.constant 0 : index
    %c0_93 = arith.constant 0 : index
    %c0_94 = arith.constant 0 : index
    %96 = vector.load %arg9[%c0_92, %c0_93, %c0_94] : memref<10x18x8xbf16, #tpu.memory_space<vmem>>, vector<8x16x8xbf16>
    %97 = vector.shape_cast %96 : vector<8x16x8xbf16> to vector<128x8xbf16>
    %c0_95 = arith.constant 0 : index
    %c0_96 = arith.constant 0 : index
    %c0_97 = arith.constant 0 : index
    %98 = vector.load %arg5[%c0_95, %c0_96, %c0_97] : memref<9x8x8xbf16, #tpu.memory_space<vmem>>, vector<1x8x8xbf16>
    %99 = vector.shape_cast %98 : vector<1x8x8xbf16> to vector<8x8xbf16>
    %cst_98 = arith.constant dense<0.000000e+00> : vector<128x8xf32>
    %100 = tpu.matmul %97, %99, %cst_98 {dimension_numbers = #tpu.dot_dimension_numbers<[1], [0], [0], [1], [0, 0, 1, 1], [], []>} : vector<128x8xbf16>, vector<8x8xbf16>, vector<128x8xf32> -> vector<128x8xf32>
    %101 = arith.addf %95, %100 : vector<128x8xf32>
    %c0_99 = arith.constant 0 : index
    %c1_100 = arith.constant 1 : index
    %c0_101 = arith.constant 0 : index
    %102 = vector.load %arg9[%c0_99, %c1_100, %c0_101] : memref<10x18x8xbf16, #tpu.memory_space<vmem>>, vector<8x16x8xbf16>
    %103 = vector.shape_cast %102 : vector<8x16x8xbf16> to vector<128x8xbf16>
    %c1_102 = arith.constant 1 : index
    %c0_103 = arith.constant 0 : index
    %c0_104 = arith.constant 0 : index
    %104 = vector.load %arg5[%c1_102, %c0_103, %c0_104] : memref<9x8x8xbf16, #tpu.memory_space<vmem>>, vector<1x8x8xbf16>
    %105 = vector.shape_cast %104 : vector<1x8x8xbf16> to vector<8x8xbf16>
    %cst_105 = arith.constant dense<0.000000e+00> : vector<128x8xf32>
    %106 = tpu.matmul %103, %105, %cst_105 {dimension_numbers = #tpu.dot_dimension_numbers<[1], [0], [0], [1], [0, 0, 1, 1], [], []>} : vector<128x8xbf16>, vector<8x8xbf16>, vector<128x8xf32> -> vector<128x8xf32>
    %107 = arith.addf %101, %106 : vector<128x8xf32>
    %c0_106 = arith.constant 0 : index
    %c2_107 = arith.constant 2 : index
    %c0_108 = arith.constant 0 : index
    %108 = vector.load %arg9[%c0_106, %c2_107, %c0_108] : memref<10x18x8xbf16, #tpu.memory_space<vmem>>, vector<8x16x8xbf16>
    %109 = vector.shape_cast %108 : vector<8x16x8xbf16> to vector<128x8xbf16>
    %c2_109 = arith.constant 2 : index
    %c0_110 = arith.constant 0 : index
    %c0_111 = arith.constant 0 : index
    %110 = vector.load %arg5[%c2_109, %c0_110, %c0_111] : memref<9x8x8xbf16, #tpu.memory_space<vmem>>, vector<1x8x8xbf16>
    %111 = vector.shape_cast %110 : vector<1x8x8xbf16> to vector<8x8xbf16>
    %cst_112 = arith.constant dense<0.000000e+00> : vector<128x8xf32>
    %112 = tpu.matmul %109, %111, %cst_112 {dimension_numbers = #tpu.dot_dimension_numbers<[1], [0], [0], [1], [0, 0, 1, 1], [], []>} : vector<128x8xbf16>, vector<8x8xbf16>, vector<128x8xf32> -> vector<128x8xf32>
    %113 = arith.addf %107, %112 : vector<128x8xf32>
    %c1_113 = arith.constant 1 : index
    %c0_114 = arith.constant 0 : index
    %c0_115 = arith.constant 0 : index
    %114 = vector.load %arg9[%c1_113, %c0_114, %c0_115] : memref<10x18x8xbf16, #tpu.memory_space<vmem>>, vector<8x16x8xbf16>
    %115 = vector.shape_cast %114 : vector<8x16x8xbf16> to vector<128x8xbf16>
    %c3_116 = arith.constant 3 : index
    %c0_117 = arith.constant 0 : index
    %c0_118 = arith.constant 0 : index
    %116 = vector.load %arg5[%c3_116, %c0_117, %c0_118] : memref<9x8x8xbf16, #tpu.memory_space<vmem>>, vector<1x8x8xbf16>
    %117 = vector.shape_cast %116 : vector<1x8x8xbf16> to vector<8x8xbf16>
    %cst_119 = arith.constant dense<0.000000e+00> : vector<128x8xf32>
    %118 = tpu.matmul %115, %117, %cst_119 {dimension_numbers = #tpu.dot_dimension_numbers<[1], [0], [0], [1], [0, 0, 1, 1], [], []>} : vector<128x8xbf16>, vector<8x8xbf16>, vector<128x8xf32> -> vector<128x8xf32>
    %119 = arith.addf %113, %118 : vector<128x8xf32>
    %c1_120 = arith.constant 1 : index
    %c1_121 = arith.constant 1 : index
    %c0_122 = arith.constant 0 : index
    %120 = vector.load %arg9[%c1_120, %c1_121, %c0_122] : memref<10x18x8xbf16, #tpu.memory_space<vmem>>, vector<8x16x8xbf16>
    %121 = vector.shape_cast %120 : vector<8x16x8xbf16> to vector<128x8xbf16>
    %c4_123 = arith.constant 4 : index
    %c0_124 = arith.constant 0 : index
    %c0_125 = arith.constant 0 : index
    %122 = vector.load %arg5[%c4_123, %c0_124, %c0_125] : memref<9x8x8xbf16, #tpu.memory_space<vmem>>, vector<1x8x8xbf16>
    %123 = vector.shape_cast %122 : vector<1x8x8xbf16> to vector<8x8xbf16>
    %cst_126 = arith.constant dense<0.000000e+00> : vector<128x8xf32>
    %124 = tpu.matmul %121, %123, %cst_126 {dimension_numbers = #tpu.dot_dimension_numbers<[1], [0], [0], [1], [0, 0, 1, 1], [], []>} : vector<128x8xbf16>, vector<8x8xbf16>, vector<128x8xf32> -> vector<128x8xf32>
    %125 = arith.addf %119, %124 : vector<128x8xf32>
    %c1_127 = arith.constant 1 : index
    %c2_128 = arith.constant 2 : index
    %c0_129 = arith.constant 0 : index
    %126 = vector.load %arg9[%c1_127, %c2_128, %c0_129] : memref<10x18x8xbf16, #tpu.memory_space<vmem>>, vector<8x16x8xbf16>
    %127 = vector.shape_cast %126 : vector<8x16x8xbf16> to vector<128x8xbf16>
    %c5_130 = arith.constant 5 : index
    %c0_131 = arith.constant 0 : index
    %c0_132 = arith.constant 0 : index
    %128 = vector.load %arg5[%c5_130, %c0_131, %c0_132] : memref<9x8x8xbf16, #tpu.memory_space<vmem>>, vector<1x8x8xbf16>
    %129 = vector.shape_cast %128 : vector<1x8x8xbf16> to vector<8x8xbf16>
    %cst_133 = arith.constant dense<0.000000e+00> : vector<128x8xf32>
    %130 = tpu.matmul %127, %129, %cst_133 {dimension_numbers = #tpu.dot_dimension_numbers<[1], [0], [0], [1], [0, 0, 1, 1], [], []>} : vector<128x8xbf16>, vector<8x8xbf16>, vector<128x8xf32> -> vector<128x8xf32>
    %131 = arith.addf %125, %130 : vector<128x8xf32>
    %c2_134 = arith.constant 2 : index
    %c0_135 = arith.constant 0 : index
    %c0_136 = arith.constant 0 : index
    %132 = vector.load %arg9[%c2_134, %c0_135, %c0_136] : memref<10x18x8xbf16, #tpu.memory_space<vmem>>, vector<8x16x8xbf16>
    %133 = vector.shape_cast %132 : vector<8x16x8xbf16> to vector<128x8xbf16>
    %c6_137 = arith.constant 6 : index
    %c0_138 = arith.constant 0 : index
    %c0_139 = arith.constant 0 : index
    %134 = vector.load %arg5[%c6_137, %c0_138, %c0_139] : memref<9x8x8xbf16, #tpu.memory_space<vmem>>, vector<1x8x8xbf16>
    %135 = vector.shape_cast %134 : vector<1x8x8xbf16> to vector<8x8xbf16>
    %cst_140 = arith.constant dense<0.000000e+00> : vector<128x8xf32>
    %136 = tpu.matmul %133, %135, %cst_140 {dimension_numbers = #tpu.dot_dimension_numbers<[1], [0], [0], [1], [0, 0, 1, 1], [], []>} : vector<128x8xbf16>, vector<8x8xbf16>, vector<128x8xf32> -> vector<128x8xf32>
    %137 = arith.addf %131, %136 : vector<128x8xf32>
    %c2_141 = arith.constant 2 : index
    %c1_142 = arith.constant 1 : index
    %c0_143 = arith.constant 0 : index
    %138 = vector.load %arg9[%c2_141, %c1_142, %c0_143] : memref<10x18x8xbf16, #tpu.memory_space<vmem>>, vector<8x16x8xbf16>
    %139 = vector.shape_cast %138 : vector<8x16x8xbf16> to vector<128x8xbf16>
    %c7_144 = arith.constant 7 : index
    %c0_145 = arith.constant 0 : index
    %c0_146 = arith.constant 0 : index
    %140 = vector.load %arg5[%c7_144, %c0_145, %c0_146] : memref<9x8x8xbf16, #tpu.memory_space<vmem>>, vector<1x8x8xbf16>
    %141 = vector.shape_cast %140 : vector<1x8x8xbf16> to vector<8x8xbf16>
    %cst_147 = arith.constant dense<0.000000e+00> : vector<128x8xf32>
    %142 = tpu.matmul %139, %141, %cst_147 {dimension_numbers = #tpu.dot_dimension_numbers<[1], [0], [0], [1], [0, 0, 1, 1], [], []>} : vector<128x8xbf16>, vector<8x8xbf16>, vector<128x8xf32> -> vector<128x8xf32>
    %143 = arith.addf %137, %142 : vector<128x8xf32>
    %c2_148 = arith.constant 2 : index
    %c2_149 = arith.constant 2 : index
    %c0_150 = arith.constant 0 : index
    %144 = vector.load %arg9[%c2_148, %c2_149, %c0_150] : memref<10x18x8xbf16, #tpu.memory_space<vmem>>, vector<8x16x8xbf16>
    %145 = vector.shape_cast %144 : vector<8x16x8xbf16> to vector<128x8xbf16>
    %c8_151 = arith.constant 8 : index
    %c0_152 = arith.constant 0 : index
    %c0_153 = arith.constant 0 : index
    %146 = vector.load %arg5[%c8_151, %c0_152, %c0_153] : memref<9x8x8xbf16, #tpu.memory_space<vmem>>, vector<1x8x8xbf16>
    %147 = vector.shape_cast %146 : vector<1x8x8xbf16> to vector<8x8xbf16>
    %cst_154 = arith.constant dense<0.000000e+00> : vector<128x8xf32>
    %148 = tpu.matmul %145, %147, %cst_154 {dimension_numbers = #tpu.dot_dimension_numbers<[1], [0], [0], [1], [0, 0, 1, 1], [], []>} : vector<128x8xbf16>, vector<8x8xbf16>, vector<128x8xf32> -> vector<128x8xf32>
    %149 = arith.addf %143, %148 : vector<128x8xf32>
    %c0_155 = arith.constant 0 : index
    %c0_156 = arith.constant 0 : index
    %150 = vector.load %arg6[%c0_155, %c0_156] : memref<1x8xf32, #tpu.memory_space<vmem>>, vector<1x8xf32>
    %151 = vector.broadcast %150 : vector<1x8xf32> to vector<128x8xf32>
    %152 = arith.addf %149, %151 : vector<128x8xf32>
    %cst_157 = arith.constant 0.000000e+00 : f32
    %153 = vector.broadcast %cst_157 : f32 to vector<128x8xf32>
    %154 = arith.maximumf %152, %153 : vector<128x8xf32>
    %155 = vector.shape_cast %154 : vector<128x8xf32> to vector<8x16x8xf32>
    %c0_158 = arith.constant 0 : index
    %c0_159 = arith.constant 0 : index
    %c0_160 = arith.constant 0 : index
    %c0_161 = arith.constant 0 : index
    %156 = vector.load %arg7[%c0_158, %c0_159, %c0_160, %c0_161] : memref<1x8x16x8xf32, #tpu.memory_space<vmem>>, vector<1x8x16x8xf32>
    %157 = vector.shape_cast %156 : vector<1x8x16x8xf32> to vector<8x16x8xf32>
    %158 = vector.shape_cast %155 : vector<8x16x8xf32> to vector<1x8x16x8xf32>
    tpu.vector_store %arg7[%c0_158, %c0_159, %c0_160, %c0_161], %158 {strides = array<i32>} : memref<1x8x16x8xf32, #tpu.memory_space<vmem>>, vector<1x8x16x8xf32>,
    return
  }
  func.func @transform_0(%arg0: i32, %arg1: i32) -> (i32, i32, i32, i32) {
    %c0_i32 = arith.constant 0 : i32
    %c0_i32_0 = arith.constant 0 : i32
    %c0_i32_1 = arith.constant 0 : i32
    %c0_i32_2 = arith.constant 0 : i32
    return %arg0, %c0_i32, %c0_i32_0, %c0_i32_1 : i32, i32, i32, i32
  }
  func.func @transform_1(%arg0: i32, %arg1: i32) -> (i32, i32, i32) {
    %c0_i32 = arith.constant 0 : i32
    %c0_i32_0 = arith.constant 0 : i32
    %c0_i32_1 = arith.constant 0 : i32
    %c0_i32_2 = arith.constant 0 : i32
    return %c0_i32, %c0_i32_0, %c0_i32_1 : i32, i32, i32
  }
  func.func @transform_2(%arg0: i32, %arg1: i32) -> (i32, i32) {
    %c0_i32 = arith.constant 0 : i32
    %c0_i32_0 = arith.constant 0 : i32
    %c0_i32_1 = arith.constant 0 : i32
    return %c0_i32, %c0_i32_0 : i32, i32
  }
  func.func @transform_3(%arg0: i32, %arg1: i32) -> (i32, i32, i32) {
    %c0_i32 = arith.constant 0 : i32
    %c0_i32_0 = arith.constant 0 : i32
    %c0_i32_1 = arith.constant 0 : i32
    %c0_i32_2 = arith.constant 0 : i32
    return %c0_i32, %c0_i32_0, %c0_i32_1 : i32, i32, i32
  }
  func.func @transform_4(%arg0: i32, %arg1: i32) -> (i32, i32) {
    %c0_i32 = arith.constant 0 : i32
    %c0_i32_0 = arith.constant 0 : i32
    %c0_i32_1 = arith.constant 0 : i32
    return %c0_i32, %c0_i32_0 : i32, i32
  }
  func.func @transform_5(%arg0: i32, %arg1: i32) -> (i32, i32, i32, i32) {
    %c0_i32 = arith.constant 0 : i32
    %c0_i32_0 = arith.constant 0 : i32
    %c0_i32_1 = arith.constant 0 : i32
    return %arg0, %arg1, %c0_i32, %c0_i32_0 : i32, i32, i32, i32
  }
}

</mosaic_0001>

<bundles_post_ra>
// kernel: tpu_custom_call.1
= control target key start
LH: loop header
LB: loop body
LE: loop exit
PB: predicated region body
PF: predicated region fallthrough
CT: control target
= control target key end

     0   :  { %s6502_s18 = smov 0   ;;  %s6504_s19 = smov 0   ;;  %s8366_s0 = inlined_call_operand.vmem [shape: f32[2,16,16,4], index: 0, kind: input, shape index: {}]   ;;  %s8367_s1 = inlined_call_operand.vmem [shape: bf16[9,4,8], index: 1, kind: input, shape index: {}]   ;;  %s8368_s2 = inlined_call_operand.vmem [shape: f32[1,8], index: 2, kind: input, shape index: {}]   ;;  %s8369_s3 = inlined_call_operand.vmem [shape: bf16[9,8,8], index: 3, kind: input, shape index: {}]   ;;  %s8370_s4 = inlined_call_operand.vmem [shape: f32[1,8], index: 4, kind: input, shape index: {}]   ;;  %s8371_s5 = inlined_call_operand.vmem [shape: f32[2,16,16,8], index: 5, kind: output, shape index: {}]  }
   0x1   :  { %s6506_s20 = smov 0   ;;  %s6508_s21 = smov 0  }
   0x2   :  { %s6510_s22 = smov 0  }
   0x3 LB: > { %s24_s23 = sadd.s32 1, %s6458_s20  ;;  %s27_s24 = sadd.s32 1, %s6462_s21  ;;  %s6466_s22 = sphi %s6510_s22, %s15_s22   ;;  %s6462_s21 = sphi %s6508_s21, %s8419_s21   ;;  %s6458_s20 = sphi %s6506_s20, %s8418_s20   ;;  %s6454_s19 = sphi %s6504_s19, %s8417_s19   ;;  %s6450_s18 = sphi %s6502_s18, %s8416_s18  }
   0x4   : > { %p25_p0 = scmp.ge.s32.totalorder %s24_s23, 2  ;;  %p5841_p1 = scmp.ge.s32.totalorder %s6466_s22, 1 }
   0x5   : > { %p201_p2 = scmp.lt.s32.totalorder %s6466_s22, 5 }
   0x6   : > { %s8421_s23 = smov (%p25_p0, %s24_s23), 0  ;;  %s8423_s24 = smov (!%p25_p0, %s27_s24), %s6462_s21 }
   0x7   : > { %p202_p3 = pnand %p5841_p1, %p201_p2  ;;  %p29_p4 = scmp.ge.s32.totalorder %s8423_s24, 2 }
   0x9   : > { %s8425_s24 = smov (%p29_p4, %s8423_s24), 0  ;;  %205 = sbr.rel (%p202_p3) target bundleno = 1363 (0x553), region = 40 }
   0xe   : > { %p234_p5 = scmp.lt.s32.totalorder %s6454_s19, 1  ;;  %s6535_s25 = sshll.u32 %s6450_s18, 3  ;;  %vm451_vm0 = vsmask.f32 7938  ;;  %vm450_vm1 = vcmask 27648   ;;  %vm458_vm2 = vcmask 24576  }
   0xf   : > { %p242_p6 = scmp.lt.s32.totalorder %s6535_s25, 15  ;;  %s6315_s26 = sshll.u32 %s6450_s18, 7  ;;  %vm286_vm3 = vsmask.f32 256  ;;  %vm287_vm4 = vsmask.f32 4368  ;;  %vm6561_vm5 = vmand %vm450_vm1, %vm451_vm0 }
  0x10   : > { %s8427_s19 = smov (!%p234_p5, %s6454_s19), 1  ;;  %v453_v22 = vld [vmem:[#allocation2 + $0x18] sm:$0xf]  ;;  %vm6567_vm6 = vmand %vm458_vm2, %vm286_vm3  ;;  %v8382_v27 = vmov 0  ;;  %v460_v28 = vld [vmem:[#allocation2 + $0x20] sm:$0x1] }
  0x11   : > { %s243_s27 = scalar_select %p242_p6, %s6535_s25, 15  ;;  %vm6573_vm7 = vmor %vm286_vm3, %vm287_vm4  ;;  %v463_v37 = vld [vmem:[#allocation2 + $0x24] sm:$0xf]  ;;  %v467_v38 = vld [vmem:[#allocation2 + $0x2c] sm:$0x1] }
  0x12   : > { %s6314_s28 = sshll.u32 %s8427_s19, 8  ;;  %s5846_s29 = sshll.u32 %s8427_s19, 5  ;;  %v8383_v27 = vsel %vm6573_vm7, 4294967295, %v8382_v27  ;;  %v470_v54 = vld [vmem:[#allocation2 + $0x30] sm:$0xf] }
  0x13   : > { %s6543_s7 = scalar_lea.vmem %s8366_s0, %s6314_s28  ;;  %s5845_s8 = sshll.u32 %s243_s27, 1  ;;  %8384 = vst [vmem:[#allocation4_spill] sm:$0xff] %v8383_v27  ;;  %v474_v58 = vld [vmem:[#allocation2 + $0x38] sm:$0x1] }
  0x14   : > { %s246_s9 = sadd.s32 %s5846_s29, %s5845_s8  ;;  %s6546_s10 = scalar_lea.vmem %s6543_s7, %s6315_s26 }
  0x15   : > { %s5847_s11 = sshll.u32 %s246_s9, 3  ;;  %v254_v0 = vld [vmem:[%s6546_s10] sm:$0xff]  ;;  %v255_v1 = vld [vmem:[%s6546_s10 + $0x8] sm:$0xff]  ;;  %v256_v2 = vld [vmem:[%s6546_s10 + $0x10] sm:$0xff]  ;;  %p5850_p7 = scmp.le.s32.totalorder %s6450_s18, 0 }
  0x16   : > { %s6554_s14 = scalar_lea.vmem %s8371_s5, %s5847_s11  ;;  %v270_v3 = vpack.c.bf16 %v254_v0, %v254_v0  ;;  %v271_v4 = vpack.c.bf16 %v255_v1, %v255_v1  ;;  %v272_v5 = vpack.c.bf16 %v256_v2, %v256_v2  ;;  %v257_v6 = vld [vmem:[%s6546_s10 + $0x18] sm:$0xff]  ;;  %v258_v7 = vld [vmem:[%s6546_s10 + $0x20] sm:$0xff]  ;;  %v259_v8 = vld [vmem:[%s6546_s10 + $0x28] sm:$0xff]  ;;  %s5851_s15 = sadd.s32 (!%p5850_p7), 4294967294, %s6535_s25 }
  0x17   : > { %v273_v9 = vpack.c.bf16 %v257_v6, %v257_v6  ;;  %v274_v10 = vpack.c.bf16 %v258_v7, %v258_v7  ;;  %v275_v11 = vpack.c.bf16 %v259_v8, %v259_v8  ;;  %v260_v43 = vld [vmem:[%s6546_s10 + $0x30] sm:$0xff]  ;;  %v261_v44 = vld [vmem:[%s6546_s10 + $0x38] sm:$0xff]  ;;  %v262_v49 = vld [vmem:[%s6546_s10 + $0x40] sm:$0xff]  ;;  %s5852_s16 = sshll.u32 (!%p5850_p7), %s5851_s15, 4 }
  0x18   : > { %v290_v12 = vshrl.u32 %v270_v3, 16  ;;  %v293_v13 = vshll.u32 %v270_v3, 16  ;;  %v298_v14 = vshrl.u32 %v271_v4, 16  ;;  %v301_v15 = vshll.u32 %v271_v4, 16  ;;  %v263_v50 = vld [vmem:[%s6546_s10 + $0x48] sm:$0xff]  ;;  %v264_v1 = vld [vmem:[%s6546_s10 + $0x50] sm:$0xff]  ;;  %s518_s17 = scalar_lea.vmem (!%p5850_p7), %s6543_s7, %s5852_s16 }
  0x19   : > { %v307_v17 = vshrl.u32 %v272_v5, 16  ;;  %v310_v18 = vshll.u32 %v272_v5, 16  ;;  %v315_v19 = vshrl.u32 %v273_v9, 16  ;;  %v318_v20 = vshll.u32 %v273_v9, 16  ;;  %v265_v6 = vld [vmem:[%s6546_s10 + $0x58] sm:$0xff] }
  0x1a   : > { %v292_v21 = vrot.slane %v290_v12, 7  ;;  %v300_v23 = vrot.slane %v298_v14, 7  ;;  %v324_v25 = vshrl.u32 %v274_v10, 16  ;;  %v327_v26 = vshll.u32 %v274_v10, 16  ;;  %v477_v9 = vld [vmem:[#allocation2 + $0x3c] sm:$0xf] }
  0x1b   : > { %v309_v29 = vrot.slane %v307_v17, 7  ;;  %v317_v30 = vrot.slane %v315_v19, 7  ;;  %v332_v31 = vshrl.u32 %v275_v11, 16  ;;  %v335_v32 = vshll.u32 %v275_v11, 16  ;;  %v481_v11 = vld [vmem:[#allocation2 + $0x44] sm:$0x1] }
  0x1c   : > { %v295_v33 = vor.u32 %v293_v13, %v292_v21  ;;  %v296_v34 = vrot.slane %v292_v21, 4  ;;  %v303_v35 = vor.u32 %v301_v15, %v300_v23  ;;  %v305_v36 = vrot.slane %v300_v23, 4  ;;  %v484_v19 = vld [vmem:[#allocation2 + $0x48] sm:$0xf] }
  0x1d   : > { %v312_v39 = vor.u32 %v310_v18, %v309_v29  ;;  %v313_v40 = vrot.slane %v309_v29, 4  ;;  %v320_v41 = vor.u32 %v318_v20, %v317_v30  ;;  %v322_v42 = vrot.slane %v317_v30, 4  ;;  %v266_v29 = vld [vmem:[%s6546_s10 + $0x60] sm:$0xff] }
  0x1e   : > { %v454_v45 = vsel %vm6561_vm5, %v295_v33, %v453_v22  ;;  %v304_v46 = vsel %vm6573_vm7, %v296_v34, %v303_v35  ;;  %v461_v47 = vsel %vm6567_vm6, %v305_v36, %v460_v28  ;;  %v326_v48 = vrot.slane %v324_v25, 7  ;;  %v267_v34 = vld [vmem:[%s6546_s10 + $0x68] sm:$0xff] }
  0x1f   : > { %455 = vst [vmem:[#allocation2 + $0x18] sm:$0xf] %v454_v45  ;;  %v464_v51 = vsel %vm6561_vm5, %v312_v39, %v463_v37  ;;  %v321_v52 = vsel %vm6573_vm7, %v313_v40, %v320_v41  ;;  %v468_v53 = vsel %vm6567_vm6, %v322_v42, %v467_v38  ;;  %v334_v55 = vrot.slane %v332_v31, 7  ;;  %v488_v38 = vld [vmem:[#allocation2 + $0x50] sm:$0x1] }
  0x20   : > { %457 = vst.msk [vmem:[#allocation2 + $0x1c] sm:$0xf] %vm450_vm1, %v304_v46  ;;  %v329_v56 = vor.u32 %v327_v26, %v326_v48  ;;  %v330_v57 = vrot.slane %v326_v48, 4  ;;  %v276_v59 = vpack.c.bf16 %v260_v43, %v260_v43  ;;  %v277_v60 = vpack.c.bf16 %v261_v44, %v261_v44  ;;  %v491_v44 = vld [vmem:[#allocation2 + $0x54] sm:$0xf] }
  0x21   : > { %462 = vst [vmem:[#allocation2 + $0x20] sm:$0x1] %v461_v47  ;;  %v337_v61 = vor.u32 %v335_v32, %v334_v55  ;;  %v339_v62 = vrot.slane %v334_v55, 4  ;;  %v278_v63 = vpack.c.bf16 %v262_v49, %v262_v49  ;;  %v279_v0 = vpack.c.bf16 %v263_v50, %v263_v50  ;;  %v268_v49 = vld [vmem:[%s6546_s10 + $0x70] sm:$0xff]  ;;  %v269_v50 = vld [vmem:[%s6546_s10 + $0x78] sm:$0xff] }
  0x22   : > { %465 = vst [vmem:[#allocation2 + $0x24] sm:$0xf] %v464_v51  ;;  %v471_v2 = vsel %vm6561_vm5, %v329_v56, %v470_v54  ;;  %v341_v3 = vshrl.u32 %v276_v59, 16  ;;  %v344_v4 = vshll.u32 %v276_v59, 16  ;;  %v349_v5 = vshrl.u32 %v277_v60, 16 }
  0x23   : > { %466 = vst.msk [vmem:[#allocation2 + $0x28] sm:$0xf] %vm450_vm1, %v321_v52  ;;  %v338_v7 = vsel %vm6573_vm7, %v330_v57, %v337_v61  ;;  %v475_v8 = vsel %vm6567_vm6, %v339_v62, %v474_v58  ;;  %v352_v10 = vshll.u32 %v277_v60, 16  ;;  %v358_v12 = vshrl.u32 %v278_v63, 16  ;;  %v495_v55 = vld [vmem:[#allocation2 + $0x5c] sm:$0x1] }
  0x24   : > { %469 = vst [vmem:[#allocation2 + $0x2c] sm:$0x1] %v468_v53  ;;  %v343_v13 = vrot.slane %v341_v3, 7  ;;  %v351_v14 = vrot.slane %v349_v5, 7  ;;  %v361_v15 = vshll.u32 %v278_v63, 16  ;;  %v366_v17 = vshrl.u32 %v279_v0, 16 }
  0x25   : > { %472 = vst [vmem:[#allocation2 + $0x30] sm:$0xf] %v471_v2  ;;  %v360_v18 = vrot.slane %v358_v12, 7  ;;  %v369_v20 = vshll.u32 %v279_v0, 16  ;;  %v280_v21 = vpack.c.bf16 %v264_v1, %v264_v1  ;;  %v281_v22 = vpack.c.bf16 %v265_v6, %v265_v6  ;;  %v498_v61 = vld [vmem:[#allocation2 + $0x60] sm:$0xf] }
  0x26   : > { %473 = vst.msk [vmem:[#allocation2 + $0x34] sm:$0xf] %vm450_vm1, %v338_v7  ;;  %v346_v23 = vor.u32 %v344_v4, %v343_v13  ;;  %v347_v25 = vrot.slane %v343_v13, 4  ;;  %v354_v26 = vor.u32 %v352_v10, %v351_v14  ;;  %v356_v28 = vrot.slane %v351_v14, 4  ;;  %v502_v13 = vld [vmem:[#allocation2 + $0x68] sm:$0x1] }
  0x27   : > { %476 = vst [vmem:[#allocation2 + $0x38] sm:$0x1] %v475_v8  ;;  %v363_v30 = vor.u32 %v361_v15, %v360_v18  ;;  %v364_v31 = vrot.slane %v360_v18, 4  ;;  %v368_v32 = vrot.slane %v366_v17, 7  ;;  %v375_v33 = vshrl.u32 %v280_v21, 16 }
  0x28   : > { %v478_v35 = vsel %vm6561_vm5, %v346_v23, %v477_v9  ;;  %v355_v36 = vsel %vm6573_vm7, %v347_v25, %v354_v26  ;;  %v482_v37 = vsel %vm6567_vm6, %v356_v28, %v481_v11  ;;  %v378_v39 = vshll.u32 %v280_v21, 16  ;;  %v509_v26 = vld [vmem:[#allocation2 + $0x74] sm:$0x1] }
  0x29   : > { %479 = vst [vmem:[#allocation2 + $0x3c] sm:$0xf] %v478_v35  ;;  %v485_v40 = vsel %vm6561_vm5, %v363_v30, %v484_v19  ;;  %v371_v41 = vor.u32 %v369_v20, %v368_v32  ;;  %v373_v42 = vrot.slane %v368_v32, 4  ;;  %v377_v43 = vrot.slane %v375_v33, 7  ;;  %v505_v20 = vld [vmem:[#allocation2 + $0x6c] sm:$0xf] }
  0x2a   : > { %480 = vst.msk [vmem:[#allocation2 + $0x40] sm:$0xf] %vm450_vm1, %v355_v36  ;;  %v383_v45 = vshrl.u32 %v281_v22, 16  ;;  %v386_v46 = vshll.u32 %v281_v22, 16  ;;  %v282_v47 = vpack.c.bf16 %v266_v29, %v266_v29  ;;  %v283_v48 = vpack.c.bf16 %v267_v34, %v267_v34 }
  0x2b   : > { %483 = vst [vmem:[#allocation2 + $0x44] sm:$0x1] %v482_v37  ;;  %v372_v51 = vsel %vm6573_vm7, %v364_v31, %v371_v41  ;;  %v489_v52 = vsel %vm6567_vm6, %v373_v42, %v488_v38  ;;  %v380_v53 = vor.u32 %v378_v39, %v377_v43  ;;  %v381_v54 = vrot.slane %v377_v43, 4 }
  0x2c   : > { %486 = vst [vmem:[#allocation2 + $0x48] sm:$0xf] %v485_v40  ;;  %v385_v56 = vrot.slane %v383_v45, 7  ;;  %v392_v57 = vshrl.u32 %v282_v47, 16  ;;  %v395_v58 = vshll.u32 %v282_v47, 16  ;;  %v400_v59 = vshrl.u32 %v283_v48, 16 }
  0x2d   : > { %487 = vst.msk [vmem:[#allocation2 + $0x4c] sm:$0xf] %vm450_vm1, %v372_v51  ;;  %v492_v60 = vsel %vm6561_vm5, %v380_v53, %v491_v44  ;;  %v403_v62 = vshll.u32 %v283_v48, 16  ;;  %v284_v63 = vpack.c.bf16 %v268_v49, %v268_v49  ;;  %v285_v0 = vpack.c.bf16 %v269_v50, %v269_v50 }
  0x2e   : > { %490 = vst [vmem:[#allocation2 + $0x50] sm:$0x1] %v489_v52  ;;  %v388_v1 = vor.u32 %v386_v46, %v385_v56  ;;  %v390_v2 = vrot.slane %v385_v56, 4  ;;  %v394_v3 = vrot.slane %v392_v57, 7  ;;  %v402_v4 = vrot.slane %v400_v59, 7 }
  0x2f   : > { %493 = vst [vmem:[#allocation2 + $0x54] sm:$0xf] %v492_v60  ;;  %v409_v5 = vshrl.u32 %v284_v63, 16  ;;  %v412_v6 = vshll.u32 %v284_v63, 16  ;;  %v417_v7 = vshrl.u32 %v285_v0, 16  ;;  %v420_v8 = vshll.u32 %v285_v0, 16 }
  0x30   : > { %v389_v9 = vsel %vm6573_vm7, %v381_v54, %v388_v1  ;;  %v496_v10 = vsel %vm6567_vm6, %v390_v2, %v495_v55  ;;  %v397_v11 = vor.u32 %v395_v58, %v394_v3  ;;  %v398_v12 = vrot.slane %v394_v3, 4 }
  0x31   : > { %494 = vst.msk [vmem:[#allocation2 + $0x58] sm:$0xf] %vm450_vm1, %v389_v9  ;;  %v405_v14 = vor.u32 %v403_v62, %v402_v4  ;;  %v407_v15 = vrot.slane %v402_v4, 4  ;;  %v411_v17 = vrot.slane %v409_v5, 7  ;;  %v419_v18 = vrot.slane %v417_v7, 7 }
  0x32   : > { %497 = vst [vmem:[#allocation2 + $0x5c] sm:$0x1] %v496_v10  ;;  %v499_v19 = vsel %vm6561_vm5, %v397_v11, %v498_v61 }
  0x33   : > { %500 = vst [vmem:[#allocation2 + $0x60] sm:$0xf] %v499_v19  ;;  %v406_v21 = vsel %vm6573_vm7, %v398_v12, %v405_v14  ;;  %v503_v22 = vsel %vm6567_vm6, %v407_v15, %v502_v13  ;;  %v414_v23 = vor.u32 %v412_v6, %v411_v17  ;;  %v415_v25 = vrot.slane %v411_v17, 4 }
  0x34   : > { %501 = vst.msk [vmem:[#allocation2 + $0x64] sm:$0xf] %vm450_vm1, %v406_v21  ;;  %v422_v28 = vor.u32 %v420_v8, %v419_v18  ;;  %v424_v29 = vrot.slane %v419_v18, 4  ;;  %515 = sbr.rel (%p5850_p7) target bundleno = 73 (0x49), region = 44 }
  0x35   : > { %504 = vst [vmem:[#allocation2 + $0x68] sm:$0x1] %v503_v22  ;;  %v506_v30 = vsel %vm6561_vm5, %v414_v23, %v505_v20 }
  0x36   : > { %507 = vst [vmem:[#allocation2 + $0x6c] sm:$0xf] %v506_v30  ;;  %v423_v31 = vsel %vm6573_vm7, %v415_v25, %v422_v28  ;;  %v510_v32 = vsel %vm6567_vm6, %v424_v29, %v509_v26 }
  0x37   : > { %508 = vst.msk [vmem:[#allocation2 + $0x70] sm:$0xf] %vm450_vm1, %v423_v31 }
  0x38   : > { %511 = vst [vmem:[#allocation2 + $0x74] sm:$0x1] %v510_v32 }
  0x39   : > { %v519_v33 = vld [vmem:[%s518_s17] sm:$0xff]  ;;  %v520_v34 = vld [vmem:[%s518_s17 + $0x8] sm:$0xff]  ;;  %v521_v35 = vld [vmem:[%s518_s17 + $0x10] sm:$0xff] }
  0x3a   : > { %v523_v36 = vpack.c.bf16 %v519_v33, %v519_v33  ;;  %v524_v37 = vpack.c.bf16 %v520_v34, %v520_v34  ;;  %v525_v38 = vpack.c.bf16 %v521_v35, %v521_v35  ;;  %v522_v39 = vld [vmem:[%s518_s17 + $0x18] sm:$0xff]  ;;  %v567_v51 = vld [vmem:[#allocation2] sm:$0xf]  ;;  %v571_v52 = vld [vmem:[#allocation2 + $0x8] sm:$0x1] }
  0x3b   : > { %v526_v40 = vpack.c.bf16 %v522_v39, %v522_v39  ;;  %v574_v59 = vld [vmem:[#allocation2 + $0xc] sm:$0xf]  ;;  %v578_v3 = vld [vmem:[#allocation2 + $0x14] sm:$0x1] }
  0x3c   : > { %v528_v41 = vshrl.u32 %v523_v36, 16  ;;  %v531_v42 = vshll.u32 %v523_v36, 16  ;;  %v536_v43 = vshrl.u32 %v524_v37, 16  ;;  %v539_v44 = vshll.u32 %v524_v37, 16 }
  0x3d   : > { %v545_v45 = vshrl.u32 %v525_v38, 16  ;;  %v548_v46 = vshll.u32 %v525_v38, 16  ;;  %v553_v47 = vshrl.u32 %v526_v40, 16  ;;  %v556_v48 = vshll.u32 %v526_v40, 16 }
  0x3e   : > { %v530_v49 = vrot.slane %v528_v41, 7  ;;  %v538_v50 = vrot.slane %v536_v43, 7 }
  0x3f   : > { %v547_v53 = vrot.slane %v545_v45, 7  ;;  %v555_v54 = vrot.slane %v553_v47, 7 }
  0x40   : > { %v533_v55 = vor.u32 %v531_v42, %v530_v49  ;;  %v534_v56 = vrot.slane %v530_v49, 4  ;;  %v541_v57 = vor.u32 %v539_v44, %v538_v50  ;;  %v543_v58 = vrot.slane %v538_v50, 4 }
  0x41   : > { %v550_v60 = vor.u32 %v548_v46, %v547_v53  ;;  %v551_v61 = vrot.slane %v547_v53, 4  ;;  %v558_v62 = vor.u32 %v556_v48, %v555_v54  ;;  %v560_v63 = vrot.slane %v555_v54, 4 }
  0x42   : > { %v568_v0 = vsel %vm6561_vm5, %v533_v55, %v567_v51  ;;  %v542_v1 = vsel %vm6573_vm7, %v534_v56, %v541_v57  ;;  %v572_v2 = vsel %vm6567_vm6, %v543_v58, %v571_v52 }
  0x43   : > { %569 = vst [vmem:[#allocation2] sm:$0xf] %v568_v0  ;;  %v575_v4 = vsel %vm6561_vm5, %v550_v60, %v574_v59  ;;  %v559_v5 = vsel %vm6573_vm7, %v551_v61, %v558_v62  ;;  %v579_v6 = vsel %vm6567_vm6, %v560_v63, %v578_v3 }
  0x44   : > { %570 = vst.msk [vmem:[#allocation2 + $0x4] sm:$0xf] %vm450_vm1, %v542_v1 }
  0x45   : > { %573 = vst [vmem:[#allocation2 + $0x8] sm:$0x1] %v572_v2 }
  0x46   : > { %576 = vst [vmem:[#allocation2 + $0xc] sm:$0xf] %v575_v4 }
  0x47   : > { %577 = vst.msk [vmem:[#allocation2 + $0x10] sm:$0xf] %vm450_vm1, %v559_v5 }
  0x48   : > { %580 = vst [vmem:[#allocation2 + $0x14] sm:$0x1] %v579_v6 }
  0x49 PF: > { %p5853_p8 = scmp.ne.s32.totalorder %s6450_s18, 0 }
  0x4b   : > { %584 = sbr.rel (%p5853_p8) target bundleno = 87 (0x57), region = 48 }
  0x50   : > { %v585_v7 = vld [vmem:[#allocation2] sm:$0xf]  ;;  %v589_v8 = vld [vmem:[#allocation2 + $0x8] sm:$0x1]  ;;  %v6468_v10 = vmov 0  }
  0x51   : > { %v586_v9 = vsel %vm6561_vm5, 0, %v585_v7  ;;  %588 = vst.msk [vmem:[#allocation2 + $0x4] sm:$0xf] %vm450_vm1, %v6468_v10  ;;  %v590_v11 = vsel %vm6567_vm6, 0, %v589_v8  ;;  %v592_v12 = vld [vmem:[#allocation2 + $0xc] sm:$0xf] }
  0x52   : > { %587 = vst [vmem:[#allocation2] sm:$0xf] %v586_v9  ;;  %v593_v13 = vsel %vm6561_vm5, 0, %v592_v12  ;;  %v596_v14 = vld [vmem:[#allocation2 + $0x14] sm:$0x1] }
  0x53   : > { %595 = vst.msk [vmem:[#allocation2 + $0x10] sm:$0xf] %vm450_vm1, %v6468_v10  ;;  %v597_v15 = vsel %vm6567_vm6, 0, %v596_v14 }
  0x54   : > { %591 = vst [vmem:[#allocation2 + $0x8] sm:$0x1] %v590_v11 }
  0x55   : > { %594 = vst [vmem:[#allocation2 + $0xc] sm:$0xf] %v593_v13 }
  0x56   : > { %598 = vst [vmem:[#allocation2 + $0x14] sm:$0x1] %v597_v15 }
  0x57 PF: > { %p5854_p9 = scmp.ge.s32.totalorder %s6450_s18, 1 }
  0x59   : > { %602 = sbr.rel (%p5854_p9) target bundleno = 110 (0x6e), region = 52 }
  0x5e   : > { %v5857_v17 = vld [vmem:[%s6546_s10 + $0x80] sm:$0xff]  ;;  %v5858_v18 = vld [vmem:[%s6546_s10 + $0x88] sm:$0xff]  ;;  %v5859_v21 = vld [vmem:[%s6546_s10 + $0x90] sm:$0xff] }
  0x5f   : > { %v610_v19 = vpack.c.bf16 %v5857_v17, %v5857_v17  ;;  %v611_v20 = vpack.c.bf16 %v5858_v18, %v5858_v18  ;;  %v612_v22 = vpack.c.bf16 %v5859_v21, %v5859_v21  ;;  %v5860_v23 = vld [vmem:[%s6546_s10 + $0x98] sm:$0xff]  ;;  %v659_v36 = vld [vmem:[#allocation2 + $0x80] sm:$0x1]  ;;  %v662_v44 = vld [vmem:[#allocation2 + $0x84] sm:$0xf] }
  0x60   : > { %v613_v32 = vpack.c.bf16 %v5860_v23, %v5860_v23  ;;  %v655_v34 = vld [vmem:[#allocation2 + $0x78] sm:$0xf]  ;;  %v666_v51 = vld [vmem:[#allocation2 + $0x8c] sm:$0x1] }
  0x61   : > { %v615_v25 = vshrl.u32 %v610_v19, 16  ;;  %v618_v26 = vshll.u32 %v610_v19, 16  ;;  %v623_v28 = vshrl.u32 %v611_v20, 16  ;;  %v626_v29 = vshll.u32 %v611_v20, 16 }
  0x62   : > { %v632_v30 = vshrl.u32 %v612_v22, 16  ;;  %v635_v31 = vshll.u32 %v612_v22, 16  ;;  %v640_v38 = vshrl.u32 %v613_v32, 16  ;;  %v643_v39 = vshll.u32 %v613_v32, 16 }
  0x63   : > { %v617_v33 = vrot.slane %v615_v25, 7  ;;  %v625_v35 = vrot.slane %v623_v28, 7 }
  0x64   : > { %v634_v37 = vrot.slane %v632_v30, 7  ;;  %v642_v47 = vrot.slane %v640_v38, 7 }
  0x65   : > { %v620_v40 = vor.u32 %v618_v26, %v617_v33  ;;  %v621_v41 = vrot.slane %v617_v33, 4  ;;  %v628_v42 = vor.u32 %v626_v29, %v625_v35  ;;  %v630_v43 = vrot.slane %v625_v35, 4 }
  0x66   : > { %v637_v45 = vor.u32 %v635_v31, %v634_v37  ;;  %v638_v46 = vrot.slane %v634_v37, 4  ;;  %v645_v53 = vor.u32 %v643_v39, %v642_v47  ;;  %v647_v54 = vrot.slane %v642_v47, 4 }
  0x67   : > { %v656_v48 = vsel %vm6561_vm5, %v620_v40, %v655_v34  ;;  %v629_v49 = vsel %vm6573_vm7, %v621_v41, %v628_v42  ;;  %v660_v50 = vsel %vm6567_vm6, %v630_v43, %v659_v36 }
  0x68   : > { %657 = vst [vmem:[#allocation2 + $0x78] sm:$0xf] %v656_v48  ;;  %v663_v52 = vsel %vm6561_vm5, %v637_v45, %v662_v44  ;;  %v646_v55 = vsel %vm6573_vm7, %v638_v46, %v645_v53  ;;  %v667_v56 = vsel %vm6567_vm6, %v647_v54, %v666_v51 }
  0x69   : > { %658 = vst.msk [vmem:[#allocation2 + $0x7c] sm:$0xf] %vm450_vm1, %v629_v49 }
  0x6a   : > { %661 = vst [vmem:[#allocation2 + $0x80] sm:$0x1] %v660_v50 }
  0x6b   : > { %664 = vst [vmem:[#allocation2 + $0x84] sm:$0xf] %v663_v52 }
  0x6c   : > { %665 = vst.msk [vmem:[#allocation2 + $0x88] sm:$0xf] %vm450_vm1, %v646_v55 }
  0x6d   : > { %668 = vst [vmem:[#allocation2 + $0x8c] sm:$0x1] %v667_v56 }
  0x6e PF: > { %p5861_p10 = scmp.ne.s32.totalorder %s6450_s18, 1 }
  0x70   : > { %672 = sbr.rel (%p5861_p10) target bundleno = 124 (0x7c), region = 56 }
  0x75   : > { %v674_v57 = vld [vmem:[#allocation2 + $0x78] sm:$0xf]  ;;  %v678_v58 = vld [vmem:[#allocation2 + $0x80] sm:$0x1]  ;;  %v6469_v60 = vmov 0  }
  0x76   : > { %v675_v59 = vsel %vm6561_vm5, 0, %v674_v57  ;;  %677 = vst.msk [vmem:[#allocation2 + $0x7c] sm:$0xf] %vm450_vm1, %v6469_v60  ;;  %v679_v61 = vsel %vm6567_vm6, 0, %v678_v58  ;;  %v681_v62 = vld [vmem:[#allocation2 + $0x84] sm:$0xf] }
  0x77   : > { %676 = vst [vmem:[#allocation2 + $0x78] sm:$0xf] %v675_v59  ;;  %v682_v63 = vsel %vm6561_vm5, 0, %v681_v62  ;;  %v685_v0 = vld [vmem:[#allocation2 + $0x8c] sm:$0x1] }
  0x78   : > { %684 = vst.msk [vmem:[#allocation2 + $0x88] sm:$0xf] %vm450_vm1, %v6469_v60  ;;  %v686_v1 = vsel %vm6567_vm6, 0, %v685_v0 }
  0x79   : > { %680 = vst [vmem:[#allocation2 + $0x80] sm:$0x1] %v679_v61 }
  0x7a   : > { %683 = vst [vmem:[#allocation2 + $0x84] sm:$0xf] %v682_v63 }
  0x7b   : > { %687 = vst [vmem:[#allocation2 + $0x8c] sm:$0x1] %v686_v1 }
  0x7c PF: > { %v781_v2 = vld [vmem:[%s8367_s1] sm:$0x3]  ;;  %vm1098_vm8 = vcmask 1041408   ;;  %v709_v3 = vld [vmem:[#allocation2 + $0x54] sm:$0x1]  ;;  %vm6710_vm9 = vmand %vm458_vm2, %vm451_vm0  ;;  %vm1067_vm10 = vcmask 31744  }
  0x7d   : > { %v1242_v4 = vsel %vm1098_vm8, %v781_v2, 0  ;;  %v710_v5 = vsel %vm6567_vm6, 0, %v709_v3  ;;  %v5862_v6 = vld [vmem:[%s8367_s1 + $0x2] sm:$0x3]  ;;  %v688_v7 = vld [vmem:[#allocation2] sm:$0x1] }
  0x7e   : > { %6371 = vmatpush.bf16.msra.mxu3 %v1242_v4  ;;  %711 = vst [vmem:[#allocation2 + $0x54] sm:$0x1] %v710_v5  ;;  %v1100_v8 = vsel %vm1098_vm8, %v5862_v6, 0  ;;  %1251 = vmatpush.bf16.msra.mxu1 %v1242_v4  ;;  %v689_v9 = vsel %vm6567_vm6, 0, %v688_v7  ;;  %v725_v10 = vld [vmem:[#allocation2 + $0x8] sm:$0x1] }
  0x7f   : > { %1109 = vmatpush.bf16.msra.mxu0 %v1100_v8  ;;  %690 = vst [vmem:[#allocation2] sm:$0x1] %v689_v9  ;;  %v726_v11 = vsel %vm6710_vm9, 0, %v725_v10  ;;  %v6725_v12 = vld [vmem:[#allocation2 + $0x4] sm:$0xf]  ;;  %vm1333_vm14 = vcmask 1042432  }
  0x80   : > { %727 = vst [vmem:[#allocation2 + $0x8] sm:$0x1] %v726_v11  ;;  %vm792_vm11 = vsmask.f32 3328  ;;  %v805_v13 = vshll.u32 %v6725_v12, 16  ;;  %v809_v14 = vshrl.u32 %v6725_v12, 16 }
  0x81   : > { %v5933_v15 = vld [vmem:[%s8367_s1 + $0x4] sm:$0x3]  ;;  %v712_v17 = vld [vmem:[#allocation2 + $0x60] sm:$0x1]  ;;  %v691_v20 = vld [vmem:[#allocation2 + $0xc] sm:$0x1] }
  0x82   : > { %v1469_v18 = vsel %vm1098_vm8, %v5933_v15, 0  ;;  %v713_v19 = vsel %vm6567_vm6, 0, %v712_v17  ;;  %v728_v21 = vld [vmem:[#allocation2 + $0x14] sm:$0x1]  ;;  %v807_v22 = vrot.slane %v805_v13, 5  ;;  %v811_v23 = vrot.slane %v809_v14, 4 }
  0x83   : > { %1478 = vmatpush.bf16.msrb.mxu0 %v1469_v18  ;;  %714 = vst [vmem:[#allocation2 + $0x60] sm:$0x1] %v713_v19  ;;  %v692_v25 = vsel %vm6567_vm6, 0, %v691_v20  ;;  %v729_v26 = vsel %vm6710_vm9, 0, %v728_v21  ;;  %6372 = vmatpush.bf16.msra.mxu2 %v1469_v18  ;;  %v6739_v28 = vld [vmem:[#allocation2 + $0x10] sm:$0xf] }
  0x84   : > { %693 = vst [vmem:[#allocation2 + $0xc] sm:$0x1] %v692_v25  ;;  %v715_v29 = vld [vmem:[#allocation2 + $0x6c] sm:$0x1]  ;;  %vm793_vm12 = vsmask.f32 7440  ;;  %v812_v31 = vor.u32 %v811_v23, %v807_v22 }
  0x85   : > { %v6324_v30 = vld [vmem:[#allocation2 + $0x54] sm:$0xff]  ;;  %730 = vst [vmem:[#allocation2 + $0x14] sm:$0x1] %v729_v26  ;;  %v716_v32 = vsel %vm6567_vm6, 0, %v715_v29  ;;  %v829_v38 = vshll.u32 %v6739_v28, 16  ;;  %v833_v39 = vshrl.u32 %v6739_v28, 16  ;;  %vm6752_vm13 = vmor %vm792_vm11, %vm793_vm12 }
  0x86   : > { %v761_v33 = vld [vmem:[#allocation2] sm:$0xf]  ;;  %717 = vst [vmem:[#allocation2 + $0x6c] sm:$0x1] %v716_v32  ;;  %5920 = vmatmul.msk.bf16.vlgmr.msra.gmra.mxu3 %vm1067_vm10, %v6324_v30  ;;  %v813_v40 = vrot.slane %v812_v31, 4  ;;  %vm1334_vm15 = vcmask 1046532  }
  0x87   : > { %v6317_v34 = vld [vmem:[#allocation2] sm:$0xff]  ;;  %v6744_v35 = vld [vmem:[#allocation2 + $0x8] sm:$0x1]  ;;  %v796_v36 = vshrl.u32 %v761_v33, 16  ;;  %v799_v37 = vshll.u32 %v761_v33, 16  ;;  %v831_v52 = vrot.slane %v829_v38, 5  ;;  %vm6789_vm1 = vmor %vm1333_vm14, %vm1334_vm15 }
  0x88   : > { %v815_v41 = vshll.u32 %v6744_v35, 16  ;;  %5913 = vmatmul.msk.bf16.vlgmr.msra.gmra.mxu1 %vm1067_vm10, %v6317_v34  ;;  %v694_v42 = vld [vmem:[#allocation2 + $0x18] sm:$0x1]  ;;  %v731_v47 = vld [vmem:[#allocation2 + $0x20] sm:$0x1]  ;;  %v835_v53 = vrot.slane %v833_v39, 4 }
  0x89   : > { %v798_v44 = vrot.slane %v796_v36, 4  ;;  %v801_v45 = vrot.slane %v799_v37, 5  ;;  %v695_v46 = vsel %vm6567_vm6, 0, %v694_v42  ;;  %v732_v49 = vsel %vm6710_vm9, 0, %v731_v47  ;;  %v697_v62 = vld [vmem:[#allocation2 + $0x24] sm:$0x1] }
  0x8a   : > { %v817_v48 = vrot.slane %v815_v41, 5  ;;  %696 = vst [vmem:[#allocation2 + $0x18] sm:$0x1] %v695_v46  ;;  %v836_v0 = vor.u32 %v835_v53, %v831_v52  ;;  %v734_v2 = vld [vmem:[#allocation2 + $0x2c] sm:$0x1]  ;;  %v698_v3 = vsel %vm6567_vm6, 0, %v697_v62 }
  0x8b   : > { %v802_v50 = vor.u32 %v801_v45, %v798_v44  ;;  %v763_v51 = vld [vmem:[#allocation2 + $0xc] sm:$0xf]  ;;  %733 = vst [vmem:[#allocation2 + $0x20] sm:$0x1] %v732_v49  ;;  %v735_v6 = vsel %vm6710_vm9, 0, %v734_v2  ;;  %v6325_v8 = vld [vmem:[#allocation2 + $0x60] sm:$0xff] }
  0x8c   : > { %v818_v54 = vsel %vm6752_vm13, %v813_v40, %v817_v48  ;;  %v6762_v55 = vld [vmem:[#allocation2 + $0x14] sm:$0x1]  ;;  %v820_v56 = vshrl.u32 %v763_v51, 16  ;;  %v823_v57 = vshll.u32 %v763_v51, 16  ;;  %699 = vst [vmem:[#allocation2 + $0x24] sm:$0x1] %v698_v3 }
  0x8d   : > { %v803_v58 = vrot.slane %v802_v50, 4  ;;  %v1038_v59 = vunpack.c.l.b16 %v818_v54  ;;  %v839_v1 = vshll.u32 %v6762_v55, 16  ;;  %v6771_v9 = vld [vmem:[#allocation2 + $0x1c] sm:$0xf]  ;;  %v837_v10 = vrot.slane %v836_v0, 4  ;;  %v6318_v14 = vld [vmem:[#allocation2 + $0xc] sm:$0xff] }
  0x8e   : > { %v822_v60 = vrot.slane %v820_v56, 4  ;;  %v825_v61 = vrot.slane %v823_v57, 5  ;;  %v5944_v13 = vld [vmem:[%s8367_s1 + $0x6] sm:$0x3]  ;;  %736 = vst [vmem:[#allocation2 + $0x2c] sm:$0x1] %v735_v6 }
  0x8f   : > { %v808_v63 = vsel %vm6752_vm13, %v803_v58, %v807_v22  ;;  %v841_v11 = vrot.slane %v839_v1, 5  ;;  %v1654_v17 = vsel %vm1098_vm8, %v5944_v13, 0  ;;  %v853_v19 = vshll.u32 %v6771_v9, 16  ;;  %v6779_v20 = vld [vmem:[#allocation2 + $0x28] sm:$0xf] }
  0x90   : > { %v1037_v4 = vunpack.c.l.b16 %v808_v63  ;;  %v826_v5 = vor.u32 %v825_v61, %v822_v60  ;;  %1663 = vmatpush.bf16.msrb.mxu3 %v1654_v17  ;;  %v857_v23 = vshrl.u32 %v6771_v9, 16  ;;  %v1306_v25 = vld [vmem:[#allocation2 + $0x24] sm:$0xe]  ;;  %v1359_v30 = vrot.slane %v6779_v20, 5  ;;  %v700_v48 = vld [vmem:[#allocation2 + $0x30] sm:$0x1] }
  0x91   : > { %v765_v15 = vld [vmem:[#allocation2 + $0x18] sm:$0xf]  ;;  %v842_v21 = vsel %vm6752_vm13, %v837_v10, %v841_v11  ;;  %v5926_v29 = vrot.slane %v1306_v25, 9  ;;  %v855_v38 = vrot.slane %v853_v19, 5  ;;  %v701_v53 = vsel %vm6567_vm6, 0, %v700_v48 }
  0x92   : > { %v1057_v7 = vpack.c.b16 %v1038_v59, %v1037_v4  ;;  %v827_v18 = vrot.slane %v826_v5, 4  ;;  %v844_v22 = vshrl.u32 %v765_v15, 16  ;;  %v847_v26 = vshll.u32 %v765_v15, 16  ;;  %v6798_v42 = vld [vmem:[#allocation2 + $0x20] sm:$0x1]  ;;  %v6326_v59 = vld [vmem:[#allocation2 + $0x6c] sm:$0xff] }
  0x93   : > { %v1360_v34 = vsel %vm6789_vm1, %v5926_v29, %v1359_v30  ;;  %v1361_v36 = vrot.slane %v1359_v30, 4  ;;  %v1040_v37 = vunpack.c.l.b16 %v842_v21  ;;  %v859_v39 = vrot.slane %v857_v23, 4  ;;  %702 = vst [vmem:[#allocation2 + $0x30] sm:$0x1] %v701_v53  ;;  %v6319_v63 = vld [vmem:[#allocation2 + $0x18] sm:$0xff]  ;;  %v6320_v48 = vld [vmem:[#allocation2 + $0x24] sm:$0xff] }
  0x94   : > { %5863 = vmatmul.msk.bf16.vlgmr.msra.gmra.mxu0 %vm1067_vm10, %v1057_v7  ;;  %v832_v31 = vsel %vm6752_vm13, %v827_v18, %v831_v52  ;;  %v846_v44 = vrot.slane %v844_v22, 4  ;;  %v849_v45 = vrot.slane %v847_v26, 5  ;;  %v1414_v46 = vunpack.c.l.b16 %v1360_v34  ;;  %v737_v52 = vld [vmem:[#allocation2 + $0x38] sm:$0x1]  ;;  %v767_v0 = vld [vmem:[#allocation2 + $0x24] sm:$0xf] }
  0x95   : > { %v6793_v33 = vld [vmem:[#allocation2 + $0x2c] sm:$0x1]  ;;  %v1039_v41 = vunpack.c.l.b16 %v832_v31  ;;  %v860_v50 = vor.u32 %v859_v39, %v855_v38  ;;  %v863_v51 = vshll.u32 %v6798_v42, 16  ;;  %v738_v58 = vsel %vm6710_vm9, 0, %v737_v52  ;;  %v6809_v1 = vld [vmem:[#allocation2 + $0x34] sm:$0xf] }
  0x96   : > { %5921 = vmatmul.msk.bf16.gmra.mxu3 %vm1067_vm10, %v6325_v8  ;;  %v1362_v40 = vrot.slane %v6793_v33, 5  ;;  %v850_v56 = vor.u32 %v849_v45, %v846_v44  ;;  %739 = vst [vmem:[#allocation2 + $0x38] sm:$0x1] %v738_v58  ;;  %v868_v3 = vshrl.u32 %v767_v0, 16  ;;  %v871_v4 = vshll.u32 %v767_v0, 16  ;;  %v6327_v44 = vld [vmem:[#allocation2 + $0xc] sm:$0xff] }
  0x97   : > { %v1058_v54 = vpack.c.b16 %v1040_v37, %v1039_v41  ;;  %v861_v60 = vrot.slane %v860_v50, 4  ;;  %v865_v61 = vrot.slane %v863_v51, 5  ;;  %v1307_v5 = vld [vmem:[#allocation2 + $0x30] sm:$0xe]  ;;  %v1366_v6 = vrot.slane %v6809_v1, 5 }
  0x98   : > { %5914 = vmatmul.msk.bf16.gmra.mxu1 %vm1067_vm10, %v6318_v14  ;;  %v1363_v47 = vsel %vm6789_vm1, %v1361_v36, %v1362_v40  ;;  %v851_v62 = vrot.slane %v850_v56, 4  ;;  %v877_v8 = vshll.u32 %v6779_v20, 16  ;;  %v881_v10 = vshrl.u32 %v6779_v20, 16  ;;  %v703_v30 = vld [vmem:[#allocation2 + $0x3c] sm:$0x1] }
  0x99   : > { %v1415_v49 = vunpack.c.l.b16 %v1363_v47  ;;  %v866_v2 = vsel %vm6752_vm13, %v861_v60, %v865_v61  ;;  %v5927_v13 = vrot.slane %v1307_v5, 9  ;;  %v1368_v14 = vrot.slane %v1366_v6, 4  ;;  %v740_v37 = vld [vmem:[#allocation2 + $0x44] sm:$0x1]  ;;  %v1308_v52 = vld [vmem:[#allocation2 + $0x3c] sm:$0xe] }
  0x9a   : > { %v856_v7 = vsel %vm6752_vm13, %v851_v62, %v855_v38  ;;  %v1042_v17 = vunpack.c.l.b16 %v866_v2  ;;  %v870_v21 = vrot.slane %v868_v3, 4  ;;  %v873_v25 = vrot.slane %v871_v4, 5  ;;  %v2151_v27 = vld [vmem:[#allocation2 + $0x24] sm:$0xe] }
  0x9b   : > { %v1431_v57 = vpack.c.b16 %v1415_v49, %v1414_v46  ;;  %v1367_v18 = vsel %vm6789_vm1, %v5927_v13, %v1366_v6  ;;  %v1041_v19 = vunpack.c.l.b16 %v856_v7  ;;  %v879_v26 = vrot.slane %v877_v8, 5  ;;  %v769_v49 = vld [vmem:[#allocation2 + $0x30] sm:$0xf]  ;;  %v706_v13 = vld [vmem:[#allocation2 + $0x48] sm:$0x1] }
  0x9c   : > { %v1416_v23 = vunpack.c.l.b16 %v1367_v18  ;;  %v883_v29 = vrot.slane %v881_v10, 4  ;;  %v704_v34 = vsel %vm6567_vm6, 0, %v703_v30  ;;  %v887_v36 = vshll.u32 %v6793_v33, 16  ;;  %v6834_v33 = vld [vmem:[#allocation2 + $0x40] sm:$0xf] }
  0x9d   : > { %5937 = vmatmul.msk.bf16.vlgmr.msra.gmra.mxu2 %vm1067_vm10, %v1431_v57  ;;  %v6820_v11 = vld [vmem:[#allocation2 + $0x38] sm:$0x1]  ;;  %705 = vst [vmem:[#allocation2 + $0x3c] sm:$0x1] %v704_v34  ;;  %v1059_v38 = vpack.c.b16 %v1042_v17, %v1041_v19  ;;  %v874_v39 = vor.u32 %v873_v25, %v870_v21  ;;  %v741_v41 = vsel %vm6710_vm9, 0, %v740_v37  ;;  %v892_v50 = vshrl.u32 %v769_v49, 16 }
  0x9e   : > { %v1369_v15 = vrot.slane %v6820_v11, 5  ;;  %v884_v40 = vor.u32 %v883_v29, %v879_v26  ;;  %742 = vst [vmem:[#allocation2 + $0x44] sm:$0x1] %v741_v41  ;;  %v889_v47 = vrot.slane %v887_v36, 5  ;;  %v895_v51 = vshll.u32 %v769_v49, 16 }
  0x9f   : > { %v875_v45 = vrot.slane %v874_v39, 4  ;;  %v1373_v53 = vrot.slane %v6834_v33, 5  ;;  %v5928_v58 = vrot.slane %v1308_v52, 9  ;;  %v905_v60 = vshrl.u32 %v6809_v1, 16  ;;  %v743_v17 = vld [vmem:[#allocation2 + $0x50] sm:$0x1] }
  0xa0   : > { %v1370_v22 = vsel %vm6789_vm1, %v1368_v14, %v1369_v15  ;;  %v885_v46 = vrot.slane %v884_v40, 4  ;;  %v894_v0 = vrot.slane %v892_v50, 4  ;;  %v897_v2 = vrot.slane %v895_v51, 5  ;;  %v1309_v37 = vld [vmem:[#allocation2 + $0x48] sm:$0xe] }
  0xa1   : > { %v1417_v20 = vunpack.c.l.b16 %v1370_v22  ;;  %v1375_v61 = vrot.slane %v1373_v53, 4  ;;  %v907_v10 = vrot.slane %v905_v60, 4  ;;  %v744_v19 = vsel %vm6710_vm9, 0, %v743_v17 }
  0xa2   : > { %v890_v56 = vsel %vm6752_vm13, %v885_v46, %v889_v47  ;;  %v898_v15 = vor.u32 %v897_v2, %v894_v0  ;;  %v911_v22 = vshll.u32 %v6820_v11, 16  ;;  %745 = vst [vmem:[#allocation2 + $0x50] sm:$0x1] %v744_v19  ;;  %v925_v39 = vshll.u32 %v6834_v33, 16 }
  0xa3   : > { %v1432_v31 = vpack.c.b16 %v1417_v20, %v1416_v23  ;;  %v1044_v6 = vunpack.c.l.b16 %v890_v56  ;;  %v6328_v23 = vld [vmem:[#allocation2 + $0x18] sm:$0xff]  ;;  %v929_v40 = vshrl.u32 %v6834_v33, 16  ;;  %vm3519_vm2 = vcmask 60416  }
  0xa4   : > { %5864 = vmatmul.msk.bf16.gmra.mxu0 %vm1067_vm10, %v1058_v54  ;;  %v880_v54 = vsel %vm6752_vm13, %v875_v45, %v879_v26  ;;  %v899_v25 = vrot.slane %v898_v15, 4  ;;  %v6321_v26 = vld [vmem:[#allocation2 + $0x30] sm:$0xff]  ;;  %v771_v29 = vld [vmem:[#allocation2 + $0x3c] sm:$0xf]  ;;  %v913_v30 = vrot.slane %v911_v22, 5  ;;  %vm7653_vm4 = vmand %vm3519_vm2, %vm451_vm0  ;;  %vm3526_vm5 = vcmask 57344  }
  0xa5   : > { %v6843_v57 = vld [vmem:[#allocation2 + $0x44] sm:$0x1]  ;;  %v1043_v5 = vunpack.c.l.b16 %v880_v54  ;;  %v916_v36 = vshrl.u32 %v771_v29, 16  ;;  %v919_v11 = vshll.u32 %v771_v29, 16  ;;  %v927_v54 = vrot.slane %v925_v39, 5 }
  0xa6   : > { %5922 = vmatmul.msk.bf16.gmra.mxu3 %vm1067_vm10, %v6326_v59  ;;  %v901_v59 = vshll.u32 %v6809_v1, 16  ;;  %v1376_v62 = vrot.slane %v6843_v57, 5  ;;  %v707_v1 = vsel %vm6567_vm6, 0, %v706_v13  ;;  %v931_v56 = vrot.slane %v929_v40, 4  ;;  %v1310_v13 = vld [vmem:[#allocation2 + $0x54] sm:$0xe] }
  0xa7   : > { %708 = vst [vmem:[#allocation2 + $0x48] sm:$0x1] %v707_v1  ;;  %v1060_v18 = vpack.c.b16 %v1044_v6, %v1043_v5  ;;  %v918_v50 = vrot.slane %v916_v36, 4  ;;  %v921_v51 = vrot.slane %v919_v11, 5  ;;  %v935_v0 = vshll.u32 %v6843_v57, 16 }
  0xa8   : > { %5915 = vmatmul.msk.bf16.gmra.mxu1 %vm1067_vm10, %v6319_v63  ;;  %v1374_v63 = vsel %vm6789_vm1, %v5928_v58, %v1373_v53  ;;  %v1377_v3 = vsel %vm6789_vm1, %v1375_v61, %v1376_v62  ;;  %v903_v8 = vrot.slane %v901_v59, 5  ;;  %v746_v61 = vld [vmem:[#allocation2 + $0x5c] sm:$0x1]  ;;  %v5930_v19 = vrot.slane %v1310_v13, 9 }
  0xa9   : > { %v1418_v4 = vunpack.c.l.b16 %v1374_v63  ;;  %v1419_v7 = vunpack.c.l.b16 %v1377_v3  ;;  %v6868_v41 = vld [vmem:[#allocation2 + $0x50] sm:$0x1]  ;;  %v922_v60 = vor.u32 %v921_v51, %v918_v50  ;;  %v932_v63 = vor.u32 %v931_v56, %v927_v54  ;;  %v6329_v3 = vld [vmem:[#allocation2 + $0x24] sm:$0xff]  ;;  %v775_v50 = vld [vmem:[#allocation2 + $0x54] sm:$0xf] }
  0xaa   : > { %v908_v21 = vor.u32 %v907_v10, %v903_v8  ;;  %v904_v34 = vsel %vm6752_vm13, %v899_v25, %v903_v8  ;;  %v1383_v47 = vrot.slane %v6868_v41, 5  ;;  %v747_v2 = vsel %vm6710_vm9, 0, %v746_v61  ;;  %v776_v10 = vld [vmem:[#allocation2 + $0x58] sm:$0xf] }
  0xab   : > { %v1433_v14 = vpack.c.b16 %v1419_v7, %v1418_v4  ;;  %748 = vst [vmem:[#allocation2 + $0x5c] sm:$0x1] %v747_v2  ;;  %v923_v4 = vrot.slane %v922_v60, 4  ;;  %v933_v5 = vrot.slane %v932_v63, 4  ;;  %v937_v6 = vrot.slane %v935_v0, 5  ;;  %v6322_v7 = vld [vmem:[#allocation2 + $0x3c] sm:$0xff] }
  0xac   : > { %v909_v20 = vrot.slane %v908_v21, 4  ;;  %v967_v56 = vshll.u32 %v775_v50, 16  ;;  %v977_v60 = vshrl.u32 %v776_v10, 16  ;;  %v1311_v63 = vld [vmem:[#allocation2 + $0x60] sm:$0xe] }
  0xad   : > { %5938 = vmatmul.msk.bf16.gmra.mxu2 %vm1067_vm10, %v1432_v31  ;;  %v6859_v31 = vld [vmem:[#allocation2 + $0x4c] sm:$0xf]  ;;  %v928_v57 = vsel %vm6752_vm13, %v923_v4, %v927_v54  ;;  %v938_v1 = vsel %vm6752_vm13, %v933_v5, %v937_v6  ;;  %v964_v54 = vshrl.u32 %v775_v50, 16  ;;  %v5931_v2 = vrot.slane %v1311_v63, 9 }
  0xae   : > { %v914_v45 = vsel %vm6752_vm13, %v909_v20, %v913_v30  ;;  %v773_v8 = vld [vmem:[#allocation2 + $0x48] sm:$0xf]  ;;  %v949_v21 = vshll.u32 %v6859_v31, 16  ;;  %v953_v22 = vshrl.u32 %v6859_v31, 16  ;;  %v1047_v29 = vunpack.c.l.b16 %v928_v57 }
  0xaf   : > { %v1046_v33 = vunpack.c.l.b16 %v914_v45  ;;  %v940_v15 = vshrl.u32 %v773_v8, 16  ;;  %v943_v17 = vshll.u32 %v773_v8, 16  ;;  %v966_v5 = vrot.slane %v964_v54, 4 }
  0xb0   : > { %v955_v39 = vrot.slane %v953_v22, 4  ;;  %v969_v6 = vrot.slane %v967_v56, 5  ;;  %v979_v8 = vrot.slane %v977_v60, 4 }
  0xb1   : > { %v942_v36 = vrot.slane %v940_v15, 4  ;;  %v945_v11 = vrot.slane %v943_v17, 5 }
  0xb2   : > { %v970_v17 = vor.u32 %v969_v6, %v966_v5 }
  0xb3   : > { %v946_v45 = vor.u32 %v945_v11, %v942_v36  ;;  %v777_v36 = vld [vmem:[#allocation2 + $0x60] sm:$0xf] }
  0xb4   : > { %5865 = vmatmul.msk.bf16.gmra.mxu0 %vm1067_vm10, %v1059_v38  ;;  %v1380_v38 = vrot.slane %v6859_v31, 5 }
  0xb5   : > { %v947_v51 = vrot.slane %v946_v45, 4 }
  0xb6   : > { %5985 = vmatmul.msk.bf16.vlgmr.msrb.gmra.mxu3 %vm1067_vm10, %v6327_v44  ;;  %v5929_v44 = vrot.slane %v1309_v37, 9  ;;  %v1382_v46 = vrot.slane %v1380_v38, 4 }
  0xb8   : > { %5916 = vmatmul.msk.bf16.gmra.mxu1 %vm1067_vm10, %v6320_v48  ;;  %v1045_v48 = vunpack.c.l.b16 %v904_v34  ;;  %v1381_v49 = vsel %vm6789_vm1, %v5929_v44, %v1380_v38  ;;  %v1384_v52 = vsel %vm6789_vm1, %v1382_v46, %v1383_v47  ;;  %v1048_v34 = vunpack.c.l.b16 %v938_v1  ;;  %v749_v44 = vld [vmem:[#allocation2 + $0x68] sm:$0x1] }
  0xb9   : > { %v1420_v53 = vunpack.c.l.b16 %v1381_v49  ;;  %v1421_v58 = vunpack.c.l.b16 %v1384_v52  ;;  %v951_v38 = vrot.slane %v949_v21, 5  ;;  %v750_v46 = vsel %vm6710_vm9, 0, %v749_v44  ;;  %v6330_v49 = vld [vmem:[#allocation2 + $0x30] sm:$0xff]  ;;  %v6323_v52 = vld [vmem:[#allocation2 + $0x48] sm:$0xff] }
  0xba   : > { %v1061_v62 = vpack.c.b16 %v1046_v33, %v1045_v48  ;;  %v1062_v31 = vpack.c.b16 %v1048_v34, %v1047_v29  ;;  %v959_v48 = vshll.u32 %v6868_v41, 16  ;;  %751 = vst [vmem:[#allocation2 + $0x68] sm:$0x1] %v750_v46  ;;  %v971_v29 = vrot.slane %v970_v17, 4  ;;  %v1312_v46 = vld [vmem:[#allocation2 + $0x6c] sm:$0xe] }
  0xbb   : > { %v1434_v59 = vpack.c.b16 %v1421_v58, %v1420_v53  ;;  %v956_v47 = vor.u32 %v955_v39, %v951_v38  ;;  %v778_v58 = vld [vmem:[#allocation2 + $0x64] sm:$0xf]  ;;  %v952_v41 = vsel %vm6752_vm13, %v947_v51, %v951_v38  ;;  %v988_v38 = vshrl.u32 %v777_v36, 16 }
  0xbc   : > { %v961_v33 = vrot.slane %v959_v48, 5  ;;  %v1394_v61 = vrot.slane %v778_v58, 5  ;;  %v1049_v13 = vunpack.c.l.b16 %v952_v41  ;;  %v991_v39 = vshll.u32 %v777_v36, 16 }
  0xbd   : > { %5939 = vmatmul.msk.bf16.gmra.mxu2 %vm1067_vm10, %v1433_v14  ;;  %v1387_v14 = vrot.slane %v776_v10, 5  ;;  %v957_v53 = vrot.slane %v956_v47, 4  ;;  %v997_v44 = vshll.u32 %v778_v58, 16  ;;  %v5932_v47 = vrot.slane %v1312_v46, 9 }
  0xbf   : > { %v962_v0 = vsel %vm6752_vm13, %v957_v53, %v961_v33  ;;  %v993_v53 = vrot.slane %v991_v39, 5  ;;  %v999_v56 = vrot.slane %v997_v44, 5 }
  0xc4   : > { %5866 = vmatmul.msk.bf16.gmra.mxu0 %vm1067_vm10, %v1060_v18  ;;  %v6888_v18 = vld [vmem:[#allocation2 + $0x5c] sm:$0x1] }
  0xc5   : > { %v1390_v25 = vrot.slane %v6888_v18, 5  ;;  %v983_v22 = vshll.u32 %v6888_v18, 16 }
  0xc6   : > { %5986 = vmatmul.msk.bf16.gmra.mxu3 %vm1067_vm10, %v6328_v23  ;;  %v1389_v23 = vrot.slane %v1387_v14, 4 }
  0xc7   : > { %v985_v34 = vrot.slane %v983_v22, 5 }
  0xc8   : > { %5917 = vmatmul.msk.bf16.gmra.mxu1 %vm1067_vm10, %v6321_v26  ;;  %v1388_v26 = vsel %vm6789_vm1, %v5930_v19, %v1387_v14  ;;  %v1391_v20 = vsel %vm6789_vm1, %v1389_v23, %v1390_v25  ;;  %v1050_v14 = vunpack.c.l.b16 %v962_v0  ;;  %v752_v23 = vld [vmem:[#allocation2 + $0x74] sm:$0x1] }
  0xc9   : > { %v1422_v30 = vunpack.c.l.b16 %v1388_v26  ;;  %v1423_v37 = vunpack.c.l.b16 %v1391_v20  ;;  %v753_v26 = vsel %vm6710_vm9, 0, %v752_v23  ;;  %v6331_v20 = vld [vmem:[#allocation2 + $0x3c] sm:$0xff] }
  0xca   : > { %v1063_v25 = vpack.c.b16 %v1050_v14, %v1049_v13  ;;  %754 = vst [vmem:[#allocation2 + $0x74] sm:$0x1] %v753_v26 }
  0xcb   : > { %v1435_v40 = vpack.c.b16 %v1423_v37, %v1422_v30  ;;  %v780_v37 = vld [vmem:[#allocation2 + $0x70] sm:$0xf] }
  0xcc   : > { %v1021_v14 = vshll.u32 %v780_v37, 16 }
  0xcd   : > { %5940 = vmatmul.msk.bf16.gmra.mxu2 %vm1067_vm10, %v1434_v59  ;;  %v973_v59 = vshll.u32 %v776_v10, 16  ;;  %v1395_v10 = vsel %vm6789_vm1, %v5931_v2, %v1394_v61 }
  0xce   : > { %v1424_v1 = vunpack.c.l.b16 %v1395_v10 }
  0xd1   : > { %v791_v45 = vld [vmem:[#allocation2 + $0x74] sm:$0x1] }
  0xd2   : > { %v1031_v36 = vshll.u32 %v791_v45, 16 }
  0xd4   : > { %5867 = vmatmul.msk.bf16.gmra.mxu0 %vm1067_vm10, %v1061_v62  ;;  %v6906_v62 = vld [vmem:[#allocation2 + $0x68] sm:$0x1] }
  0xd5   : > { %v1397_v4 = vrot.slane %v6906_v62, 5  ;;  %v1007_v2 = vshll.u32 %v6906_v62, 16 }
  0xd6   : > { %5987 = vmatmul.msk.bf16.gmra.mxu3 %vm1067_vm10, %v6329_v3  ;;  %v1396_v3 = vrot.slane %v1394_v61, 4 }
  0xd7   : > { %v1009_v6 = vrot.slane %v1007_v2, 5 }
  0xd8   : > { %5918 = vmatmul.msk.bf16.gmra.mxu1 %vm1067_vm10, %v6322_v7  ;;  %v975_v7 = vrot.slane %v973_v59, 5  ;;  %v1398_v57 = vsel %vm6789_vm1, %v1396_v3, %v1397_v4  ;;  %v6332_v3 = vld [vmem:[#allocation2 + $0x48] sm:$0xff] }
  0xd9   : > { %v1425_v15 = vunpack.c.l.b16 %v1398_v57 }
  0xda   : > { %v980_v21 = vor.u32 %v979_v8, %v975_v7  ;;  %v976_v11 = vsel %vm6752_vm13, %v971_v29, %v975_v7  ;;  %v779_v8 = vld [vmem:[#allocation2 + $0x6c] sm:$0xf] }
  0xdb   : > { %v1436_v19 = vpack.c.b16 %v1425_v15, %v1424_v1  ;;  %v1051_v50 = vunpack.c.l.b16 %v976_v11  ;;  %v1012_v13 = vshrl.u32 %v779_v8, 16  ;;  %v1015_v62 = vshll.u32 %v779_v8, 16 }
  0xdc   : > { %v981_v30 = vrot.slane %v980_v21, 4  ;;  %v1025_v1 = vshrl.u32 %v780_v37, 16 }
  0xdd   : > { %5941 = vmatmul.msk.bf16.gmra.mxu2 %vm1067_vm10, %v1435_v40  ;;  %v1401_v40 = vrot.slane %v780_v37, 5  ;;  %v1014_v22 = vrot.slane %v1012_v13, 4  ;;  %v1017_v23 = vrot.slane %v1015_v62, 5  ;;  %v6333_v37 = vld [vmem:[#allocation2 + $0x54] sm:$0xff]  ;;  %v1345_v62 = vrot.slane %v6739_v28, 5 }
  0xde   : > { %v986_v18 = vsel %vm6752_vm13, %v981_v30, %v985_v34  ;;  %v1027_v26 = vrot.slane %v1025_v1, 4 }
  0xdf   : > { %v1403_v48 = vrot.slane %v1401_v40, 4  ;;  %v1052_v51 = vunpack.c.l.b16 %v986_v18  ;;  %v1402_v33 = vsel %vm6789_vm1, %v5932_v47, %v1401_v40  ;;  %v1018_v30 = vor.u32 %v1017_v23, %v1014_v22  ;;  %v6335_v22 = vld [vmem:[#allocation2 + $0x6c] sm:$0xff] }
  0xe0   : > { %v1426_v60 = vunpack.c.l.b16 %v1402_v33 }
  0xe1   : > { %v1064_v41 = vpack.c.b16 %v1052_v51, %v1051_v50  ;;  %v1019_v40 = vrot.slane %v1018_v30, 4  ;;  %v2588_v30 = vld [vmem:[#allocation2 + $0x1c] sm:$0xf] }
  0xe4   : > { %5868 = vmatmul.msk.bf16.gmra.mxu0 %vm1067_vm10, %v1062_v31  ;;  %v1001_v31 = vshrl.u32 %v778_v58, 16 }
  0xe6   : > { %5988 = vmatmul.msk.bf16.gmra.mxu3 %vm1067_vm10, %v6330_v49  ;;  %v1404_v49 = vrot.slane %v791_v45, 5  ;;  %v1003_v59 = vrot.slane %v1001_v31, 4  ;;  %v1033_v31 = vrot.slane %v1031_v36, 5 }
  0xe8   : > { %5919 = vmatmul.msk.bf16.gmra.mxu1 %vm1067_vm10, %v6323_v52  ;;  %v990_v52 = vrot.slane %v988_v38, 4  ;;  %v1405_v54 = vsel %vm6789_vm1, %v1403_v48, %v1404_v49  ;;  %v1004_v0 = vor.u32 %v1003_v59, %v999_v56  ;;  %v5995_v38 = vld [vmem:[%s8367_s1 + $0x8] sm:$0x3]  ;;  %v1338_v59 = vrot.slane %v6725_v12, 5 }
  0xe9   : > { %v1427_v61 = vunpack.c.l.b16 %v1405_v54  ;;  %v2068_v46 = vsel %vm1098_vm8, %v5995_v38, 0 }
  0xea   : > { %v994_v63 = vor.u32 %v993_v53, %v990_v52  ;;  %v1005_v5 = vrot.slane %v1004_v0, 4  ;;  %2077 = vmatpush.bf16.msra.mxu0 %v2068_v46  ;;  %v718_v53 = vld [vmem:[#allocation2 + $0x78] sm:$0x1] }
  0xeb   : > { %v1437_v58 = vpack.c.b16 %v1427_v61, %v1426_v60  ;;  %v719_v33 = vsel %vm6567_vm6, 0, %v718_v53 }
  0xec   : > { %v995_v4 = vrot.slane %v994_v63, 4  ;;  %v1010_v57 = vsel %vm6752_vm13, %v1005_v5, %v1009_v6  ;;  %720 = vst [vmem:[#allocation2 + $0x78] sm:$0x1] %v719_v33  ;;  %v1341_v63 = vrot.slane %v6744_v35, 5  ;;  %v7013_v33 = vld [vmem:[#allocation2 + $0x10] sm:$0xf] }
  0xed   : > { %5942 = vmatmul.msk.bf16.gmra.mxu2 %vm1067_vm10, %v1436_v19  ;;  %v1054_v19 = vunpack.c.l.b16 %v1010_v57 }
  0xee   : > { %v1000_v10 = vsel %vm6752_vm13, %v995_v4, %v999_v56 }
  0xef   : > { %v1053_v17 = vunpack.c.l.b16 %v1000_v10 }
  0xf1   : > { %v1065_v29 = vpack.c.b16 %v1054_v19, %v1053_v17  ;;  %v1304_v19 = vld [vmem:[#allocation2 + $0xc] sm:$0xe] }
  0xf4   : > { %5869 = vmatmul.msk.bf16.gmra.mxu0 %vm1067_vm10, %v1063_v25  ;;  %v1023_v25 = vrot.slane %v1021_v14, 5 }
  0xf6   : > { %5989 = vmatmul.msk.bf16.gmra.mxu3 %vm1067_vm10, %v6331_v20  ;;  %v1028_v34 = vor.u32 %v1027_v26, %v1023_v25  ;;  %v1024_v47 = vsel %vm6752_vm13, %v1019_v40, %v1023_v25  ;;  %v5924_v25 = vrot.slane %v1304_v19, 9  ;;  %v1347_v26 = vrot.slane %v1345_v62, 4 }
  0xf7   : > { %v1055_v50 = vunpack.c.l.b16 %v1024_v47  ;;  %v2627_v40 = vshll.u32 %v2588_v30, 16  ;;  %v6078_v47 = vld [vmem:[%s8367_s1 + $0xe] sm:$0x3] }
  0xf8   : > { %v1029_v44 = vrot.slane %v1028_v34, 4  ;;  %v1346_v34 = vsel %vm6789_vm1, %v5924_v25, %v1345_v62 }
  0xfa   : > { %v1034_v48 = vsel %vm6752_vm13, %v1029_v44, %v1033_v31  ;;  %v1410_v31 = vunpack.c.l.b16 %v1346_v34 }
  0xfb   : > { %v1056_v51 = vunpack.c.l.b16 %v1034_v48  ;;  %v6027_v48 = vld [vmem:[%s8367_s1 + $0xc] sm:$0x3] }
  0xfc   : > { %v2506_v53 = vsel %vm1098_vm8, %v6027_v48, 0  ;;  %v1735_v48 = vld [vmem:[#allocation2 + $0xc] sm:$0xf] }
  0xfd   : > { %5943 = vmatmul.msk.bf16.gmra.mxu2 %vm1067_vm10, %v1437_v58  ;;  %v1066_v54 = vpack.c.b16 %v1056_v51, %v1055_v50  ;;  %v1303_v58 = vld [vmem:[#allocation2] sm:$0xe]  ;;  %v2920_v51 = vsel %vm1098_vm8, %v6078_v47, 0 }
  0xfe   : > { %v5923_v2 = vrot.slane %v1303_v58, 9  ;;  %2929 = vmatpush.bf16.msra.mxu3 %v2920_v51  ;;  %2515 = vmatpush.bf16.msrb.mxu2 %v2506_v53  ;;  %v7017_v58 = vrot.slane %v2627_v40, 5 }
 0x100   : > { %v1339_v12 = vsel %vm6789_vm1, %v5923_v2, %v1338_v59  ;;  %v2191_v2 = vrot.slane %v7013_v33, 5 }
 0x101   : > { %v1408_v8 = vunpack.c.l.b16 %v1339_v12 }
 0x102   : > { %v2193_v19 = vrot.slane %v2191_v2, 4 }
 0x104   : > { %5870 = vmatmul.msk.bf16.gmra.mxu0 %vm1067_vm10, %v1064_v41  ;;  %v6334_v41 = vld [vmem:[#allocation2 + $0x60] sm:$0xff] }
 0x105   : > { %v1253_v7 = vpop.f32.mrf.mxu1 }
 0x106   : > { %5990 = vmatmul.msk.bf16.gmra.mxu3 %vm1067_vm10, %v6332_v3  ;;  %v1340_v3 = vrot.slane %v1338_v59, 4 }
 0x108   : > { %v1342_v6 = vsel %vm6789_vm1, %v1340_v3, %v1341_v63 }
 0x109   : > { %v6937_v15 = vpop.f32.mrf.mxu3  ;;  %v1409_v10 = vunpack.c.l.b16 %v1342_v6  ;;  %v6337_v6 = vld [vmem:[#allocation2 + $0x18] sm:$0xff] }
 0x10b   : > { %v1428_v57 = vpack.c.b16 %v1409_v10, %v1408_v8  ;;  %v2589_v8 = vld [vmem:[#allocation2 + $0x20] sm:$0x1] }
 0x10d   : > { %v6939_v21 = vpop.f32.mrf.mxu1  ;;  %6068 = vmatmul.msk.bf16.vlgmr.msrb.gmra.mxu2 %vm1067_vm10, %v6337_v6 }
 0x111   : > { %v1111_v20 = vpop.f32.mrf.mxu0  ;;  %v6943_v18 = vpop.f32.mrf.mxu3 }
 0x112   : > { %v6941_v11 = vadd.f32 %v1253_v7, %v1111_v20  ;;  %v2587_v20 = vld [vmem:[#allocation2 + $0x18] sm:$0xf] }
 0x113   : > { %v2618_v38 = vshrl.u32 %v2587_v20, 16 }
 0x114   : > { %5871 = vmatmul.msk.bf16.gmra.mxu0 %vm1067_vm10, %v1065_v29  ;;  %v1348_v29 = vrot.slane %v6762_v55, 5  ;;  %v2631_v55 = vshrl.u32 %v2588_v30, 16  ;;  %v6336_v30 = vld [vmem:[#allocation2 + $0x78] sm:$0xff] }
 0x115   : > { %v1258_v39 = vpop.f32.mrf.mxu1 }
 0x116   : > { %5991 = vmatmul.msk.bf16.gmra.mxu3 %vm1067_vm10, %v6333_v37  ;;  %v1349_v36 = vsel %vm6789_vm1, %v1347_v26, %v1348_v29  ;;  %v2633_v63 = vrot.slane %v2631_v55, 4  ;;  %v1305_v26 = vld [vmem:[#allocation2 + $0x18] sm:$0xe]  ;;  %v1355_v55 = vrot.slane %v6798_v42, 5  ;;  %v2591_v42 = vld [vmem:[#allocation2 + $0x28] sm:$0xf] }
 0x117   : > { %v1411_v46 = vunpack.c.l.b16 %v1349_v36  ;;  %v2637_v36 = vshll.u32 %v2589_v8, 16  ;;  %v1775_v8 = vshll.u32 %v7013_v33, 16 }
 0x118   : > { %v2634_v34 = vor.u32 %v2633_v63, %v7017_v58  ;;  %v2590_v63 = vld [vmem:[#allocation2 + $0x24] sm:$0xf] }
 0x119   : > { %v6951_v45 = vpop.f32.mrf.mxu0  ;;  %v6957_v49 = vpop.f32.mrf.mxu3  ;;  %v1429_v12 = vpack.c.b16 %v1411_v46, %v1410_v31  ;;  %v5925_v31 = vrot.slane %v1305_v26, 9 }
 0x11d   : > { %v6959_v52 = vpop.f32.mrf.mxu1 }
 0x120   : > { %v6971_v4 = vpop.f32.mrf.mxu2 }
 0x121   : > { %v1116_v56 = vpop.f32.mrf.mxu0  ;;  %v6966_v61 = vpop.f32.mrf.mxu3 }
 0x122   : > { %v6964_v60 = vadd.f32 %v1258_v39, %v1116_v56  ;;  %v2621_v39 = vshll.u32 %v2587_v20, 16  ;;  %v2620_v56 = vrot.slane %v2618_v38, 4 }
 0x124   : > { %5872 = vmatmul.msk.bf16.gmra.mxu0 %vm1067_vm10, %v1066_v54  ;;  %v7015_v54 = vld [vmem:[#allocation2 + $0x14] sm:$0x1]  ;;  %v2623_v59 = vrot.slane %v2621_v39, 5 }
 0x125   : > { %v1263_v0 = vpop.f32.mrf.mxu1  ;;  %v2194_v3 = vrot.slane %v7015_v54, 5 }
 0x126   : > { %5992 = vmatmul.msk.bf16.gmra.mxu3 %vm1067_vm10, %v6334_v41  ;;  %v2149_v41 = vld [vmem:[#allocation2 + $0xc] sm:$0xe] }
 0x127   : > { %v2195_v38 = vsel %vm6789_vm1, %v2193_v19, %v2194_v3  ;;  %v2645_v19 = vshll.u32 %v2590_v63, 16 }
 0x128   : > { %v6984_v14 = vpop.f32.mrf.mxu2  ;;  %v2262_v40 = vunpack.c.l.b16 %v2195_v38 }
 0x129   : > { %v6973_v5 = vpop.f32.mrf.mxu0  ;;  %v6979_v7 = vpop.f32.mrf.mxu3 }
 0x12d   : > { %v6981_v35 = vpop.f32.mrf.mxu1 }
 0x130   : > { %v7001_v44 = vpop.f32.mrf.mxu2 }
 0x131   : > { %v1121_v13 = vpop.f32.mrf.mxu0  ;;  %v6988_v17 = vpop.f32.mrf.mxu3 }
 0x132   : > { %v6986_v1 = vadd.f32 %v1263_v0, %v1121_v13  ;;  %v6006_v0 = vrot.slane %v2149_v41, 9  ;;  %v6016_v13 = vld [vmem:[%s8367_s1 + $0xa] sm:$0x3]  ;;  %v2639_v41 = vrot.slane %v2637_v36, 5  ;;  %v7062_v36 = vld [vmem:[#allocation2 + $0x1c] sm:$0xf] }
 0x133   : > { %v2322_v29 = vsel %vm1098_vm8, %v6016_v13, 0 }
 0x134   : > { %5934 = vmatmul.msk.bf16.vlgmr.msrb.gmra.mxu0 %vm1067_vm10, %v1428_v57  ;;  %v1352_v57 = vrot.slane %v6771_v9, 5  ;;  %v2192_v62 = vsel %vm6789_vm1, %v6006_v0, %v2191_v2  ;;  %2331 = vmatpush.bf16.msrb.mxu1 %v2322_v29  ;;  %v2624_v9 = vor.u32 %v2623_v59, %v2620_v56  ;;  %v2635_v59 = vrot.slane %v2634_v34, 4 }
 0x135   : > { %v1268_v23 = vpop.f32.mrf.mxu1  ;;  %v2261_v20 = vunpack.c.l.b16 %v2192_v62  ;;  %v1766_v0 = vshrl.u32 %v1735_v48, 16  ;;  %v1769_v2 = vshll.u32 %v1735_v48, 16  ;;  %v2642_v62 = vshrl.u32 %v2590_v63, 16 }
 0x136   : > { %5993 = vmatmul.msk.bf16.gmra.mxu3 %vm1067_vm10, %v6335_v22  ;;  %v1354_v46 = vrot.slane %v1352_v57, 4  ;;  %v2625_v56 = vrot.slane %v2624_v9, 4  ;;  %v2640_v26 = vsel %vm6752_vm13, %v2635_v59, %v2639_v41  ;;  %v2651_v29 = vshll.u32 %v2591_v42, 16 }
 0x137   : > { %v2281_v53 = vpack.c.b16 %v2262_v40, %v2261_v20  ;;  %v1768_v9 = vrot.slane %v1766_v0, 4  ;;  %v1771_v34 = vrot.slane %v1769_v2, 5  ;;  %v6338_v0 = vld [vmem:[#allocation2 + $0x24] sm:$0xff]  ;;  %v7071_v2 = vld [vmem:[#allocation2 + $0x20] sm:$0x1] }
 0x138   : > { %v7042_v47 = vpop.f32.mrf.mxu2  ;;  %v1356_v6 = vsel %vm6789_vm1, %v1354_v46, %v1355_v55  ;;  %v2860_v55 = vunpack.c.l.b16 %v2640_v26  ;;  %v2150_v46 = vld [vmem:[#allocation2 + $0x18] sm:$0xe]  ;;  %6069 = vmatmul.msk.bf16.gmra.mxu2 %vm1067_vm10, %v6338_v0 }
 0x139   : > { %v6993_v28 = vpop.f32.mrf.mxu0  ;;  %v6999_v37 = vpop.f32.mrf.mxu3  ;;  %6017 = vmatmul.msk.bf16.vlgmr.msrb.gmra.mxu1 %vm1067_vm10, %v2281_v53  ;;  %v1772_v63 = vor.u32 %v1771_v34, %v1768_v9 }
 0x13d   : > { %v7009_v50 = vpop.f32.mrf.mxu1 }
 0x140   : > { %v7067_v48 = vpop.f32.mrf.mxu2 }
 0x141   : > { %v1126_v10 = vpop.f32.mrf.mxu0  ;;  %v7027_v25 = vpop.f32.mrf.mxu3 }
 0x142   : > { %v1269_v22 = vadd.f32 %v1268_v23, %v1126_v10  ;;  %v6099_v23 = vld [vmem:[%s8367_s1 + $0x10] sm:$0x3]  ;;  %v1779_v10 = vshrl.u32 %v7013_v33, 16  ;;  %v7064_v33 = vrot.slane %v1775_v8, 5 }
 0x143   : > { %v3174_v51 = vsel %vm1098_vm8, %v6099_v23, 0  ;;  %v2198_v23 = vrot.slane %v7062_v36, 5 }
 0x144   : > { %v7035_v39 = vadd.f32 %v6971_v4, %v1269_v22  ;;  %5935 = vmatmul.msk.bf16.gmra.mxu0 %vm1067_vm10, %v1429_v12  ;;  %v1353_v12 = vsel %vm6789_vm1, %v5925_v31, %v1352_v57  ;;  %v2630_v22 = vsel %vm6752_vm13, %v2625_v56, %v7017_v58  ;;  %v2655_v57 = vshrl.u32 %v2591_v42, 16  ;;  %v2592_v42 = vld [vmem:[#allocation2 + $0x2c] sm:$0x1] }
 0x145   : > { %3183 = vmatpush.bf16.msrb.mxu0 %v3174_v51  ;;  %v1273_v4 = vpop.f32.mrf.mxu1  ;;  %v1412_v20 = vunpack.c.l.b16 %v1353_v12  ;;  %v1781_v38 = vrot.slane %v1779_v10, 4  ;;  %v2859_v40 = vunpack.c.l.b16 %v2630_v22  ;;  %v2644_v31 = vrot.slane %v2642_v62, 4 }
 0x146   : > { %5994 = vmatmul.msk.bf16.gmra.mxu3 %vm1067_vm10, %v6336_v30  ;;  %v1413_v30 = vunpack.c.l.b16 %v1356_v6  ;;  %v2647_v58 = vrot.slane %v2645_v19, 5  ;;  %v7069_v51 = vrot.slane %v2651_v29, 5  ;;  %v2657_v53 = vrot.slane %v2655_v57, 4 }
 0x147   : > { %v6007_v56 = vrot.slane %v2150_v46, 9  ;;  %v2200_v59 = vrot.slane %v2198_v23, 4  ;;  %v1782_v8 = vor.u32 %v1781_v38, %v7064_v33  ;;  %v1785_v10 = vshll.u32 %v7015_v54, 16 }
 0x148   : > { %v1430_v41 = vpack.c.b16 %v1413_v30, %v1412_v20  ;;  %v2201_v19 = vrot.slane %v7071_v2, 5  ;;  %v2879_v29 = vpack.c.b16 %v2860_v55, %v2859_v40  ;;  %v1738_v20 = vld [vmem:[#allocation2 + $0x18] sm:$0xf]  ;;  %v2648_v30 = vor.u32 %v2647_v58, %v2644_v31 }
 0x149   : > { %v7047_v3 = vpop.f32.mrf.mxu0  ;;  %v7055_v13 = vpop.f32.mrf.mxu3  ;;  %v2199_v62 = vsel %vm6789_vm1, %v6007_v56, %v2198_v23  ;;  %v2658_v9 = vor.u32 %v2657_v53, %v7069_v51  ;;  %v2661_v34 = vshll.u32 %v2592_v42, 16  ;;  %v1773_v23 = vrot.slane %v1772_v63, 4 }
 0x14a   : > { %8391 = vst [vmem:[#allocation5_spill] sm:$0xff] %v7055_v13  ;;  %v2263_v57 = vunpack.c.l.b16 %v2199_v62  ;;  %v2202_v54 = vsel %vm6789_vm1, %v2200_v59, %v2201_v19  ;;  %v1783_v46 = vrot.slane %v1782_v8, 4  ;;  %v1787_v40 = vrot.slane %v1785_v10, 5  ;;  %v2593_v59 = vld [vmem:[#allocation2 + $0x30] sm:$0xf]  ;;  %v7099_v63 = vpop.f32.mrf.mxu2 }
 0x14b   : > { %v1790_v55 = vshrl.u32 %v1738_v20, 16  ;;  %v1793_v56 = vshll.u32 %v1738_v20, 16  ;;  %v2649_v31 = vrot.slane %v2648_v30, 4  ;;  %v2659_v58 = vrot.slane %v2658_v9, 4  ;;  %v2594_v10 = vld [vmem:[#allocation2 + $0x34] sm:$0xf] }
 0x14c   : > { %v2663_v53 = vrot.slane %v2661_v34, 5  ;;  %v1803_v8 = vshrl.u32 %v7062_v36, 16  ;;  %v2666_v20 = vshrl.u32 %v2593_v59, 16  ;;  %v2669_v30 = vshll.u32 %v2593_v59, 16  ;;  %v6339_v59 = vld [vmem:[#allocation2 + $0x30] sm:$0xff] }
 0x14d   : > { %v7073_v6 = vpop.f32.mrf.mxu1  ;;  %v1792_v19 = vrot.slane %v1790_v55, 4  ;;  %6070 = vmatmul.msk.bf16.gmra.mxu2 %vm1067_vm10, %v6339_v59 }
 0x151   : > { %v1131_v12 = vpop.f32.mrf.mxu0  ;;  %v7080_v26 = vpop.f32.mrf.mxu3 }
 0x152   : > { %v1274_v22 = vadd.f32 %v1273_v4, %v1131_v12  ;;  %8392 = vst [vmem:[#allocation6_spill] sm:$0xff] %v7080_v26  ;;  %v2264_v4 = vunpack.c.l.b16 %v2202_v54  ;;  %v1799_v12 = vshll.u32 %v7062_v36, 16  ;;  %v7110_v54 = vld [vmem:[#allocation2 + $0x28] sm:$0xf]  ;;  %v2675_v36 = vshll.u32 %v2594_v10, 16 }
 0x154   : > { %v7087_v38 = vadd.f32 %v7001_v44, %v1274_v22  ;;  %5936 = vmatmul.msk.bf16.gmra.mxu0 %vm1067_vm10, %v1430_v41  ;;  %v2282_v0 = vpack.c.b16 %v2264_v4, %v2263_v57  ;;  %v1778_v44 = vsel %vm6752_vm13, %v1773_v23, %v7064_v33  ;;  %v1788_v41 = vsel %vm6752_vm13, %v1783_v46, %v1787_v40 }
 0x155   : > { %v1795_v22 = vrot.slane %v1793_v56, 5  ;;  %v2654_v57 = vsel %vm6752_vm13, %v2649_v31, %v7069_v51  ;;  %v2664_v33 = vsel %vm6752_vm13, %v2659_v58, %v2663_v53  ;;  %v2007_v9 = vunpack.c.l.b16 %v1778_v44  ;;  %v7113_v44 = vld [vmem:[#allocation2 + $0x2c] sm:$0x1] }
 0x156   : > { %6079 = vmatmul.msk.bf16.vlgmr.msra.gmra.mxu3 %vm1067_vm10, %v2879_v29  ;;  %6018 = vmatmul.msk.bf16.gmra.mxu1 %vm1067_vm10, %v2282_v0  ;;  %v1278_v29 = vpop.f32.mrf.mxu1  ;;  %v2008_v34 = vunpack.c.l.b16 %v1788_v41  ;;  %v2679_v4 = vshrl.u32 %v2594_v10, 16  ;;  %v1801_v23 = vrot.slane %v1799_v12, 5  ;;  %v1805_v46 = vrot.slane %v1803_v8, 4  ;;  %v2595_v8 = vld [vmem:[#allocation2 + $0x38] sm:$0x1] }
 0x157   : > { %v2205_v40 = vrot.slane %v7110_v54, 5  ;;  %v1796_v55 = vor.u32 %v1795_v22, %v1792_v19  ;;  %v2861_v56 = vunpack.c.l.b16 %v2654_v57  ;;  %v2862_v0 = vunpack.c.l.b16 %v2664_v33 }
 0x158   : > { %v2668_v51 = vrot.slane %v2666_v20, 4  ;;  %v2671_v31 = vrot.slane %v2669_v30, 5  ;;  %v2027_v53 = vpack.c.b16 %v2008_v34, %v2007_v9  ;;  %v2677_v41 = vrot.slane %v2675_v36, 5  ;;  %v7122_v30 = vpop.f32.mrf.mxu2 }
 0x159   : > { %v7092_v42 = vpop.f32.mrf.mxu0  ;;  %v7103_v62 = vpop.f32.mrf.mxu3  ;;  %v2207_v58 = vrot.slane %v2205_v40, 4  ;;  %v2681_v26 = vrot.slane %v2679_v4, 4  ;;  %v1806_v10 = vor.u32 %v1805_v46, %v1801_v23  ;;  %v1809_v12 = vshll.u32 %v7071_v2, 16 }
 0x15a   : > { %8393 = vst [vmem:[#allocation7_spill] sm:$0xff] %v7103_v62  ;;  %v6008_v62 = vrot.slane %v2151_v27, 9  ;;  %v2208_v22 = vrot.slane %v7113_v44, 5  ;;  %v1741_v27 = vld [vmem:[#allocation2 + $0x24] sm:$0xf]  ;;  %v1797_v9 = vrot.slane %v1796_v55, 4  ;;  %v2880_v34 = vpack.c.b16 %v2862_v0, %v2861_v56 }
 0x15b   : > { %v2672_v36 = vor.u32 %v2671_v31, %v2668_v51  ;;  %v1811_v59 = vrot.slane %v1809_v12, 5  ;;  %v1823_v55 = vshll.u32 %v7110_v54, 16  ;;  %v1827_v56 = vshrl.u32 %v7110_v54, 16 }
 0x15c   : > { %v2206_v19 = vsel %vm6789_vm1, %v6008_v62, %v2205_v40  ;;  %v2209_v2 = vsel %vm6789_vm1, %v2207_v58, %v2208_v22  ;;  %v2685_v62 = vshll.u32 %v2595_v8, 16  ;;  %v1807_v40 = vrot.slane %v1806_v10, 4  ;;  %v2596_v58 = vld [vmem:[#allocation2 + $0x3c] sm:$0xf]  ;;  %v2597_v22 = vld [vmem:[#allocation2 + $0x40] sm:$0xf] }
 0x15d   : > { %v2265_v20 = vunpack.c.l.b16 %v2206_v19  ;;  %v1814_v19 = vshrl.u32 %v1741_v27, 16  ;;  %v1802_v51 = vsel %vm6752_vm13, %v1797_v9, %v1801_v23  ;;  %v1829_v9 = vrot.slane %v1827_v56, 4 }
 0x15e   : > { %v1280_v46 = vpop.f32.mrf.mxu1  ;;  %v1812_v12 = vsel %vm6752_vm13, %v1807_v40, %v1811_v59  ;;  %v7153_v40 = vld [vmem:[#allocation2 + $0x34] sm:$0xf] }
 0x15f   : > { %v1816_v54 = vrot.slane %v1814_v19, 4 }
 0x161   : > { %v1136_v13 = vpop.f32.mrf.mxu0  ;;  %v7119_v33 = vpop.f32.mrf.mxu3 }
 0x162   : > { %v1279_v57 = vadd.f32 %v1278_v29, %v1136_v13  ;;  %8394 = vst [vmem:[#allocation8_spill] sm:$0xff] %v7119_v33  ;;  %v2682_v13 = vor.u32 %v2681_v26, %v2677_v41  ;;  %v2266_v29 = vunpack.c.l.b16 %v2209_v2  ;;  %v1817_v33 = vshll.u32 %v1741_v27, 16 }
 0x163   : > { %v2687_v26 = vrot.slane %v2685_v62, 5  ;;  %v2009_v27 = vunpack.c.l.b16 %v1802_v51  ;;  %v2010_v2 = vunpack.c.l.b16 %v1812_v12  ;;  %v2703_v62 = vshrl.u32 %v2597_v22, 16  ;;  %v7159_v12 = vld [vmem:[#allocation2 + $0x38] sm:$0x1] }
 0x164   : > { %v7127_v4 = vadd.f32 %v7067_v48, %v1279_v57  ;;  %5996 = vmatmul.msk.bf16.vlgmr.msra.gmra.mxu0 %vm1067_vm10, %v2027_v53  ;;  %v2283_v0 = vpack.c.b16 %v2266_v29, %v2265_v20  ;;  %v2673_v48 = vrot.slane %v2672_v36, 4  ;;  %v2683_v31 = vrot.slane %v2682_v13, 4  ;;  %v7151_v29 = vpop.f32.mrf.mxu2 }
 0x165   : > { %v1271_v53 = vadd.f32 %v7009_v50, %v7047_v3  ;;  %v1819_v8 = vrot.slane %v1817_v33, 5  ;;  %v7142_v20 = vrot.slane %v1823_v55, 5  ;;  %v2690_v3 = vshrl.u32 %v2596_v58, 16  ;;  %v2152_v55 = vld [vmem:[#allocation2 + $0x30] sm:$0xe] }
 0x166   : > { %6080 = vmatmul.msk.bf16.gmra.mxu3 %vm1067_vm10, %v2880_v34  ;;  %6019 = vmatmul.msk.bf16.gmra.mxu1 %vm1067_vm10, %v2283_v0  ;;  %v2678_v50 = vsel %vm6752_vm13, %v2673_v48, %v2677_v41  ;;  %v2693_v36 = vshll.u32 %v2596_v58, 16  ;;  %v2688_v33 = vsel %vm6752_vm13, %v2683_v31, %v2687_v26  ;;  %v2699_v13 = vshll.u32 %v2597_v22, 16  ;;  %v1283_v56 = vpop.f32.mrf.mxu1 }
 0x167   : > { %v1830_v59 = vor.u32 %v1829_v9, %v7142_v20  ;;  %v2863_v19 = vunpack.c.l.b16 %v2678_v50  ;;  %v2212_v41 = vrot.slane %v7153_v40, 5  ;;  %v2864_v0 = vunpack.c.l.b16 %v2688_v33 }
 0x168   : > { %v2692_v51 = vrot.slane %v2690_v3, 4  ;;  %v2695_v48 = vrot.slane %v2693_v36, 5  ;;  %v6009_v31 = vrot.slane %v2152_v55, 9  ;;  %v1537_v26 = vadd.f32 %v6984_v14, %v1271_v53 }
 0x169   : > { %v1138_v10 = vpop.f32.mrf.mxu0  ;;  %v1680_v23 = vpop.f32.mrf.mxu3  ;;  %v2028_v58 = vpack.c.b16 %v2010_v2, %v2009_v27  ;;  %v2214_v50 = vrot.slane %v2212_v41, 4  ;;  %v2215_v33 = vrot.slane %v7159_v12, 5  ;;  %v1831_v55 = vrot.slane %v1830_v59, 4  ;;  %v1744_v2 = vld [vmem:[#allocation2 + $0x30] sm:$0xf] }
 0x16a   : > { %v7140_v57 = vadd.f32 %v1280_v46, %v1138_v10  ;;  %v7145_v34 = vadd.f32 %v1680_v23, %v7035_v39  ;;  %v1820_v46 = vor.u32 %v1819_v8, %v1816_v54  ;;  %v1833_v39 = vshll.u32 %v7113_v44, 16  ;;  %v6340_v10 = vld [vmem:[#allocation2 + $0x3c] sm:$0xff]  ;;  %v2598_v44 = vld [vmem:[#allocation2 + $0x44] sm:$0x1] }
 0x16b   : > { %v2701_v54 = vrot.slane %v2699_v13, 5  ;;  %v2705_v8 = vrot.slane %v2703_v62, 4  ;;  %v2213_v9 = vsel %vm6789_vm1, %v6009_v31, %v2212_v41  ;;  %6071 = vmatmul.msk.bf16.gmra.mxu2 %vm1067_vm10, %v6340_v10  ;;  %v2881_v27 = vpack.c.b16 %v2864_v0, %v2863_v19 }
 0x16c   : > { %8395 = vst [vmem:[#allocation9_spill] sm:$0xff] %v7145_v34  ;;  %v1821_v23 = vrot.slane %v1820_v46, 4  ;;  %v1835_v34 = vrot.slane %v1833_v39, 5  ;;  %v2267_v14 = vunpack.c.l.b16 %v2213_v9  ;;  %v2696_v13 = vor.u32 %v2695_v48, %v2692_v51  ;;  %v1515_v51 = vpop.f32.mrf.mxu2  ;;  %v2600_v9 = vld [vmem:[#allocation2 + $0x4c] sm:$0xf] }
 0x16d   : > { %v2216_v62 = vsel %vm6789_vm1, %v2214_v50, %v2215_v33  ;;  %v2706_v41 = vor.u32 %v2705_v8, %v2701_v54  ;;  %v1838_v31 = vshrl.u32 %v1744_v2, 16  ;;  %v1847_v19 = vshll.u32 %v7153_v40, 16 }
 0x16e   : > { %v2268_v59 = vunpack.c.l.b16 %v2216_v62  ;;  %v1826_v39 = vsel %vm6752_vm13, %v1821_v23, %v7142_v20  ;;  %v1836_v48 = vsel %vm6752_vm13, %v1831_v55, %v1835_v34  ;;  %v1276_v20 = vadd.f32 %v7073_v6, %v7092_v42  ;;  %v1748_v62 = vld [vmem:[#allocation2 + $0x40] sm:$0xf] }
 0x16f   : > { %v2707_v10 = vrot.slane %v2706_v41, 4  ;;  %v2012_v33 = vunpack.c.l.b16 %v1836_v48  ;;  %v1840_v34 = vrot.slane %v1838_v31, 4  ;;  %v2723_v42 = vshll.u32 %v2600_v9, 16 }
 0x170   : > { %v2284_v0 = vpack.c.b16 %v2268_v59, %v2267_v14  ;;  %v1539_v41 = vadd.f32 %v7042_v47, %v1276_v20  ;;  %v2219_v31 = vrot.slane %v1748_v62, 5  ;;  %v1857_v47 = vshll.u32 %v7159_v12, 16  ;;  %v7202_v20 = vld [vmem:[#allocation2 + $0x50] sm:$0x1] }
 0x171   : > { %v1141_v22 = vpop.f32.mrf.mxu0  ;;  %v1682_v36 = vpop.f32.mrf.mxu3 }
 0x172   : > { %v1284_v3 = vadd.f32 %v1283_v56, %v1141_v22  ;;  %v7165_v53 = vadd.f32 %v1682_v36, %v1537_v26  ;;  %v2709_v56 = vshll.u32 %v2598_v44, 16  ;;  %v1841_v26 = vshll.u32 %v1744_v2, 16  ;;  %v2599_v22 = vld [vmem:[#allocation2 + $0x48] sm:$0xf] }
 0x173   : > { %v2011_v44 = vunpack.c.l.b16 %v1826_v39  ;;  %v7186_v36 = vrot.slane %v1847_v19, 5  ;;  %v2714_v14 = vshrl.u32 %v2599_v22, 16  ;;  %v2153_v39 = vld [vmem:[#allocation2 + $0x3c] sm:$0xe] }
 0x174   : > { %v7170_v46 = vadd.f32 %v7122_v30, %v1284_v3  ;;  %5997 = vmatmul.msk.bf16.gmra.mxu0 %vm1067_vm10, %v2028_v58  ;;  %v2697_v30 = vrot.slane %v2696_v13, 4  ;;  %v1851_v58 = vshrl.u32 %v7153_v40, 16  ;;  %v2711_v8 = vrot.slane %v2709_v56, 5 }
 0x175   : > { %v1843_v3 = vrot.slane %v1841_v26, 5  ;;  %v2727_v13 = vshrl.u32 %v2600_v9, 16  ;;  %v2716_v26 = vrot.slane %v2714_v14, 4  ;;  %v7199_v9 = vpop.f32.mrf.mxu2  ;;  %v1747_v14 = vld [vmem:[#allocation2 + $0x3c] sm:$0xf] }
 0x176   : > { %6081 = vmatmul.msk.bf16.gmra.mxu3 %vm1067_vm10, %v2881_v27  ;;  %6020 = vmatmul.msk.bf16.gmra.mxu1 %vm1067_vm10, %v2284_v0  ;;  %v2702_v55 = vsel %vm6752_vm13, %v2697_v30, %v2701_v54  ;;  %v2717_v27 = vshll.u32 %v2599_v22, 16  ;;  %v1853_v2 = vrot.slane %v1851_v58, 4  ;;  %v2712_v6 = vsel %vm6752_vm13, %v2707_v10, %v2711_v8  ;;  %v6341_v30 = vld [vmem:[#allocation2 + $0x48] sm:$0xff]  ;;  %v7197_v58 = vld [vmem:[#allocation2 + $0x44] sm:$0x1] }
 0x177   : > { %v1844_v56 = vor.u32 %v1843_v3, %v1840_v34  ;;  %v2865_v59 = vunpack.c.l.b16 %v2702_v55  ;;  %v6010_v0 = vrot.slane %v2153_v39, 9  ;;  %v2029_v54 = vpack.c.b16 %v2012_v33, %v2011_v44 }
 0x178   : > { %v2719_v19 = vrot.slane %v2717_v27, 5  ;;  %v1854_v48 = vor.u32 %v1853_v2, %v7186_v36  ;;  %v2725_v10 = vrot.slane %v2723_v42, 5  ;;  %v2729_v8 = vrot.slane %v2727_v13, 4 }
 0x179   : > { %v7184_v23 = vpop.f32.mrf.mxu0  ;;  %v1685_v50 = vpop.f32.mrf.mxu3  ;;  %v2221_v34 = vrot.slane %v2219_v31, 4  ;;  %v2222_v44 = vrot.slane %v7197_v58, 5  ;;  %v1845_v55 = vrot.slane %v1844_v56, 4 }
 0x17a   : > { %v7189_v40 = vadd.f32 %v1685_v50, %v7087_v38  ;;  %v2866_v38 = vunpack.c.l.b16 %v2712_v6  ;;  %v2220_v50 = vsel %vm6789_vm1, %v6010_v0, %v2219_v31  ;;  %v2720_v12 = vor.u32 %v2719_v19, %v2716_v26  ;;  %v2602_v19 = vld [vmem:[#allocation2 + $0x54] sm:$0xf] }
 0x17b   : > { %6072 = vmatmul.msk.bf16.gmra.mxu2 %vm1067_vm10, %v6341_v30  ;;  %v2269_v27 = vunpack.c.l.b16 %v2220_v50  ;;  %v2223_v42 = vsel %vm6789_vm1, %v2221_v34, %v2222_v44  ;;  %v2730_v39 = vor.u32 %v2729_v8, %v2725_v10  ;;  %v1855_v56 = vrot.slane %v1854_v48, 4 }
 0x17c   : > { %v2882_v6 = vpack.c.b16 %v2866_v38, %v2865_v59  ;;  %v2270_v31 = vunpack.c.l.b16 %v2223_v42  ;;  %v1859_v0 = vrot.slane %v1857_v47, 5  ;;  %v1862_v30 = vshrl.u32 %v1747_v14, 16  ;;  %v7226_v47 = vld [vmem:[#allocation2 + $0x58] sm:$0xf] }
 0x17d   : > { %v1871_v50 = vshll.u32 %v1748_v62, 16  ;;  %v1850_v59 = vsel %vm6752_vm13, %v1845_v55, %v7186_v36  ;;  %v2731_v38 = vrot.slane %v2730_v39, 4  ;;  %8396 = vst [vmem:[#allocation10_spill] sm:$0xff] %v7226_v47 }
 0x17e   : > { %v1860_v48 = vsel %vm6752_vm13, %v1855_v56, %v1859_v0  ;;  %v1864_v8 = vrot.slane %v1862_v30, 4  ;;  %v2013_v44 = vunpack.c.l.b16 %v1850_v59  ;;  %v7239_v0 = vld [vmem:[#allocation2 + $0x4c] sm:$0xf]  ;;  %v1881_v30 = vshll.u32 %v7197_v58, 16 }
 0x17f   : > { %v7228_v36 = vrot.slane %v1871_v50, 5  ;;  %v2014_v42 = vunpack.c.l.b16 %v1860_v48  ;;  %v2154_v50 = vld [vmem:[#allocation2 + $0x48] sm:$0xe]  ;;  %v7246_v48 = vld [vmem:[#allocation2 + $0x50] sm:$0x1] }
 0x181   : > { %v1146_v22 = vpop.f32.mrf.mxu0  ;;  %v1687_v3 = vpop.f32.mrf.mxu3 }
 0x182   : > { %v1289_v33 = vadd.f32 %v6937_v15, %v1146_v22  ;;  %v7209_v2 = vadd.f32 %v1687_v3, %v1539_v41  ;;  %v2733_v15 = vshll.u32 %v7202_v20, 16  ;;  %v1865_v22 = vshll.u32 %v1747_v14, 16  ;;  %v1520_v14 = vpop.f32.mrf.mxu2 }
 0x183   : > { %v1875_v41 = vshrl.u32 %v1748_v62, 16  ;;  %v2285_v3 = vpack.c.b16 %v2270_v31, %v2269_v27  ;;  %v2751_v31 = vshrl.u32 %v7226_v47, 16 }
 0x184   : > { %v7213_v13 = vadd.f32 %v1515_v51, %v1289_v33  ;;  %5998 = vmatmul.msk.bf16.gmra.mxu0 %vm1067_vm10, %v2029_v54  ;;  %v2721_v51 = vrot.slane %v2720_v12, 4  ;;  %v2735_v26 = vrot.slane %v2733_v15, 5  ;;  %v1867_v62 = vrot.slane %v1865_v22, 5 }
 0x185   : > { %v1877_v33 = vrot.slane %v1875_v41, 4  ;;  %v2741_v12 = vshll.u32 %v2602_v19, 16  ;;  %v2747_v15 = vshll.u32 %v7226_v47, 16 }
 0x186   : > { %6082 = vmatmul.msk.bf16.gmra.mxu3 %vm1067_vm10, %v2882_v6  ;;  %6021 = vmatmul.msk.bf16.gmra.mxu1 %vm1067_vm10, %v2285_v3  ;;  %v2726_v27 = vsel %vm6752_vm13, %v2721_v51, %v2725_v10  ;;  %v2738_v6 = vshrl.u32 %v2602_v19, 16  ;;  %v2736_v39 = vsel %vm6752_vm13, %v2731_v38, %v2735_v26  ;;  %v1868_v56 = vor.u32 %v1867_v62, %v1864_v8  ;;  %v6342_v19 = vld [vmem:[#allocation2 + $0x54] sm:$0xff] }
 0x187   : > { %v2867_v22 = vunpack.c.l.b16 %v2726_v27  ;;  %v2226_v10 = vrot.slane %v7239_v0, 5  ;;  %v2868_v41 = vunpack.c.l.b16 %v2736_v39  ;;  %v2743_v59 = vrot.slane %v2741_v12, 5 }
 0x188   : > { %v2740_v3 = vrot.slane %v2738_v6, 4  ;;  %v6011_v51 = vrot.slane %v2154_v50, 9  ;;  %v1541_v38 = vadd.f32 %v7099_v63, %v7140_v57  ;;  %v2030_v26 = vpack.c.b16 %v2014_v42, %v2013_v44  ;;  %v1750_v42 = vld [vmem:[#allocation2 + $0x48] sm:$0xf] }
 0x189   : > { %v7222_v54 = vpop.f32.mrf.mxu0  ;;  %v1690_v34 = vpop.f32.mrf.mxu3  ;;  %v7248_v8 = vrot.slane %v2747_v15, 5  ;;  %v2753_v62 = vrot.slane %v2751_v31, 4  ;;  %v1869_v58 = vrot.slane %v1868_v56, 4  ;;  %v2228_v6 = vrot.slane %v2226_v10, 4 }
 0x18a   : > { %v7231_v55 = vadd.f32 %v1690_v34, %v7127_v4  ;;  %v1878_v4 = vor.u32 %v1877_v33, %v7228_v36  ;;  %v7250_v33 = vld [vmem:[#allocation2 + $0x5c] sm:$0x1]  ;;  %v2227_v27 = vsel %vm6789_vm1, %v6011_v51, %v2226_v10  ;;  %v2229_v12 = vrot.slane %v7246_v48, 5  ;;  %v1522_v10 = vpop.f32.mrf.mxu2 }
 0x18b   : > { %8397 = vst [vmem:[#allocation11_spill] sm:$0xff] %v7250_v33  ;;  %v1883_v44 = vrot.slane %v1881_v30, 5  ;;  %6073 = vmatmul.msk.bf16.gmra.mxu2 %vm1067_vm10, %v6342_v19  ;;  %v2271_v15 = vunpack.c.l.b16 %v2227_v27  ;;  %v2883_v56 = vpack.c.b16 %v2868_v41, %v2867_v22  ;;  %v2744_v50 = vor.u32 %v2743_v59, %v2740_v3  ;;  %v2605_v3 = vld [vmem:[#allocation2 + $0x60] sm:$0xf] }
 0x18c   : > { %v1879_v57 = vrot.slane %v1878_v4, 4  ;;  %v2230_v47 = vsel %vm6789_vm1, %v2228_v6, %v2229_v12  ;;  %v2757_v4 = vshll.u32 %v7250_v33, 16  ;;  %v1886_v19 = vshrl.u32 %v1750_v42, 16 }
 0x18d   : > { %v2272_v30 = vunpack.c.l.b16 %v2230_v47  ;;  %v1889_v27 = vshll.u32 %v1750_v42, 16  ;;  %v1899_v22 = vshrl.u32 %v7239_v0, 16  ;;  %v2745_v47 = vrot.slane %v2744_v50, 4 }
 0x18e   : > { %v1884_v59 = vsel %vm6752_vm13, %v1879_v57, %v1883_v44  ;;  %v2759_v6 = vrot.slane %v2757_v4, 5  ;;  %v2762_v12 = vshrl.u32 %v2605_v3, 16  ;;  %v1888_v42 = vrot.slane %v1886_v19, 4 }
 0x18f   : > { %v2286_v41 = vpack.c.b16 %v2272_v30, %v2271_v15  ;;  %v1891_v15 = vrot.slane %v1889_v27, 5  ;;  %v1901_v50 = vrot.slane %v1899_v22, 4  ;;  %v2016_v30 = vunpack.c.l.b16 %v1884_v59  ;;  %v7293_v27 = vld [vmem:[#allocation2 + $0x58] sm:$0xf]  ;;  %v2155_v59 = vld [vmem:[#allocation2 + $0x54] sm:$0xe] }
 0x191   : > { %v1151_v34 = vpop.f32.mrf.mxu0  ;;  %v1692_v63 = vpop.f32.mrf.mxu3 }
 0x192   : > { %v1294_v39 = vadd.f32 %v6957_v49, %v1151_v34  ;;  %v7257_v31 = vadd.f32 %v1692_v63, %v1541_v38  ;;  %v2754_v49 = vor.u32 %v2753_v62, %v7248_v8  ;;  %v1285_v34 = vpop.f32.mrf.mxu1  ;;  %v1895_v38 = vshll.u32 %v7239_v0, 16 }
 0x193   : > { %v2765_v0 = vshll.u32 %v2605_v3, 16  ;;  %v1892_v3 = vor.u32 %v1891_v15, %v1888_v42  ;;  %v1753_v15 = vld [vmem:[#allocation2 + $0x54] sm:$0xf] }
 0x194   : > { %v7261_v51 = vadd.f32 %v1520_v14, %v1294_v39  ;;  %5999 = vmatmul.msk.bf16.gmra.mxu0 %vm1067_vm10, %v2030_v26  ;;  %v1874_v14 = vsel %vm6752_vm13, %v1869_v58, %v7228_v36  ;;  %v7274_v26 = vld [vmem:[#allocation2 + $0x64] sm:$0xf]  ;;  %v2755_v62 = vrot.slane %v2754_v49, 4  ;;  %v1286_v39 = vadd.f32 %v1285_v34, %v7184_v23 }
 0x195   : > { %8398 = vst [vmem:[#allocation12_spill] sm:$0xff] %v7274_v26  ;;  %v2771_v36 = vshll.u32 %v7274_v26, 16  ;;  %v2775_v58 = vshrl.u32 %v7274_v26, 16  ;;  %v2015_v4 = vunpack.c.l.b16 %v1874_v14  ;;  %v2750_v23 = vsel %vm6752_vm13, %v2745_v47, %v7248_v8 }
 0x196   : > { %6083 = vmatmul.msk.bf16.gmra.mxu3 %vm1067_vm10, %v2883_v56  ;;  %6022 = vmatmul.msk.bf16.gmra.mxu1 %vm1067_vm10, %v2286_v41  ;;  %v7281_v56 = vrot.slane %v1895_v38, 5  ;;  %v2760_v34 = vsel %vm6752_vm13, %v2755_v62, %v2759_v6  ;;  %v2767_v41 = vrot.slane %v2765_v0, 5  ;;  %v7295_v38 = vld [vmem:[#allocation2 + $0x68] sm:$0x1]  ;;  %v2233_v8 = vrot.slane %v7293_v27, 5 }
 0x197   : > { %8399 = vst [vmem:[#allocation13_spill] sm:$0xff] %v7295_v38  ;;  %v7297_v22 = vrot.slane %v2771_v36, 5  ;;  %v1905_v47 = vshll.u32 %v7246_v48, 16  ;;  %v2870_v62 = vunpack.c.l.b16 %v2760_v34  ;;  %v6012_v6 = vrot.slane %v2155_v59, 9 }
 0x198   : > { %v1902_v14 = vor.u32 %v1901_v50, %v7281_v56  ;;  %v2031_v0 = vpack.c.b16 %v2016_v30, %v2015_v4  ;;  %v2781_v42 = vshll.u32 %v7295_v38, 16  ;;  %v2235_v48 = vrot.slane %v2233_v8, 4 }
 0x199   : > { %v1153_v63 = vpop.f32.mrf.mxu0  ;;  %v1695_v44 = vpop.f32.mrf.mxu3  ;;  %v2234_v26 = vsel %vm6789_vm1, %v6012_v6, %v2233_v8  ;;  %v1910_v8 = vshrl.u32 %v1753_v15, 16  ;;  %v1913_v6 = vshll.u32 %v1753_v15, 16 }
 0x19a   : > { %v1296_v57 = vadd.f32 %v6966_v61, %v1153_v63  ;;  %v7284_v49 = vadd.f32 %v1695_v44, %v7170_v46  ;;  %v2764_v61 = vrot.slane %v2762_v12, 4  ;;  %v2777_v46 = vrot.slane %v2775_v58, 4  ;;  %v7303_v44 = vld [vmem:[#allocation2 + $0x5c] sm:$0x1] }
 0x19b   : > { %v2869_v63 = vunpack.c.l.b16 %v2750_v23  ;;  %v1543_v12 = vadd.f32 %v7151_v29, %v1286_v39  ;;  %v2236_v23 = vrot.slane %v7303_v44, 5  ;;  %v1893_v39 = vrot.slane %v1892_v3, 4 }
 0x19c   : > { %v7289_v19 = vadd.f32 %v1522_v10, %v1296_v57  ;;  %v1525_v10 = vpop.f32.mrf.mxu2  ;;  %v6343_v57 = vld [vmem:[#allocation2 + $0x60] sm:$0xff]  ;;  %v2768_v36 = vor.u32 %v2767_v41, %v2764_v61  ;;  %v2778_v50 = vor.u32 %v2777_v46, %v7297_v22  ;;  %v1903_v4 = vrot.slane %v1902_v14, 4 }
 0x19d   : > { %6074 = vmatmul.msk.bf16.gmra.mxu2 %vm1067_vm10, %v6343_v57  ;;  %v2273_v30 = vunpack.c.l.b16 %v2234_v26  ;;  %v1907_v41 = vrot.slane %v1905_v47, 5  ;;  %v2884_v59 = vpack.c.b16 %v2870_v62, %v2869_v63  ;;  %v2237_v46 = vsel %vm6789_vm1, %v2235_v48, %v2236_v23  ;;  %v2608_v57 = vld [vmem:[#allocation2 + $0x6c] sm:$0xf]  ;;  %v7325_v63 = vld [vmem:[#allocation2 + $0x70] sm:$0xf] }
 0x19e   : > { %v2779_v3 = vrot.slane %v2778_v50, 4  ;;  %v2783_v14 = vrot.slane %v2781_v42, 5  ;;  %v1898_v26 = vsel %vm6752_vm13, %v1893_v39, %v7281_v56  ;;  %v1919_v47 = vshll.u32 %v7293_v27, 16 }
 0x19f   : > { %v1291_v62 = vadd.f32 %v6943_v18, %v7222_v54  ;;  %v2786_v50 = vshrl.u32 %v2608_v57, 16  ;;  %v2789_v48 = vshll.u32 %v2608_v57, 16  ;;  %v2017_v23 = vunpack.c.l.b16 %v1898_v26  ;;  %v7351_v26 = vld [vmem:[#allocation2 + $0x74] sm:$0x1] }
 0x1a0   : > { %v1929_v57 = vshll.u32 %v7303_v44, 16 }
 0x1a1   : > { %v1156_v58 = vpop.f32.mrf.mxu0  ;;  %v1697_v29 = vpop.f32.mrf.mxu3 }
 0x1a2   : > { %v1299_v34 = vadd.f32 %v6979_v7, %v1156_v58  ;;  %v7312_v61 = vadd.f32 %v1697_v29, %v1543_v12  ;;  %v2274_v7 = vunpack.c.l.b16 %v2237_v46  ;;  %v2769_v58 = vrot.slane %v2768_v36, 4 }
 0x1a3   : > { %v1908_v12 = vsel %vm6752_vm13, %v1903_v4, %v1907_v41  ;;  %v1915_v36 = vrot.slane %v1913_v6, 5  ;;  %v2799_v29 = vshrl.u32 %v7325_v63, 16  ;;  %v7343_v4 = vrot.slane %v1919_v47, 5 }
 0x1a4   : > { %v7316_v38 = vadd.f32 %v1525_v10, %v1299_v34  ;;  %6000 = vmatmul.msk.bf16.gmra.mxu0 %vm1067_vm10, %v2031_v0  ;;  %v2287_v33 = vpack.c.b16 %v2274_v7, %v2273_v30  ;;  %v1923_v10 = vshrl.u32 %v7293_v27, 16  ;;  %v1912_v0 = vrot.slane %v1910_v8, 4  ;;  %v1527_v56 = vpop.f32.mrf.mxu2  ;;  %v1757_v8 = vld [vmem:[#allocation2 + $0x64] sm:$0xf] }
 0x1a5   : > { %v2774_v15 = vsel %vm6752_vm13, %v2769_v58, %v7297_v22  ;;  %v2784_v27 = vsel %vm6752_vm13, %v2779_v3, %v2783_v14  ;;  %v2795_v34 = vshll.u32 %v7325_v63, 16  ;;  %v2018_v39 = vunpack.c.l.b16 %v1908_v12  ;;  %v2156_v3 = vld [vmem:[#allocation2 + $0x60] sm:$0xe] }
 0x1a6   : > { %6084 = vmatmul.msk.bf16.gmra.mxu3 %vm1067_vm10, %v2884_v59  ;;  %6023 = vmatmul.msk.bf16.gmra.mxu1 %vm1067_vm10, %v2287_v33  ;;  %v1925_v22 = vrot.slane %v1923_v10, 4  ;;  %v1916_v41 = vor.u32 %v1915_v36, %v1912_v0  ;;  %v2871_v59 = vunpack.c.l.b16 %v2774_v15  ;;  %v2872_v46 = vunpack.c.l.b16 %v2784_v27  ;;  %v7354_v15 = vld [vmem:[#allocation2 + $0x68] sm:$0x1] }
 0x1a7   : > { %v2791_v6 = vrot.slane %v2789_v48, 5  ;;  %v7347_v7 = vrot.slane %v2795_v34, 5  ;;  %v2801_v58 = vrot.slane %v2799_v29, 4  ;;  %v2240_v14 = vrot.slane %v1757_v8, 5 }
 0x1a8   : > { %v6013_v47 = vrot.slane %v2156_v3, 9  ;;  %v2032_v10 = vpack.c.b16 %v2018_v39, %v2017_v23  ;;  %v1917_v12 = vrot.slane %v1916_v41, 4  ;;  %v1926_v0 = vor.u32 %v1925_v22, %v7343_v4 }
 0x1a9   : > { %v1158_v42 = vpop.f32.mrf.mxu0  ;;  %v1700_v54 = vpop.f32.mrf.mxu3  ;;  %v2885_v36 = vpack.c.b16 %v2872_v46, %v2871_v59  ;;  %v2243_v44 = vrot.slane %v7354_v15, 5  ;;  %v2802_v23 = vor.u32 %v2801_v58, %v7347_v7  ;;  %v2805_v34 = vshll.u32 %v7351_v26, 16 }
 0x1aa   : > { %v1301_v18 = vadd.f32 %v6988_v17, %v1158_v42  ;;  %v7341_v33 = vadd.f32 %v1700_v54, %v7213_v13  ;;  %v2788_v17 = vrot.slane %v2786_v50, 4  ;;  %v1545_v13 = vadd.f32 %v7199_v9, %v1291_v62  ;;  %v6344_v42 = vld [vmem:[#allocation2 + $0x6c] sm:$0xff]  ;;  %v755_v62 = vld [vmem:[#allocation2 + $0x80] sm:$0x1] }
 0x1ab   : > { %v2241_v48 = vsel %vm6789_vm1, %v6013_v47, %v2240_v14  ;;  %v2242_v9 = vrot.slane %v2240_v14, 4  ;;  %v756_v59 = vsel %vm6710_vm9, 0, %v755_v62  ;;  %v1943_v46 = vshll.u32 %v1757_v8, 16 }
 0x1ac   : > { %v7345_v30 = vadd.f32 %v1527_v56, %v1301_v18  ;;  %v1756_v56 = vld [vmem:[#allocation2 + $0x60] sm:$0xf]  ;;  %v2792_v50 = vor.u32 %v2791_v6, %v2788_v17  ;;  %v2275_v29 = vunpack.c.l.b16 %v2241_v48  ;;  %v1947_v17 = vshrl.u32 %v1757_v8, 16  ;;  %757 = vst [vmem:[#allocation2 + $0x80] sm:$0x1] %v756_v59 }
 0x1ad   : > { %6075 = vmatmul.msk.bf16.gmra.mxu2 %vm1067_vm10, %v6344_v42  ;;  %v1934_v22 = vshrl.u32 %v1756_v56, 16  ;;  %v2244_v41 = vsel %vm6789_vm1, %v2242_v9, %v2243_v44  ;;  %v1927_v58 = vrot.slane %v1926_v0, 4  ;;  %v1931_v3 = vrot.slane %v1929_v57, 5  ;;  %v7381_v57 = vld [vmem:[#allocation2 + $0x7c] sm:$0xf] }
 0x1ae   : > { %v2276_v6 = vunpack.c.l.b16 %v2244_v41  ;;  %v2793_v14 = vrot.slane %v2792_v50, 4  ;;  %v2803_v47 = vrot.slane %v2802_v23, 4  ;;  %v1256_v48 = vadd.f32 %v6939_v21, %v6951_v45 }
 0x1af   : > { %v1922_v9 = vsel %vm6752_vm13, %v1917_v12, %v7343_v4  ;;  %v1949_v0 = vrot.slane %v1947_v17, 4  ;;  %v1932_v44 = vsel %vm6752_vm13, %v1927_v58, %v1931_v3 }
 0x1b0   : > { %v2288_v42 = vpack.c.b16 %v2276_v6, %v2275_v29  ;;  %v2798_v4 = vsel %vm6752_vm13, %v2793_v14, %v7347_v7  ;;  %v2019_v23 = vunpack.c.l.b16 %v1922_v9  ;;  %v2823_v29 = vshrl.u32 %v7381_v57, 16 }
 0x1b1   : > { %v1480_v27 = vpop.f32.mrf.mxu0  ;;  %v1702_v54 = vpop.f32.mrf.mxu3  ;;  %v2873_v7 = vunpack.c.l.b16 %v2798_v4 }
 0x1b2   : > { %v7360_v18 = vadd.f32 %v1480_v27, %v6941_v11  ;;  %v7365_v39 = vadd.f32 %v1702_v54, %v1545_v13  ;;  %v1937_v11 = vshll.u32 %v1756_v56, 16  ;;  %v2807_v13 = vrot.slane %v2805_v34, 5  ;;  %v2611_v27 = vld [vmem:[#allocation2 + $0x78] sm:$0xf] }
 0x1b3   : > { %v7378_v56 = vrot.slane %v1943_v46, 5  ;;  %v2810_v21 = vshrl.u32 %v2611_v27, 16  ;;  %v2819_v34 = vshll.u32 %v7381_v57, 16  ;;  %v7399_v46 = vld [vmem:[#allocation2 + $0x70] sm:$0xf] }
 0x1b4   : > { %6001 = vmatmul.msk.bf16.gmra.mxu0 %vm1067_vm10, %v2032_v10  ;;  %v1936_v10 = vrot.slane %v1934_v22, 4  ;;  %v1939_v8 = vrot.slane %v1937_v11, 5  ;;  %v2808_v12 = vsel %vm6752_vm13, %v2803_v47, %v2807_v13  ;;  %v2020_v22 = vunpack.c.l.b16 %v1932_v44  ;;  %v7402_v3 = vld [vmem:[#allocation2 + $0x80] sm:$0x1]  ;;  %v2157_v47 = vld [vmem:[#allocation2 + $0x6c] sm:$0xe] }
 0x1b5   : > { %v1950_v59 = vor.u32 %v1949_v0, %v7378_v56  ;;  %v1953_v11 = vshll.u32 %v7354_v15, 16  ;;  %v2874_v17 = vunpack.c.l.b16 %v2808_v12  ;;  %v2812_v6 = vrot.slane %v2810_v21, 4  ;;  %v6345_v0 = vld [vmem:[#allocation2 + $0x78] sm:$0xff]  ;;  %v758_v12 = vld [vmem:[#allocation2 + $0x8c] sm:$0x1] }
 0x1b6   : > { %6085 = vmatmul.msk.bf16.gmra.mxu3 %vm1067_vm10, %v2885_v36  ;;  %6024 = vmatmul.msk.bf16.gmra.mxu1 %vm1067_vm10, %v2288_v42  ;;  %v2813_v36 = vshll.u32 %v2611_v27, 16  ;;  %v1940_v41 = vor.u32 %v1939_v8, %v1936_v10  ;;  %v2247_v58 = vrot.slane %v7399_v46, 5  ;;  %v7406_v42 = vrot.slane %v2819_v34, 5 }
 0x1b7   : > { %v2825_v27 = vrot.slane %v2823_v29, 4  ;;  %v2033_v9 = vpack.c.b16 %v2020_v22, %v2019_v23  ;;  %v1951_v8 = vrot.slane %v1950_v59, 4  ;;  %v1955_v21 = vrot.slane %v1953_v11, 5  ;;  %v1759_v23 = vld [vmem:[#allocation2 + $0x6c] sm:$0xf] }
 0x1b8   : > { %v2815_v14 = vrot.slane %v2813_v36, 5  ;;  %v2249_v15 = vrot.slane %v2247_v58, 4  ;;  %v1941_v10 = vrot.slane %v1940_v41, 4  ;;  %v2829_v22 = vshll.u32 %v7402_v3, 16 }
 0x1b9   : > { %v1482_v50 = vpop.f32.mrf.mxu0  ;;  %v1705_v62 = vpop.f32.mrf.mxu3  ;;  %v2826_v11 = vor.u32 %v2825_v27, %v7406_v42 }
 0x1ba   : > { %v7385_v45 = vadd.f32 %v1482_v50, %v1256_v48  ;;  %v7393_v54 = vadd.f32 %v1705_v62, %v7261_v51  ;;  %v721_v51 = vld [vmem:[#allocation2 + $0x84] sm:$0x1]  ;;  %v6014_v48 = vrot.slane %v2157_v47, 9  ;;  %v7408_v50 = vld [vmem:[#allocation2 + $0x74] sm:$0x1]  ;;  %v2886_v62 = vpack.c.b16 %v2874_v17, %v2873_v7 }
 0x1bb   : > { %v722_v13 = vsel %vm6567_vm6, 0, %v721_v51  ;;  %v2250_v24 = vrot.slane %v7408_v50, 5  ;;  %v2816_v29 = vor.u32 %v2815_v14, %v2812_v6  ;;  %v1946_v6 = vsel %vm6752_vm13, %v1941_v10, %v7378_v56  ;;  %vm7672_vm6 = vmand %vm3526_vm5, %vm286_vm3 }
 0x1bc   : > { %723 = vst [vmem:[#allocation2 + $0x84] sm:$0x1] %v722_v13  ;;  %v2248_v4 = vsel %vm6789_vm1, %v6014_v48, %v2247_v58  ;;  %v1958_v58 = vshrl.u32 %v1759_v23, 16  ;;  %v1961_v51 = vshll.u32 %v1759_v23, 16  ;;  %v1967_v14 = vshll.u32 %v7399_v46, 16  ;;  %vm7699_vm3 = vmand %vm3526_vm5, %vm451_vm0 }
 0x1bd   : > { %6076 = vmatmul.msk.bf16.gmra.mxu2 %vm1067_vm10, %v6345_v0  ;;  %v2277_v41 = vunpack.c.l.b16 %v2248_v4  ;;  %v2251_v7 = vsel %vm6789_vm1, %v2249_v15, %v2250_v24  ;;  %v1971_v47 = vshrl.u32 %v7399_v46, 16  ;;  %v2817_v16 = vrot.slane %v2816_v29, 4 }
 0x1be   : > { %v2278_v17 = vunpack.c.l.b16 %v2251_v7  ;;  %v2827_v27 = vrot.slane %v2826_v11, 4  ;;  %v2831_v48 = vrot.slane %v2829_v22, 5  ;;  %v1261_v15 = vadd.f32 %v6959_v52, %v6973_v5 }
 0x1bf   : > { %v1963_v4 = vrot.slane %v1961_v51, 5  ;;  %v1973_v24 = vrot.slane %v1971_v47, 4  ;;  %v2822_v52 = vsel %vm6752_vm13, %v2817_v16, %v7406_v42 }
 0x1c0   : > { %v2289_v13 = vpack.c.b16 %v2278_v17, %v2277_v41  ;;  %v2832_v5 = vsel %vm6752_vm13, %v2827_v27, %v2831_v48  ;;  %v1977_v17 = vshll.u32 %v7408_v50, 16  ;;  %v2875_v42 = vunpack.c.l.b16 %v2822_v52 }
 0x1c1   : > { %v1485_v44 = vpop.f32.mrf.mxu0  ;;  %v1707_v34 = vpop.f32.mrf.mxu3 }
 0x1c2   : > { %v7414_v36 = vadd.f32 %v1485_v44, %v6964_v60  ;;  %v7419_v59 = vadd.f32 %v1707_v34, %v7289_v19  ;;  %v759_v60 = vsel %vm6710_vm9, 0, %v758_v12  ;;  %v1956_v19 = vsel %vm6752_vm13, %v1951_v8, %v1955_v21  ;;  %v7438_v44 = vld [vmem:[#allocation2 + $0x88] sm:$0xf]  ;;  %v7450_v34 = vld [vmem:[#allocation2 + $0x7c] sm:$0xf] }
 0x1c3   : > { %760 = vst [vmem:[#allocation2 + $0x8c] sm:$0x1] %v759_v60  ;;  %v2022_v10 = vunpack.c.l.b16 %v1956_v19  ;;  %v1960_v8 = vrot.slane %v1958_v58, 4  ;;  %v2614_v0 = vld [vmem:[#allocation2 + $0x84] sm:$0xf]  ;;  %v2843_v22 = vshll.u32 %v7438_v44, 16  ;;  %v2876_v19 = vunpack.c.l.b16 %v2832_v5 }
 0x1c4   : > { %6002 = vmatmul.msk.bf16.gmra.mxu0 %vm1067_vm10, %v2033_v9  ;;  %v2021_v9 = vunpack.c.l.b16 %v1946_v6  ;;  %v2834_v23 = vshrl.u32 %v2614_v0, 16  ;;  %v2837_v29 = vshll.u32 %v2614_v0, 16  ;;  %v2847_v41 = vshrl.u32 %v7438_v44, 16  ;;  %v2158_v6 = vld [vmem:[#allocation2 + $0x78] sm:$0xe]  ;;  %v6346_v47 = vld [vmem:[#allocation2 + $0x84] sm:$0xff] }
 0x1c5   : > { %v2254_v11 = vrot.slane %v7450_v34, 5  ;;  %v7456_v58 = vld [vmem:[#allocation2 + $0x80] sm:$0x1]  ;;  %v6015_v51 = vrot.slane %v2158_v6, 9  ;;  %v2845_v27 = vrot.slane %v2843_v22, 5  ;;  %v1979_v52 = vrot.slane %v1977_v17, 5 }
 0x1c6   : > { %6086 = vmatmul.msk.bf16.gmra.mxu3 %vm1067_vm10, %v2886_v62  ;;  %6025 = vmatmul.msk.bf16.gmra.mxu1 %vm1067_vm10, %v2289_v13  ;;  %v1969_v62 = vrot.slane %v1967_v14, 5  ;;  %v2034_v7 = vpack.c.b16 %v2022_v10, %v2021_v9  ;;  %v2836_v13 = vrot.slane %v2834_v23, 4  ;;  %v2839_v16 = vrot.slane %v2837_v29, 5 }
 0x1c7   : > { %v2256_v14 = vrot.slane %v2254_v11, 4  ;;  %v2849_v48 = vrot.slane %v2847_v41, 4  ;;  %v2255_v9 = vsel %vm6789_vm1, %v6015_v51, %v2254_v11  ;;  %v2257_v50 = vrot.slane %v7456_v58, 5  ;;  %v1762_v11 = vld [vmem:[#allocation2 + $0x78] sm:$0xf] }
 0x1c8   : > { %v1974_v60 = vor.u32 %v1973_v24, %v1969_v62  ;;  %v2887_v5 = vpack.c.b16 %v2876_v19, %v2875_v42  ;;  %v2840_v29 = vor.u32 %v2839_v16, %v2836_v13  ;;  %v1982_v51 = vshrl.u32 %v1762_v11, 16 }
 0x1c9   : > { %v1487_v56 = vpop.f32.mrf.mxu0  ;;  %v1710_v46 = vpop.f32.mrf.mxu3  ;;  %v2258_v23 = vsel %vm6789_vm1, %v2256_v14, %v2257_v50  ;;  %v2850_v22 = vor.u32 %v2849_v48, %v2845_v27  ;;  %v1985_v14 = vshll.u32 %v1762_v11, 16 }
 0x1ca   : > { %v7440_v21 = vadd.f32 %v1487_v56, %v1261_v15  ;;  %v7443_v12 = vadd.f32 %v1710_v46, %v7316_v38  ;;  %v1964_v38 = vor.u32 %v1963_v4, %v1960_v8  ;;  %v7458_v56 = vld [vmem:[#allocation2 + $0x8c] sm:$0x1]  ;;  %v1975_v46 = vrot.slane %v1974_v60, 4 }
 0x1cb   : > { %v2279_v4 = vunpack.c.l.b16 %v2255_v9  ;;  %v2280_v41 = vunpack.c.l.b16 %v2258_v23  ;;  %v1266_v60 = vadd.f32 %v6981_v35, %v6993_v28  ;;  %v2841_v6 = vrot.slane %v2840_v29, 4 }
 0x1cc   : > { %v1965_v0 = vrot.slane %v1964_v38, 4  ;;  %v1980_v17 = vsel %vm6752_vm13, %v1975_v46, %v1979_v52  ;;  %v1995_v35 = vshrl.u32 %v7450_v34, 16  ;;  %v1987_v9 = vrot.slane %v1985_v14, 5 }
 0x1cd   : > { %6077 = vmatmul.msk.bf16.gmra.mxu2 %vm1067_vm10, %v6346_v47  ;;  %v2290_v38 = vpack.c.b16 %v2280_v41, %v2279_v4  ;;  %v1991_v47 = vshll.u32 %v7450_v34, 16  ;;  %v2846_v16 = vsel %vm6752_vm13, %v2841_v6, %v2845_v27  ;;  %v1715_v4 = vadd.f32 %v6999_v37, %v7360_v18  ;;  %v8400_v6 = vld [vmem:[#allocation5_spill] sm:$0xff] }
 0x1ce   : > { %v2001_v29 = vshll.u32 %v7456_v58, 16 }
 0x1cf   : > { %v1993_v50 = vrot.slane %v1991_v47, 5 }
 0x1d0   : > { %v2003_v11 = vrot.slane %v2001_v29, 5 }
 0x1d1   : > { %v1490_v15 = vpop.f32.mrf.mxu0  ;;  %v1712_v8 = vpop.f32.mrf.mxu3 }
 0x1d2   : > { %v7464_v10 = vadd.f32 %v1490_v15, %v6986_v1  ;;  %v7468_v24 = vadd.f32 %v1712_v8, %v7345_v30  ;;  %v2853_v1 = vshll.u32 %v7458_v56, 16  ;;  %v1970_v30 = vsel %vm6752_vm13, %v1965_v0, %v1969_v62 }
 0x1d3   : > { %v2023_v13 = vunpack.c.l.b16 %v1970_v30  ;;  %v2024_v62 = vunpack.c.l.b16 %v1980_v17  ;;  %v1984_v15 = vrot.slane %v1982_v51, 4  ;;  %v1997_v8 = vrot.slane %v1995_v35, 4  ;;  %v6418_v51 = vld [vmem:[#allocation2 + $0x1c] sm:$0xf] }
 0x1d4   : > { %6003 = vmatmul.msk.bf16.gmra.mxu0 %vm1067_vm10, %v2034_v7  ;;  %v2851_v7 = vrot.slane %v2850_v22, 4  ;;  %v2855_v42 = vrot.slane %v2853_v1, 5  ;;  %v2877_v0 = vunpack.c.l.b16 %v2846_v16  ;;  %v3043_v14 = vrot.slane %v6418_v51, 5  ;;  %v8401_v16 = vld [vmem:[#allocation6_spill] sm:$0xff] }
 0x1d5   : > { %v2035_v52 = vpack.c.b16 %v2024_v62, %v2023_v13  ;;  %v1998_v23 = vor.u32 %v1997_v8, %v1993_v50  ;;  %v6419_v13 = vld [vmem:[#allocation2 + $0x20] sm:$0x1] }
 0x1d6   : > { %6087 = vmatmul.msk.bf16.gmra.mxu3 %vm1067_vm10, %v2887_v5  ;;  %6026 = vmatmul.msk.bf16.gmra.mxu1 %vm1067_vm10, %v2290_v38  ;;  %v2856_v48 = vsel %vm6752_vm13, %v2851_v7, %v2855_v42  ;;  %v1988_v5 = vor.u32 %v1987_v9, %v1984_v15  ;;  %v1716_v38 = vadd.f32 %v7027_v25, %v7385_v45  ;;  %v3001_v25 = vld [vmem:[#allocation2 + $0x18] sm:$0xe]  ;;  %v3045_v35 = vrot.slane %v3043_v14, 4 }
 0x1d7   : > { %v2878_v46 = vunpack.c.l.b16 %v2856_v48  ;;  %v1999_v41 = vrot.slane %v1998_v23, 4  ;;  %v1717_v7 = vadd.f32 %v8400_v6, %v7414_v36  ;;  %v6089_v45 = vrot.slane %v3001_v25, 9 }
 0x1d8   : > { %v1989_v1 = vrot.slane %v1988_v5, 4  ;;  %v3046_v62 = vrot.slane %v6419_v13, 5  ;;  %v1718_v48 = vadd.f32 %v8401_v16, %v7440_v21  ;;  %v6420_v5 = vld [vmem:[#allocation2 + $0x28] sm:$0xf]  ;;  %v3002_v21 = vld [vmem:[#allocation2 + $0x24] sm:$0xe] }
 0x1d9   : > { %v1492_v19 = vpop.f32.mrf.mxu0  ;;  %v2888_v27 = vpack.c.b16 %v2878_v46, %v2877_v0  ;;  %v2004_v58 = vsel %vm6752_vm13, %v1999_v41, %v2003_v11  ;;  %v3044_v36 = vsel %vm6789_vm1, %v6089_v45, %v3043_v14  ;;  %v8402_v46 = vld [vmem:[#allocation7_spill] sm:$0xff]  ;;  %v3050_v23 = vrot.slane %v6420_v5, 5  ;;  %v6421_v41 = vld [vmem:[#allocation2 + $0x2c] sm:$0x1]  ;;  %v8404_v14 = vld [vmem:[#allocation9_spill] sm:$0xff] }
 0x1da   : > { %v1535_v28 = vadd.f32 %v1492_v19, %v1266_v60  ;;  %v1994_v18 = vsel %vm6752_vm13, %v1989_v1, %v1993_v50  ;;  %v2026_v17 = vunpack.c.l.b16 %v2004_v58  ;;  %v3047_v9 = vsel %vm6789_vm1, %v3045_v35, %v3046_v62  ;;  %v3003_v45 = vld [vmem:[#allocation2 + $0x30] sm:$0xe]  ;;  %v6423_v13 = vld [vmem:[#allocation2 + $0x38] sm:$0x1]  ;;  %v3004_v5 = vld [vmem:[#allocation2 + $0x3c] sm:$0xe] }
 0x1db   : > { %v2025_v30 = vunpack.c.l.b16 %v1994_v18  ;;  %v3113_v8 = vunpack.c.l.b16 %v3044_v36  ;;  %v3114_v0 = vunpack.c.l.b16 %v3047_v9  ;;  %v3052_v1 = vrot.slane %v3050_v23, 4 }
 0x1dc   : > { %v3053_v11 = vrot.slane %v6421_v41, 5  ;;  %v3060_v62 = vrot.slane %v6423_v13, 5 }
 0x1dd   : > { %v2036_v42 = vpack.c.b16 %v2026_v17, %v2025_v30 }
 0x1e1   : > { %v2079_v34 = vpop.f32.mrf.mxu0 }
 0x1e2   : > { %v7491_v22 = vadd.f32 %v2079_v34, %v1715_v4  ;;  %v1719_v4 = vadd.f32 %v8402_v46, %v7464_v10  ;;  %v3054_v10 = vsel %vm6789_vm1, %v3052_v1, %v3053_v11 }
 0x1e3   : > { %v3116_v6 = vunpack.c.l.b16 %v3054_v10  ;;  %v6426_v10 = vld [vmem:[#allocation2 + $0x4c] sm:$0xf] }
 0x1e4   : > { %6004 = vmatmul.msk.bf16.gmra.mxu0 %vm1067_vm10, %v2035_v52  ;;  %v3133_v52 = vpack.c.b16 %v3114_v0, %v3113_v8 }
 0x1e6   : > { %6088 = vmatmul.msk.bf16.gmra.mxu3 %vm1067_vm10, %v2888_v27  ;;  %v6090_v27 = vrot.slane %v3002_v21, 9 }
 0x1e8   : > { %v3051_v58 = vsel %vm6789_vm1, %v6090_v27, %v3050_v23  ;;  %v6092_v23 = vrot.slane %v3004_v5, 9  ;;  %v6425_v27 = vld [vmem:[#allocation2 + $0x44] sm:$0x1] }
 0x1e9   : > { %v2081_v37 = vpop.f32.mrf.mxu0  ;;  %v3115_v17 = vunpack.c.l.b16 %v3051_v58  ;;  %v3067_v1 = vrot.slane %v6425_v27, 5 }
 0x1ea   : > { %v7501_v60 = vadd.f32 %v2081_v37, %v1716_v38  ;;  %v8403_v38 = vld [vmem:[#allocation8_spill] sm:$0xff] }
 0x1eb   : > { %v1720_v37 = vadd.f32 %v8403_v38, %v1535_v28  ;;  %v6091_v28 = vrot.slane %v3003_v45, 9 }
 0x1f1   : > { %v2084_v19 = vpop.f32.mrf.mxu0 }
 0x1f2   : > { %v7505_v47 = vadd.f32 %v2084_v19, %v1717_v7  ;;  %v3134_v7 = vpack.c.b16 %v3116_v6, %v3115_v17  ;;  %v6422_v19 = vld [vmem:[#allocation2 + $0x34] sm:$0xf]  ;;  %v3071_v17 = vrot.slane %v6426_v10, 5 }
 0x1f3   : > { %v3057_v51 = vrot.slane %v6422_v19, 5  ;;  %v8408_v10 = vld [vmem:[#allocation13_spill] sm:$0xff] }
 0x1f4   : > { %6005 = vmatmul.msk.bf16.gmra.mxu0 %vm1067_vm10, %v2036_v42  ;;  %v3073_v19 = vrot.slane %v3071_v17, 4 }
 0x1f5   : > { %v3059_v35 = vrot.slane %v3057_v51, 4 }
 0x1f9   : > { %v2086_v15 = vpop.f32.mrf.mxu0 }
 0x1fa   : > { %v7514_v50 = vadd.f32 %v2086_v15, %v1718_v48  ;;  %v3058_v48 = vsel %vm6789_vm1, %v6091_v28, %v3057_v51  ;;  %v3061_v15 = vsel %vm6789_vm1, %v3059_v35, %v3060_v62  ;;  %v3074_v51 = vrot.slane %v7202_v20, 5  ;;  %v3006_v20 = vld [vmem:[#allocation2 + $0x54] sm:$0xe] }
 0x1fb   : > { %v3117_v9 = vunpack.c.l.b16 %v3058_v48  ;;  %v3118_v8 = vunpack.c.l.b16 %v3061_v15 }
 0x1fc   : > { %v3075_v45 = vsel %vm6789_vm1, %v3073_v19, %v3074_v51 }
 0x1fd   : > { %v3135_v0 = vpack.c.b16 %v3118_v8, %v3117_v9  ;;  %v6094_v9 = vrot.slane %v3006_v20, 9 }
 0x201   : > { %v2089_v34 = vpop.f32.mrf.mxu0 }
 0x202   : > { %v7518_v29 = vadd.f32 %v2089_v34, %v1719_v4  ;;  %v6424_v4 = vld [vmem:[#allocation2 + $0x40] sm:$0xf] }
 0x204   : > { %6100 = vmatmul.msk.bf16.vlgmr.msrb.gmra.mxu0 %vm1067_vm10, %v3133_v52  ;;  %v3064_v52 = vrot.slane %v6424_v4, 5 }
 0x206   : > { %v3066_v21 = vrot.slane %v3064_v52, 4 }
 0x208   : > { %v3068_v11 = vsel %vm6789_vm1, %v3066_v21, %v3067_v1  ;;  %v2333_v21 = vpop.f32.mrf.mxu1 }
 0x209   : > { %v2091_v18 = vpop.f32.mrf.mxu0 }
 0x20a   : > { %v7526_v30 = vadd.f32 %v2091_v18, %v1720_v37 }
 0x211   : > { %v2094_v42 = vpop.f32.mrf.mxu0 }
 0x212   : > { %v7529_v25 = vadd.f32 %v2094_v42, %v8404_v14 }
 0x214   : > { %6101 = vmatmul.msk.bf16.gmra.mxu0 %vm1067_vm10, %v3134_v7  ;;  %v3005_v7 = vld [vmem:[#allocation2 + $0x48] sm:$0xe] }
 0x215   : > { %v6093_v42 = vrot.slane %v3005_v7, 9  ;;  %v2335_v7 = vpop.f32.mrf.mxu1 }
 0x219   : > { %v2096_v16 = vpop.f32.mrf.mxu0 }
 0x21a   : > { %v7537_v36 = vadd.f32 %v2096_v16, %v7165_v53  ;;  %v3065_v53 = vsel %vm6789_vm1, %v6092_v23, %v3064_v52  ;;  %v8405_v16 = vld [vmem:[#allocation10_spill] sm:$0xff] }
 0x21b   : > { %v3119_v37 = vunpack.c.l.b16 %v3065_v53  ;;  %v3078_v48 = vrot.slane %v8405_v16, 5 }
 0x21d   : > { %v3080_v8 = vrot.slane %v3078_v48, 4  ;;  %v2338_v20 = vpop.f32.mrf.mxu1 }
 0x221   : > { %v2099_v46 = vpop.f32.mrf.mxu0 }
 0x222   : > { %v7540_v34 = vadd.f32 %v2099_v46, %v7189_v40  ;;  %v3120_v40 = vunpack.c.l.b16 %v3068_v11 }
 0x224   : > { %6102 = vmatmul.msk.bf16.gmra.mxu0 %vm1067_vm10, %v3135_v0  ;;  %v3136_v18 = vpack.c.b16 %v3120_v40, %v3119_v37  ;;  %v8406_v0 = vld [vmem:[#allocation11_spill] sm:$0xff]  ;;  %v2517_v40 = vpop.f32.mrf.mxu2 }
 0x225   : > { %v3081_v46 = vrot.slane %v8406_v0, 5  ;;  %v3007_v37 = vld [vmem:[#allocation2 + $0x60] sm:$0xe] }
 0x227   : > { %v3082_v52 = vsel %vm6789_vm1, %v3080_v8, %v3081_v46 }
 0x229   : > { %v2101_v41 = vpop.f32.mrf.mxu0 }
 0x22a   : > { %v7548_v38 = vadd.f32 %v2101_v41, %v7209_v2  ;;  %v3072_v2 = vsel %vm6789_vm1, %v6093_v42, %v3071_v17  ;;  %v8407_v41 = vld [vmem:[#allocation12_spill] sm:$0xff]  ;;  %v3088_v17 = vrot.slane %v8408_v10, 5  ;;  %v3102_v10 = vrot.slane %v7402_v3, 5 }
 0x22b   : > { %v3121_v35 = vunpack.c.l.b16 %v3072_v2  ;;  %v3085_v53 = vrot.slane %v8407_v41, 5  ;;  %v3099_v41 = vrot.slane %v7381_v57, 5 }
 0x231   : > { %v2104_v58 = vpop.f32.mrf.mxu0 }
 0x232   : > { %v7551_v6 = vadd.f32 %v2104_v58, %v7231_v55  ;;  %v3122_v55 = vunpack.c.l.b16 %v3075_v45  ;;  %v3087_v58 = vrot.slane %v3085_v53, 4  ;;  %v2519_v45 = vpop.f32.mrf.mxu2 }
 0x234   : > { %6103 = vmatmul.msk.bf16.gmra.mxu0 %vm1067_vm10, %v3136_v18  ;;  %v3137_v13 = vpack.c.b16 %v3122_v55, %v3121_v35  ;;  %v6095_v18 = vrot.slane %v3007_v37, 9  ;;  %v3089_v51 = vsel %vm6789_vm1, %v3087_v58, %v3088_v17  ;;  %v3009_v37 = vld [vmem:[#allocation2 + $0x78] sm:$0xe]  ;;  %v3101_v58 = vrot.slane %v3099_v41, 4 }
 0x235   : > { %v3126_v2 = vunpack.c.l.b16 %v3089_v51 }
 0x236   : > { %v3086_v19 = vsel %vm6789_vm1, %v6095_v18, %v3085_v53 }
 0x239   : > { %v2106_v14 = vpop.f32.mrf.mxu0 }
 0x23a   : > { %v7560_v28 = vadd.f32 %v2106_v14, %v7257_v31  ;;  %v3079_v31 = vsel %vm6789_vm1, %v6094_v9, %v3078_v48  ;;  %v3125_v14 = vunpack.c.l.b16 %v3086_v19  ;;  %v3008_v48 = vld [vmem:[#allocation2 + $0x6c] sm:$0xe]  ;;  %v2522_v0 = vpop.f32.mrf.mxu2 }
 0x23b   : > { %v3123_v23 = vunpack.c.l.b16 %v3079_v31  ;;  %v6096_v9 = vrot.slane %v3008_v48, 9 }
 0x23c   : > { %v3139_v35 = vpack.c.b16 %v3126_v2, %v3125_v14 }
 0x241   : > { %v2109_v62 = vpop.f32.mrf.mxu0 }
 0x242   : > { %v7564_v15 = vadd.f32 %v2109_v62, %v7284_v49  ;;  %v3124_v49 = vunpack.c.l.b16 %v3082_v52  ;;  %v3092_v62 = vrot.slane %v7325_v63, 5 }
 0x244   : > { %6104 = vmatmul.msk.bf16.gmra.mxu0 %vm1067_vm10, %v3137_v13  ;;  %v3138_v27 = vpack.c.b16 %v3124_v49, %v3123_v23  ;;  %v3094_v8 = vrot.slane %v3092_v62, 4  ;;  %v2340_v49 = vpop.f32.mrf.mxu1 }
 0x249   : > { %v2111_v4 = vpop.f32.mrf.mxu0 }
 0x24a   : > { %v7573_v5 = vadd.f32 %v2111_v4, %v7312_v61  ;;  %v2931_v61 = vpop.f32.mrf.mxu3  ;;  %v3093_v4 = vsel %vm6789_vm1, %v6096_v9, %v3092_v62 }
 0x24b   : > { %v3127_v52 = vunpack.c.l.b16 %v3093_v4 }
 0x24c   : > { %v7613_v17 = vpop.f32.mrf.mxu1 }
 0x251   : > { %v2114_v1 = vpop.f32.mrf.mxu0 }
 0x252   : > { %v7577_v11 = vadd.f32 %v2114_v1, %v7341_v33  ;;  %v2933_v55 = vpop.f32.mrf.mxu3  ;;  %v7603_v1 = vpop.f32.mrf.mxu2 }
 0x254   : > { %6105 = vmatmul.msk.bf16.gmra.mxu0 %vm1067_vm10, %v3138_v27  ;;  %v7633_v9 = vpop.f32.mrf.mxu1 }
 0x259   : > { %v2116_v42 = vpop.f32.mrf.mxu0 }
 0x25a   : > { %v7586_v33 = vadd.f32 %v2116_v42, %v7365_v39  ;;  %v3095_v39 = vrot.slane %v7351_v26, 5  ;;  %v2383_v42 = vadd.f32 %v2333_v21, %v7491_v22  ;;  %v7623_v14 = vpop.f32.mrf.mxu2  ;;  %v2384_v22 = vadd.f32 %v2335_v7, %v7501_v60  ;;  %v7631_v21 = vld [vmem:[%s8368_s2] ss:$0 sm:$0xff] }
 0x25c   : > { %v3096_v31 = vsel %vm6789_vm1, %v3094_v8, %v3095_v39  ;;  %v2567_v2 = vadd.f32 %v2517_v40, %v2383_v42  ;;  %v3010_v8 = vld [vmem:[#allocation2 + $0x84] sm:$0xe]  ;;  %v3106_v39 = vrot.slane %v7438_v44, 5  ;;  %v7648_v42 = vpop.f32.mrf.mxu1 }
 0x25d   : > { %v3128_v23 = vunpack.c.l.b16 %v3096_v31  ;;  %v3109_v31 = vrot.slane %v7458_v56, 5 }
 0x25e   : > { %v2981_v62 = vadd.f32 %v2931_v61, %v2567_v2  ;;  %v6098_v61 = vrot.slane %v3010_v8, 9  ;;  %v3108_v7 = vrot.slane %v3106_v39, 4 }
 0x25f   : > { %v3140_v27 = vpack.c.b16 %v3128_v23, %v3127_v52  ;;  %v2385_v23 = vadd.f32 %v2338_v20, %v7505_v47 }
 0x260   : > { %v3107_v44 = vsel %vm6789_vm1, %v6098_v61, %v3106_v39 }
 0x261   : > { %v2119_v13 = vpop.f32.mrf.mxu0  ;;  %v3131_v56 = vunpack.c.l.b16 %v3107_v44  ;;  %v2387_v44 = vadd.f32 %v7613_v17, %v7518_v29 }
 0x262   : > { %v7590_v16 = vadd.f32 %v2119_v13, %v7393_v54  ;;  %v7601_v54 = vpop.f32.mrf.mxu3  ;;  %v7638_v60 = vpop.f32.mrf.mxu2 }
 0x263   : > { %v2571_v29 = vadd.f32 %v7623_v14, %v2387_v44 }
 0x264   : > { %6106 = vmatmul.msk.bf16.gmra.mxu0 %vm1067_vm10, %v3139_v35 }
 0x269   : > { %v2121_v46 = vpop.f32.mrf.mxu0 }
 0x26a   : > { %v7599_v63 = vadd.f32 %v2121_v46, %v7419_v59  ;;  %v7610_v18 = vpop.f32.mrf.mxu3  ;;  %v6097_v59 = vrot.slane %v3009_v37, 9  ;;  %v2568_v46 = vadd.f32 %v2519_v45, %v2384_v22  ;;  %v3110_v37 = vsel %vm6789_vm1, %v3108_v7, %v3109_v31  ;;  %v3528_v31 = vld [vmem:[#allocation3 + $0x8] sm:$0x1] }
 0x26b   : > { %v3132_v20 = vunpack.c.l.b16 %v3110_v37 }
 0x26c   : > { %v3100_v57 = vsel %vm6789_vm1, %v6097_v59, %v3099_v41 }
 0x26d   : > { %v3129_v35 = vunpack.c.l.b16 %v3100_v57 }
 0x271   : > { %v2124_v26 = vpop.f32.mrf.mxu0 }
 0x272   : > { %v7607_v53 = vadd.f32 %v2124_v26, %v7443_v12  ;;  %v3103_v12 = vsel %vm6789_vm1, %v3101_v58, %v3102_v10  ;;  %v7625_v3 = vpop.f32.mrf.mxu3  ;;  %v2569_v10 = vadd.f32 %v2522_v0, %v2385_v23  ;;  %v7658_v0 = vpop.f32.mrf.mxu2 }
 0x273   : > { %v3130_v13 = vunpack.c.l.b16 %v3103_v12  ;;  %v3521_v12 = vld [vmem:[#allocation3] sm:$0xf] }
 0x274   : > { %6107 = vmatmul.msk.bf16.gmra.mxu0 %vm1067_vm10, %v3140_v27  ;;  %v2982_v27 = vadd.f32 %v2933_v55, %v2568_v46 }
 0x275   : > { %v3141_v48 = vpack.c.b16 %v3130_v13, %v3129_v35  ;;  %v2386_v13 = vadd.f32 %v2340_v49, %v7514_v50 }
 0x277   : > { %v2570_v46 = vadd.f32 %v7603_v1, %v2386_v13 }
 0x279   : > { %v2126_v19 = vpop.f32.mrf.mxu0 }
 0x27a   : > { %v7621_v51 = vadd.f32 %v2126_v19, %v7468_v24  ;;  %v7644_v41 = vpop.f32.mrf.mxu3 }
 0x281   : > { %v3185_v24 = vpop.f32.mrf.mxu0 }
 0x282   : > { %v3235_v40 = vadd.f32 %v3185_v24, %v2981_v62  ;;  %v2983_v62 = vadd.f32 %v7601_v54, %v2569_v10  ;;  %v3142_v24 = vpack.c.b16 %v3132_v20, %v3131_v56  ;;  %v7668_v54 = vpop.f32.mrf.mxu1  ;;  %v7683_v56 = vpop.f32.mrf.mxu2 }
 0x284   : > { %v3259_v4 = vadd.f32 %v7631_v21, %v3235_v40  ;;  %6108 = vmatmul.msk.bf16.gmra.mxu0 %vm1067_vm10, %v3141_v48 }
 0x286   : > { %v3279_v52 = vmax.f32 %v3259_v4, 0.0  ;;  %v7664_v4 = vpop.f32.mrf.mxu3 }
 0x288   : > { %v3299_v26 = vpack.c.bf16 %v3279_v52, %v3279_v52 }
 0x289   : > { %v3187_v45 = vpop.f32.mrf.mxu0 }
 0x28a   : > { %v3320_v59 = vshrl.u32 %v3299_v26, 16  ;;  %v3236_v58 = vadd.f32 %v3187_v45, %v2982_v27  ;;  %v3323_v47 = vshll.u32 %v3299_v26, 16  ;;  %v2984_v26 = vadd.f32 %v7610_v18, %v2570_v46 }
 0x28c   : > { %v3322_v19 = vrot.slane %v3320_v59, 7  ;;  %v3260_v55 = vadd.f32 %v7631_v21, %v3236_v58 }
 0x28e   : > { %v3325_v2 = vor.u32 %v3323_v47, %v3322_v19  ;;  %v3280_v35 = vmax.f32 %v3260_v55, 0.0  ;;  %v3326_v52 = vrot.slane %v3322_v19, 4 }
 0x290   : > { %v3522_v22 = vsel %vm7653_vm4, %v3325_v2, %v3521_v12  ;;  %v3300_v48 = vpack.c.bf16 %v3280_v35, %v3280_v35  ;;  %v7690_v2 = vpop.f32.mrf.mxu3  ;;  %v3531_v35 = vld [vmem:[#allocation3 + $0xc] sm:$0xf] }
 0x291   : > { %3523 = vst [vmem:[#allocation3] sm:$0xf] %v3522_v22  ;;  %v3190_v8 = vpop.f32.mrf.mxu0  ;;  %v2388_v22 = vadd.f32 %v7633_v9, %v7526_v30  ;;  %v7706_v9 = vpop.f32.mrf.mxu2 }
 0x292   : > { %v3328_v39 = vshrl.u32 %v3300_v48, 16  ;;  %v3237_v40 = vadd.f32 %v3190_v8, %v2983_v62  ;;  %v3331_v50 = vshll.u32 %v3300_v48, 16  ;;  %v7694_v48 = vpop.f32.mrf.mxu1 }
 0x293   : > { %v2572_v30 = vadd.f32 %v7638_v60, %v2388_v22  ;;  %v2389_v60 = vadd.f32 %v7648_v42, %v7529_v25 }
 0x294   : > { %v3330_v61 = vrot.slane %v3328_v39, 7  ;;  %v3261_v49 = vadd.f32 %v7631_v21, %v3237_v40  ;;  %6109 = vmatmul.msk.bf16.gmra.mxu0 %vm1067_vm10, %v3142_v24  ;;  %v2985_v24 = vadd.f32 %v7625_v3, %v2571_v29 }
 0x295   : > { %v2573_v25 = vadd.f32 %v7658_v0, %v2389_v60 }
 0x296   : > { %v3333_v23 = vor.u32 %v3331_v50, %v3330_v61  ;;  %v3335_v1 = vrot.slane %v3330_v61, 4  ;;  %v3281_v27 = vmax.f32 %v3261_v49, 0.0 }
 0x298   : > { %v3594_v45 = vld [vmem:[#allocation3] sm:$0x1]  ;;  %v3334_v59 = vsel %vm6573_vm7, %v3326_v52, %v3333_v23  ;;  %v3529_v58 = vsel %vm7672_vm6, %v3335_v1, %v3528_v31  ;;  %v3301_v10 = vpack.c.bf16 %v3281_v27, %v3281_v27  ;;  %v3535_v23 = vld [vmem:[#allocation3 + $0x14] sm:$0x1] }
 0x299   : > { %v3595_v19 = vsel %vm7672_vm6, 0, %v3594_v45  ;;  %3525 = vst.msk [vmem:[#allocation3 + $0x4] sm:$0xf] %vm3519_vm2, %v3334_v59  ;;  %v3192_v47 = vpop.f32.mrf.mxu0  ;;  %v2986_v45 = vadd.f32 %v7644_v41, %v2572_v30  ;;  %v7712_v59 = vpop.f32.mrf.mxu3 }
 0x29a   : > { %3596 = vst [vmem:[#allocation3] sm:$0x1] %v3595_v19  ;;  %v3337_v18 = vshrl.u32 %v3301_v10, 16  ;;  %v3238_v55 = vadd.f32 %v3192_v47, %v2984_v26  ;;  %v3340_v20 = vshll.u32 %v3301_v10, 16 }
 0x29b   : > { %3530 = vst [vmem:[#allocation3 + $0x8] sm:$0x1] %v3529_v58 }
 0x29c   : > { %v3339_v17 = vrot.slane %v3337_v18, 7  ;;  %v3262_v12 = vadd.f32 %v7631_v21, %v3238_v55  ;;  %v2355_v18 = vpop.f32.mrf.mxu1 }
 0x29e   : > { %v3342_v13 = vor.u32 %v3340_v20, %v3339_v17  ;;  %v3282_v62 = vmax.f32 %v3262_v12, 0.0  ;;  %v3343_v1 = vrot.slane %v3339_v17, 4 }
 0x2a0   : > { %v3532_v8 = vsel %vm7653_vm4, %v3342_v13, %v3531_v35  ;;  %v3302_v39 = vpack.c.bf16 %v3282_v62, %v3282_v62  ;;  %v2539_v35 = vpop.f32.mrf.mxu2  ;;  %v3538_v13 = vld [vmem:[#allocation3 + $0x18] sm:$0xf] }
 0x2a1   : > { %3533 = vst [vmem:[#allocation3 + $0xc] sm:$0xf] %v3532_v8  ;;  %v3195_v40 = vpop.f32.mrf.mxu0  ;;  %v2987_v8 = vadd.f32 %v7664_v4, %v2573_v25 }
 0x2a2   : > { %v3625_v46 = vld [vmem:[#allocation3 + $0x8] sm:$0x1]  ;;  %v3345_v61 = vshrl.u32 %v3302_v39, 16  ;;  %v3239_v50 = vadd.f32 %v3195_v40, %v2985_v24  ;;  %v3348_v31 = vshll.u32 %v3302_v39, 16  ;;  %v2390_v24 = vadd.f32 %v7668_v54, %v7537_v36 }
 0x2a3   : > { %v3626_v3 = vsel %vm7699_vm3, 0, %v3625_v46  ;;  %v7730_v46 = vpop.f32.mrf.mxu3 }
 0x2a4   : > { %3627 = vst [vmem:[#allocation3 + $0x8] sm:$0x1] %v3626_v3  ;;  %v3347_v49 = vrot.slane %v3345_v61, 7  ;;  %v3263_v52 = vadd.f32 %v7631_v21, %v3239_v50  ;;  %v2574_v3 = vadd.f32 %v7683_v56, %v2390_v24  ;;  %v2391_v56 = vadd.f32 %v7694_v48, %v7540_v34 }
 0x2a6   : > { %v3350_v27 = vor.u32 %v3348_v31, %v3347_v49  ;;  %v3352_v26 = vrot.slane %v3347_v49, 4  ;;  %v3283_v44 = vmax.f32 %v3263_v52, 0.0  ;;  %v2358_v49 = vpop.f32.mrf.mxu1  ;;  %v3542_v52 = vld [vmem:[#allocation3 + $0x20] sm:$0x1]  ;;  %v2575_v34 = vadd.f32 %v7706_v9, %v2391_v56 }
 0x2a8   : > { %v3597_v58 = vld [vmem:[#allocation3 + $0xc] sm:$0x1]  ;;  %v3351_v10 = vsel %vm6573_vm7, %v3343_v1, %v3350_v27  ;;  %v3536_v19 = vsel %vm7672_vm6, %v3352_v26, %v3535_v23  ;;  %v3303_v47 = vpack.c.bf16 %v3283_v44, %v3283_v44  ;;  %v2988_v44 = vadd.f32 %v7690_v2, %v2574_v3 }
 0x2a9   : > { %v3598_v55 = vsel %vm7672_vm6, 0, %v3597_v58  ;;  %3534 = vst.msk [vmem:[#allocation3 + $0x10] sm:$0xf] %vm3519_vm2, %v3351_v10  ;;  %v3197_v41 = vpop.f32.mrf.mxu0 }
 0x2aa   : > { %3599 = vst [vmem:[#allocation3 + $0xc] sm:$0x1] %v3598_v55  ;;  %v3354_v29 = vshrl.u32 %v3303_v47, 16  ;;  %v3240_v17 = vadd.f32 %v3197_v41, %v2986_v45  ;;  %v3357_v20 = vshll.u32 %v3303_v47, 16  ;;  %v2542_v45 = vpop.f32.mrf.mxu2 }
 0x2ab   : > { %3537 = vst [vmem:[#allocation3 + $0x14] sm:$0x1] %v3536_v19 }
 0x2ac   : > { %v3356_v42 = vrot.slane %v3354_v29, 7  ;;  %v3264_v12 = vadd.f32 %v7631_v21, %v3240_v17  ;;  %v2956_v29 = vpop.f32.mrf.mxu3 }
 0x2ae   : > { %v3359_v62 = vor.u32 %v3357_v20, %v3356_v42  ;;  %v3284_v22 = vmax.f32 %v3264_v12, 0.0  ;;  %v3360_v23 = vrot.slane %v3356_v42, 4  ;;  %v2360_v42 = vpop.f32.mrf.mxu1  ;;  %v3545_v20 = vld [vmem:[#allocation3 + $0x24] sm:$0xf] }
 0x2b0   : > { %v3539_v39 = vsel %vm7653_vm4, %v3359_v62, %v3538_v13  ;;  %v3304_v40 = vpack.c.bf16 %v3284_v22, %v3284_v22  ;;  %v2392_v62 = vadd.f32 %v2355_v18, %v7548_v38  ;;  %v2989_v22 = vadd.f32 %v7712_v59, %v2575_v34  ;;  %v3549_v18 = vld [vmem:[#allocation3 + $0x2c] sm:$0x1] }
 0x2b1   : > { %3540 = vst [vmem:[#allocation3 + $0x18] sm:$0xf] %v3539_v39  ;;  %v3200_v0 = vpop.f32.mrf.mxu0 }
 0x2b2   : > { %v3628_v61 = vld [vmem:[#allocation3 + $0x14] sm:$0x1]  ;;  %v3362_v50 = vshrl.u32 %v3304_v40, 16  ;;  %v3241_v30 = vadd.f32 %v3200_v0, %v2987_v8  ;;  %v3365_v4 = vshll.u32 %v3304_v40, 16  ;;  %v2544_v39 = vpop.f32.mrf.mxu2 }
 0x2b3   : > { %v3629_v31 = vsel %vm7699_vm3, 0, %v3628_v61 }
 0x2b4   : > { %3630 = vst [vmem:[#allocation3 + $0x14] sm:$0x1] %v3629_v31  ;;  %v3364_v36 = vrot.slane %v3362_v50, 7  ;;  %v3265_v54 = vadd.f32 %v7631_v21, %v3241_v30  ;;  %v2576_v50 = vadd.f32 %v2539_v35, %v2392_v62  ;;  %v2958_v59 = vpop.f32.mrf.mxu3 }
 0x2b6   : > { %v3367_v1 = vor.u32 %v3365_v4, %v3364_v36  ;;  %v3369_v27 = vrot.slane %v3364_v36, 4  ;;  %v3285_v26 = vmax.f32 %v3265_v54, 0.0 }
 0x2b8   : > { %v3600_v60 = vld [vmem:[#allocation3 + $0x18] sm:$0x1]  ;;  %v3368_v58 = vsel %vm6573_vm7, %v3360_v23, %v3367_v1  ;;  %v3543_v10 = vsel %vm7672_vm6, %v3369_v27, %v3542_v52  ;;  %v3305_v19 = vpack.c.bf16 %v3285_v26, %v3285_v26  ;;  %v2990_v23 = vadd.f32 %v7730_v46, %v2576_v50  ;;  %v2363_v1 = vpop.f32.mrf.mxu1 }
 0x2b9   : > { %v3601_v47 = vsel %vm7672_vm6, 0, %v3600_v60  ;;  %3541 = vst.msk [vmem:[#allocation3 + $0x1c] sm:$0xf] %vm3519_vm2, %v3368_v58  ;;  %v3202_v55 = vpop.f32.mrf.mxu0  ;;  %v2393_v27 = vadd.f32 %v2358_v49, %v7551_v6 }
 0x2ba   : > { %3602 = vst [vmem:[#allocation3 + $0x18] sm:$0x1] %v3601_v47  ;;  %v3371_v2 = vshrl.u32 %v3305_v19, 16  ;;  %v3242_v41 = vadd.f32 %v3202_v55, %v2988_v44  ;;  %v3374_v17 = vshll.u32 %v3305_v19, 16  ;;  %v2547_v19 = vpop.f32.mrf.mxu2 }
 0x2bb   : > { %3544 = vst [vmem:[#allocation3 + $0x20] sm:$0x1] %v3543_v10  ;;  %v2577_v6 = vadd.f32 %v2542_v45, %v2393_v27 }
 0x2bc   : > { %v3373_v48 = vrot.slane %v3371_v2, 7  ;;  %v3266_v25 = vadd.f32 %v7631_v21, %v3242_v41  ;;  %v3552_v2 = vld [vmem:[#allocation3 + $0x30] sm:$0xf] }
 0x2be   : > { %v3376_v12 = vor.u32 %v3374_v17, %v3373_v48  ;;  %v3286_v13 = vmax.f32 %v3266_v25, 0.0  ;;  %v3377_v36 = vrot.slane %v3373_v48, 4  ;;  %v2394_v48 = vadd.f32 %v2360_v42, %v7560_v28  ;;  %v2961_v17 = vpop.f32.mrf.mxu3  ;;  %v3556_v42 = vld [vmem:[#allocation3 + $0x38] sm:$0x1] }
 0x2bf   : > { %v2991_v25 = vadd.f32 %v2956_v29, %v2577_v6 }
 0x2c0   : > { %v3546_v24 = vsel %vm7653_vm4, %v3376_v12, %v3545_v20  ;;  %v3306_v8 = vpack.c.bf16 %v3286_v13, %v3286_v13  ;;  %v2365_v13 = vpop.f32.mrf.mxu1 }
 0x2c1   : > { %3547 = vst [vmem:[#allocation3 + $0x24] sm:$0xf] %v3546_v24  ;;  %v3205_v40 = vpop.f32.mrf.mxu0 }
 0x2c2   : > { %v3631_v9 = vld [vmem:[#allocation3 + $0x20] sm:$0x1]  ;;  %v3379_v0 = vshrl.u32 %v3306_v8, 16  ;;  %v3243_v61 = vadd.f32 %v3205_v40, %v2989_v22  ;;  %v3382_v31 = vshll.u32 %v3306_v8, 16  ;;  %v2578_v8 = vadd.f32 %v2544_v39, %v2394_v48  ;;  %v2549_v29 = vpop.f32.mrf.mxu2 }
 0x2c3   : > { %v3632_v30 = vsel %vm7699_vm3, 0, %v3631_v9 }
 0x2c4   : > { %3633 = vst [vmem:[#allocation3 + $0x20] sm:$0x1] %v3632_v30  ;;  %v3381_v3 = vrot.slane %v3379_v0, 7  ;;  %v3267_v38 = vadd.f32 %v7631_v21, %v3243_v61 }
 0x2c6   : > { %v3384_v4 = vor.u32 %v3382_v31, %v3381_v3  ;;  %v3386_v54 = vrot.slane %v3381_v3, 4  ;;  %v3287_v52 = vmax.f32 %v3267_v38, 0.0  ;;  %v2992_v31 = vadd.f32 %v2958_v59, %v2578_v8 }
 0x2c7   : > { %v2395_v38 = vadd.f32 %v2363_v1, %v7564_v15 }
 0x2c8   : > { %v3603_v35 = vld [vmem:[#allocation3 + $0x24] sm:$0x1]  ;;  %v3385_v26 = vsel %vm6573_vm7, %v3377_v36, %v3384_v4  ;;  %v3550_v44 = vsel %vm7672_vm6, %v3386_v54, %v3549_v18  ;;  %v3307_v56 = vpack.c.bf16 %v3287_v52, %v3287_v52  ;;  %v2963_v54 = vpop.f32.mrf.mxu3 }
 0x2c9   : > { %v3604_v60 = vsel %vm7672_vm6, 0, %v3603_v35  ;;  %3548 = vst.msk [vmem:[#allocation3 + $0x28] sm:$0xf] %vm3519_vm2, %v3385_v26  ;;  %v3207_v58 = vpop.f32.mrf.mxu0  ;;  %v2368_v35 = vpop.f32.mrf.mxu1  ;;  %v2579_v15 = vadd.f32 %v2547_v19, %v2395_v38 }
 0x2ca   : > { %3605 = vst [vmem:[#allocation3 + $0x24] sm:$0x1] %v3604_v60  ;;  %v3388_v10 = vshrl.u32 %v3307_v56, 16  ;;  %v3244_v46 = vadd.f32 %v3207_v58, %v2990_v23  ;;  %v3391_v47 = vshll.u32 %v3307_v56, 16  ;;  %v3559_v56 = vld [vmem:[#allocation3 + $0x3c] sm:$0xf] }
 0x2cb   : > { %3551 = vst [vmem:[#allocation3 + $0x2c] sm:$0x1] %v3550_v44  ;;  %v2993_v6 = vadd.f32 %v2961_v17, %v2579_v15 }
 0x2cc   : > { %v3390_v49 = vrot.slane %v3388_v10, 7  ;;  %v3268_v55 = vadd.f32 %v7631_v21, %v3244_v46  ;;  %v2396_v10 = vadd.f32 %v2365_v13, %v7573_v5  ;;  %v2552_v46 = vpop.f32.mrf.mxu2  ;;  %v3563_v13 = vld [vmem:[#allocation3 + $0x44] sm:$0x1] }
 0x2ce   : > { %v3393_v41 = vor.u32 %v3391_v47, %v3390_v49  ;;  %v3288_v34 = vmax.f32 %v3268_v55, 0.0  ;;  %v3394_v61 = vrot.slane %v3390_v49, 4 }
 0x2d0   : > { %v3553_v20 = vsel %vm7653_vm4, %v3393_v41, %v3552_v2  ;;  %v3308_v12 = vpack.c.bf16 %v3288_v34, %v3288_v34  ;;  %v2580_v34 = vadd.f32 %v2549_v29, %v2396_v10  ;;  %v2966_v48 = vpop.f32.mrf.mxu3 }
 0x2d1   : > { %3554 = vst [vmem:[#allocation3 + $0x30] sm:$0xf] %v3553_v20  ;;  %v3210_v62 = vpop.f32.mrf.mxu0  ;;  %v2370_v17 = vpop.f32.mrf.mxu1 }
 0x2d2   : > { %v3634_v22 = vld [vmem:[#allocation3 + $0x2c] sm:$0x1]  ;;  %v3396_v45 = vshrl.u32 %v3308_v12, 16  ;;  %v3245_v24 = vadd.f32 %v3210_v62, %v2991_v25  ;;  %v3399_v0 = vshll.u32 %v3308_v12, 16  ;;  %v2994_v8 = vadd.f32 %v2963_v54, %v2580_v34 }
 0x2d3   : > { %v3635_v40 = vsel %vm7699_vm3, 0, %v3634_v22 }
 0x2d4   : > { %3636 = vst [vmem:[#allocation3 + $0x2c] sm:$0x1] %v3635_v40  ;;  %v3398_v9 = vrot.slane %v3396_v45, 7  ;;  %v3269_v28 = vadd.f32 %v7631_v21, %v3245_v24  ;;  %v2397_v40 = vadd.f32 %v2368_v35, %v7577_v11 }
 0x2d6   : > { %v3401_v50 = vor.u32 %v3399_v0, %v3398_v9  ;;  %v3403_v30 = vrot.slane %v3398_v9, 4  ;;  %v3289_v3 = vmax.f32 %v3269_v28, 0.0  ;;  %v2581_v11 = vadd.f32 %v2552_v46, %v2397_v40 }
 0x2d8   : > { %v3606_v18 = vld [vmem:[#allocation3 + $0x30] sm:$0x1]  ;;  %v3402_v39 = vsel %vm6573_vm7, %v3394_v61, %v3401_v50  ;;  %v3557_v36 = vsel %vm7672_vm6, %v3403_v30, %v3556_v42  ;;  %v3309_v4 = vpack.c.bf16 %v3289_v3, %v3289_v3  ;;  %v2554_v42 = vpop.f32.mrf.mxu2 }
 0x2d9   : > { %v3607_v52 = vsel %vm7672_vm6, 0, %v3606_v18  ;;  %3555 = vst.msk [vmem:[#allocation3 + $0x34] sm:$0xf] %vm3519_vm2, %v3402_v39  ;;  %v3212_v23 = vpop.f32.mrf.mxu0  ;;  %v2968_v39 = vpop.f32.mrf.mxu3 }
 0x2da   : > { %3608 = vst [vmem:[#allocation3 + $0x30] sm:$0x1] %v3607_v52  ;;  %v3405_v27 = vshrl.u32 %v3309_v4, 16  ;;  %v3246_v59 = vadd.f32 %v3212_v23, %v2992_v31  ;;  %v3408_v26 = vshll.u32 %v3309_v4, 16  ;;  %v2398_v52 = vadd.f32 %v2370_v17, %v7586_v33  ;;  %v2373_v23 = vpop.f32.mrf.mxu1 }
 0x2db   : > { %3558 = vst [vmem:[#allocation3 + $0x38] sm:$0x1] %v3557_v36  ;;  %v3566_v36 = vld [vmem:[#allocation3 + $0x48] sm:$0xf]  ;;  %v2399_v34 = vadd.f32 %v2373_v23, %v7590_v16 }
 0x2dc   : > { %v3407_v1 = vrot.slane %v3405_v27, 7  ;;  %v3270_v44 = vadd.f32 %v7631_v21, %v3246_v59  ;;  %v2995_v27 = vadd.f32 %v2966_v48, %v2581_v11 }
 0x2de   : > { %v3410_v60 = vor.u32 %v3408_v26, %v3407_v1  ;;  %v3290_v58 = vmax.f32 %v3270_v44, 0.0  ;;  %v3411_v62 = vrot.slane %v3407_v1, 4 }
 0x2e0   : > { %v3560_v49 = vsel %vm7653_vm4, %v3410_v60, %v3559_v56  ;;  %v3310_v47 = vpack.c.bf16 %v3290_v58, %v3290_v58  ;;  %v2582_v56 = vadd.f32 %v2554_v42, %v2398_v52  ;;  %v2557_v60 = vpop.f32.mrf.mxu2  ;;  %v3577_v52 = vld [vmem:[#allocation3 + $0x5c] sm:$0x1] }
 0x2e1   : > { %3561 = vst [vmem:[#allocation3 + $0x3c] sm:$0xf] %v3560_v49  ;;  %v3215_v55 = vpop.f32.mrf.mxu0  ;;  %v2583_v16 = vadd.f32 %v2557_v60, %v2399_v34 }
 0x2e2   : > { %v3637_v2 = vld [vmem:[#allocation3 + $0x38] sm:$0x1]  ;;  %v3413_v41 = vshrl.u32 %v3310_v47, 16  ;;  %v3247_v19 = vadd.f32 %v3215_v55, %v2993_v6  ;;  %v3416_v12 = vshll.u32 %v3310_v47, 16  ;;  %v3570_v6 = vld [vmem:[#allocation3 + $0x50] sm:$0x1] }
 0x2e3   : > { %v3638_v25 = vsel %vm7699_vm3, 0, %v3637_v2 }
 0x2e4   : > { %3639 = vst [vmem:[#allocation3 + $0x38] sm:$0x1] %v3638_v25  ;;  %v3415_v20 = vrot.slane %v3413_v41, 7  ;;  %v3271_v5 = vadd.f32 %v7631_v21, %v3247_v19  ;;  %v2996_v41 = vadd.f32 %v2968_v39, %v2582_v56  ;;  %v2971_v19 = vpop.f32.mrf.mxu3 }
 0x2e5   : > { %v2997_v42 = vadd.f32 %v2971_v19, %v2583_v16  ;;  %v3580_v19 = vld [vmem:[#allocation3 + $0x60] sm:$0xf] }
 0x2e6   : > { %v3418_v22 = vor.u32 %v3416_v12, %v3415_v20  ;;  %v3420_v45 = vrot.slane %v3415_v20, 4  ;;  %v3291_v24 = vmax.f32 %v3271_v5, 0.0  ;;  %v2375_v5 = vpop.f32.mrf.mxu1 }
 0x2e8   : > { %v3609_v9 = vld [vmem:[#allocation3 + $0x3c] sm:$0x1]  ;;  %v3419_v0 = vsel %vm6573_vm7, %v3411_v62, %v3418_v22  ;;  %v3564_v28 = vsel %vm7672_vm6, %v3420_v45, %v3563_v13  ;;  %v3311_v29 = vpack.c.bf16 %v3291_v24, %v3291_v24  ;;  %v2559_v40 = vpop.f32.mrf.mxu2 }
 0x2e9   : > { %v3610_v61 = vsel %vm7672_vm6, 0, %v3609_v9  ;;  %3562 = vst.msk [vmem:[#allocation3 + $0x40] sm:$0xf] %vm3519_vm2, %v3419_v0  ;;  %v3217_v50 = vpop.f32.mrf.mxu0  ;;  %v3573_v9 = vld [vmem:[#allocation3 + $0x54] sm:$0xf] }
 0x2ea   : > { %3611 = vst [vmem:[#allocation3 + $0x3c] sm:$0x1] %v3610_v61  ;;  %v3422_v30 = vshrl.u32 %v3311_v29, 16  ;;  %v3248_v3 = vadd.f32 %v3217_v50, %v2994_v8  ;;  %v3425_v38 = vshll.u32 %v3311_v29, 16  ;;  %v2400_v29 = vadd.f32 %v2375_v5, %v7599_v63 }
 0x2eb   : > { %3565 = vst [vmem:[#allocation3 + $0x44] sm:$0x1] %v3564_v28 }
 0x2ec   : > { %v3424_v31 = vrot.slane %v3422_v30, 7  ;;  %v3272_v18 = vadd.f32 %v7631_v21, %v3248_v3  ;;  %v2973_v30 = vpop.f32.mrf.mxu3 }
 0x2ee   : > { %v3427_v4 = vor.u32 %v3425_v38, %v3424_v31  ;;  %v3292_v54 = vmax.f32 %v3272_v18, 0.0  ;;  %v3428_v49 = vrot.slane %v3424_v31, 4  ;;  %v2584_v18 = vadd.f32 %v2559_v40, %v2400_v29  ;;  %v2378_v39 = vpop.f32.mrf.mxu1 }
 0x2f0   : > { %v3567_v59 = vsel %vm7653_vm4, %v3427_v4, %v3566_v36  ;;  %v3312_v35 = vpack.c.bf16 %v3292_v54, %v3292_v54 }
 0x2f1   : > { %3568 = vst [vmem:[#allocation3 + $0x48] sm:$0xf] %v3567_v59  ;;  %v3220_v15 = vpop.f32.mrf.mxu0 }
 0x2f2   : > { %v3640_v1 = vld [vmem:[#allocation3 + $0x44] sm:$0x1]  ;;  %v3430_v26 = vshrl.u32 %v3312_v35, 16  ;;  %v3249_v44 = vadd.f32 %v3220_v15, %v2995_v27  ;;  %v3433_v46 = vshll.u32 %v3312_v35, 16  ;;  %v2998_v15 = vadd.f32 %v2973_v30, %v2584_v18 }
 0x2f3   : > { %v3641_v58 = vsel %vm7699_vm3, 0, %v3640_v1  ;;  %v2562_v1 = vpop.f32.mrf.mxu2 }
 0x2f4   : > { %3642 = vst [vmem:[#allocation3 + $0x44] sm:$0x1] %v3641_v58  ;;  %v3432_v10 = vrot.slane %v3430_v26, 7  ;;  %v3273_v33 = vadd.f32 %v7631_v21, %v3249_v44  ;;  %v2401_v26 = vadd.f32 %v2378_v39, %v7607_v53 }
 0x2f6   : > { %v3435_v47 = vor.u32 %v3433_v46, %v3432_v10  ;;  %v3437_v55 = vrot.slane %v3432_v10, 4  ;;  %v3293_v2 = vmax.f32 %v3273_v33, 0.0  ;;  %v2585_v53 = vadd.f32 %v2562_v1, %v2401_v26 }
 0x2f8   : > { %v3612_v48 = vld [vmem:[#allocation3 + $0x48] sm:$0x1]  ;;  %v3436_v25 = vsel %vm6573_vm7, %v3428_v49, %v3435_v47  ;;  %v3571_v20 = vsel %vm7672_vm6, %v3437_v55, %v3570_v6  ;;  %v3313_v12 = vpack.c.bf16 %v3293_v2, %v3293_v2  ;;  %v2976_v49 = vpop.f32.mrf.mxu3 }
 0x2f9   : > { %v3613_v17 = vsel %vm7672_vm6, 0, %v3612_v48  ;;  %3569 = vst.msk [vmem:[#allocation3 + $0x4c] sm:$0xf] %vm3519_vm2, %v3436_v25  ;;  %v3222_v13 = vpop.f32.mrf.mxu0  ;;  %v2999_v25 = vadd.f32 %v2976_v49, %v2585_v53 }
 0x2fa   : > { %3614 = vst [vmem:[#allocation3 + $0x48] sm:$0x1] %v3613_v17  ;;  %v3439_v62 = vshrl.u32 %v3313_v12, 16  ;;  %v3250_v22 = vadd.f32 %v3222_v13, %v2996_v41  ;;  %v3442_v24 = vshll.u32 %v3313_v12, 16  ;;  %v2380_v41 = vpop.f32.mrf.mxu1 }
 0x2fb   : > { %3572 = vst [vmem:[#allocation3 + $0x50] sm:$0x1] %v3571_v20  ;;  %v2402_v20 = vadd.f32 %v2380_v41, %v7621_v51  ;;  %v2564_v17 = vpop.f32.mrf.mxu2 }
 0x2fc   : > { %v3441_v45 = vrot.slane %v3439_v62, 7  ;;  %v3274_v8 = vadd.f32 %v7631_v21, %v3250_v22 }
 0x2fe   : > { %v3444_v0 = vor.u32 %v3442_v24, %v3441_v45  ;;  %v3294_v28 = vmax.f32 %v3274_v8, 0.0  ;;  %v3445_v23 = vrot.slane %v3441_v45, 4  ;;  %v2586_v24 = vadd.f32 %v2564_v17, %v2402_v20 }
 0x300   : > { %v3574_v61 = vsel %vm7653_vm4, %v3444_v0, %v3573_v9  ;;  %v3314_v50 = vpack.c.bf16 %v3294_v28, %v3294_v28  ;;  %v2978_v51 = vpop.f32.mrf.mxu3  ;;  %v3584_v0 = vld [vmem:[#allocation3 + $0x68] sm:$0x1] }
 0x301   : > { %3575 = vst [vmem:[#allocation3 + $0x54] sm:$0xf] %v3574_v61  ;;  %v3225_v3 = vpop.f32.mrf.mxu0 }
 0x302   : > { %v3643_v11 = vld [vmem:[#allocation3 + $0x50] sm:$0x1]  ;;  %v3447_v31 = vshrl.u32 %v3314_v50, 16  ;;  %v3251_v38 = vadd.f32 %v3225_v3, %v2997_v42  ;;  %v3450_v54 = vshll.u32 %v3314_v50, 16  ;;  %v3000_v50 = vadd.f32 %v2978_v51, %v2586_v24 }
 0x303   : > { %v3644_v36 = vsel %vm7699_vm3, 0, %v3643_v11 }
 0x304   : > { %3645 = vst [vmem:[#allocation3 + $0x50] sm:$0x1] %v3644_v36  ;;  %v3449_v4 = vrot.slane %v3447_v31, 7  ;;  %v3275_v63 = vadd.f32 %v7631_v21, %v3251_v38 }
 0x306   : > { %v3452_v27 = vor.u32 %v3450_v54, %v3449_v4  ;;  %v3454_v59 = vrot.slane %v3449_v4, 4  ;;  %v3295_v35 = vmax.f32 %v3275_v63, 0.0 }
 0x308   : > { %v3615_v44 = vld [vmem:[#allocation3 + $0x54] sm:$0x1]  ;;  %v3453_v56 = vsel %vm6573_vm7, %v3445_v23, %v3452_v27  ;;  %v3578_v60 = vsel %vm7672_vm6, %v3454_v59, %v3577_v52  ;;  %v3315_v58 = vpack.c.bf16 %v3295_v35, %v3295_v35  ;;  %v3587_v52 = vld [vmem:[#allocation3 + $0x6c] sm:$0xf] }
 0x309   : > { %v3616_v10 = vsel %vm7672_vm6, 0, %v3615_v44  ;;  %3576 = vst.msk [vmem:[#allocation3 + $0x58] sm:$0xf] %vm3519_vm2, %v3453_v56  ;;  %v3227_v46 = vpop.f32.mrf.mxu0 }
 0x30a   : > { %3617 = vst [vmem:[#allocation3 + $0x54] sm:$0x1] %v3616_v10  ;;  %v3456_v33 = vshrl.u32 %v3315_v58, 16  ;;  %v3252_v6 = vadd.f32 %v3227_v46, %v2998_v15  ;;  %v3459_v55 = vshll.u32 %v3315_v58, 16 }
 0x30b   : > { %3579 = vst [vmem:[#allocation3 + $0x5c] sm:$0x1] %v3578_v60  ;;  %v3591_v60 = vld [vmem:[#allocation3 + $0x74] sm:$0x1] }
 0x30c   : > { %v3458_v47 = vrot.slane %v3456_v33, 7  ;;  %v3276_v2 = vadd.f32 %v7631_v21, %v3252_v6 }
 0x30e   : > { %v3461_v34 = vor.u32 %v3459_v55, %v3458_v47  ;;  %v3296_v48 = vmax.f32 %v3276_v2, 0.0  ;;  %v3462_v28 = vrot.slane %v3458_v47, 4 }
 0x310   : > { %v3581_v12 = vsel %vm7653_vm4, %v3461_v34, %v3580_v19  ;;  %v3316_v5 = vpack.c.bf16 %v3296_v48, %v3296_v48 }
 0x311   : > { %3582 = vst [vmem:[#allocation3 + $0x60] sm:$0xf] %v3581_v12  ;;  %v3230_v13 = vpop.f32.mrf.mxu0 }
 0x312   : > { %v3646_v62 = vld [vmem:[#allocation3 + $0x5c] sm:$0x1]  ;;  %v3464_v22 = vshrl.u32 %v3316_v5, 16  ;;  %v3253_v16 = vadd.f32 %v3230_v13, %v2999_v25  ;;  %v3467_v40 = vshll.u32 %v3316_v5, 16 }
 0x313   : > { %v3647_v45 = vsel %vm7699_vm3, 0, %v3646_v62 }
 0x314   : > { %3648 = vst [vmem:[#allocation3 + $0x5c] sm:$0x1] %v3647_v45  ;;  %v3466_v8 = vrot.slane %v3464_v22, 7  ;;  %v3277_v9 = vadd.f32 %v7631_v21, %v3253_v16 }
 0x316   : > { %v3469_v29 = vor.u32 %v3467_v40, %v3466_v8  ;;  %v3471_v42 = vrot.slane %v3466_v8, 4  ;;  %v3297_v61 = vmax.f32 %v3277_v9, 0.0 }
 0x318   : > { %v3618_v30 = vld [vmem:[#allocation3 + $0x60] sm:$0x1]  ;;  %v3470_v3 = vsel %vm6573_vm7, %v3462_v28, %v3469_v29  ;;  %v3585_v11 = vsel %vm7672_vm6, %v3471_v42, %v3584_v0  ;;  %v3317_v31 = vpack.c.bf16 %v3297_v61, %v3297_v61 }
 0x319   : > { %v3619_v38 = vsel %vm7672_vm6, 0, %v3618_v30  ;;  %3583 = vst.msk [vmem:[#allocation3 + $0x64] sm:$0xf] %vm3519_vm2, %v3470_v3  ;;  %v3232_v18 = vpop.f32.mrf.mxu0 }
 0x31a   : > { %3620 = vst [vmem:[#allocation3 + $0x60] sm:$0x1] %v3619_v38  ;;  %v3473_v39 = vshrl.u32 %v3317_v31, 16  ;;  %v3254_v36 = vadd.f32 %v3232_v18, %v3000_v50  ;;  %v3476_v54 = vshll.u32 %v3317_v31, 16 }
 0x31b   : > { %3586 = vst [vmem:[#allocation3 + $0x68] sm:$0x1] %v3585_v11 }
 0x31c   : > { %v3475_v4 = vrot.slane %v3473_v39, 7  ;;  %v3278_v63 = vadd.f32 %v7631_v21, %v3254_v36 }
 0x31e   : > { %v3478_v23 = vor.u32 %v3476_v54, %v3475_v4  ;;  %v3298_v27 = vmax.f32 %v3278_v63, 0.0  ;;  %v3479_v58 = vrot.slane %v3475_v4, 4 }
 0x320   : > { %v3588_v59 = vsel %vm7653_vm4, %v3478_v23, %v3587_v52  ;;  %v3318_v35 = vpack.c.bf16 %v3298_v27, %v3298_v27 }
 0x321   : > { %3589 = vst [vmem:[#allocation3 + $0x6c] sm:$0xf] %v3588_v59 }
 0x322   : > { %v3649_v15 = vld [vmem:[#allocation3 + $0x68] sm:$0x1]  ;;  %v3481_v1 = vshrl.u32 %v3318_v35, 16  ;;  %v3484_v56 = vshll.u32 %v3318_v35, 16 }
 0x323   : > { %v3650_v26 = vsel %vm7699_vm3, 0, %v3649_v15 }
 0x324   : > { %3651 = vst [vmem:[#allocation3 + $0x68] sm:$0x1] %v3650_v26  ;;  %v3483_v44 = vrot.slane %v3481_v1, 7 }
 0x326   : > { %v3486_v10 = vor.u32 %v3484_v56, %v3483_v44  ;;  %v3488_v21 = vrot.slane %v3483_v44, 4 }
 0x328   : > { %v3621_v46 = vld [vmem:[#allocation3 + $0x6c] sm:$0x1]  ;;  %v3487_v33 = vsel %vm6573_vm7, %v3479_v58, %v3486_v10  ;;  %v3592_v57 = vsel %vm7672_vm6, %v3488_v21, %v3591_v60 }
 0x329   : > { %v3622_v6 = vsel %vm7672_vm6, 0, %v3621_v46  ;;  %3590 = vst.msk [vmem:[#allocation3 + $0x70] sm:$0xf] %vm3519_vm2, %v3487_v33 }
 0x32a   : > { %3623 = vst [vmem:[#allocation3 + $0x6c] sm:$0x1] %v3622_v6 }
 0x32b   : > { %3593 = vst [vmem:[#allocation3 + $0x74] sm:$0x1] %v3592_v57 }
 0x330   : > { %3657 = sbr.rel (%p5853_p8) target bundleno = 825 (0x339), region = 60 }
 0x332   : > { %v3652_v49 = vld [vmem:[#allocation3 + $0x74] sm:$0x1] }
 0x333   : > { %v3653_v53 = vsel %vm7699_vm3, 0, %v3652_v49 }
 0x334   : > { %3654 = vst [vmem:[#allocation3 + $0x74] sm:$0x1] %v3653_v53 }
 0x335   : > { %v6470_v37 = vmov 0  }
 0x336   : > { %3658 = vst.msk [vmem:[#allocation3] sm:$0xf] %vm3519_vm2, %v6470_v37 }
 0x337   : > { %3659 = vst.msk [vmem:[#allocation3 + $0x4] sm:$0xf] %vm3519_vm2, %v6470_v37 }
 0x338   : > { %3661 = vst.msk [vmem:[#allocation3 + $0x8] sm:$0x1] %vm3526_vm5, %v6470_v37 }
 0x339 PF: > { %3664 = sbr.rel (%p5861_p10) target bundleno = 834 (0x342), region = 64 }
 0x33e   : > { %v6471_v7 = vmov 0  }
 0x33f   : > { %3666 = vst.msk [vmem:[#allocation3 + $0x6c] sm:$0xf] %vm3519_vm2, %v6471_v7 }
 0x340   : > { %3667 = vst.msk [vmem:[#allocation3 + $0x70] sm:$0xf] %vm3519_vm2, %v6471_v7 }
 0x341   : > { %3669 = vst.msk [vmem:[#allocation3 + $0x74] sm:$0x1] %vm3526_vm5, %v6471_v7 }
 0x342 PF: > { %v3686_v14 = vld [vmem:[%s8369_s3] sm:$0xf]  ;;  %vm3938_vm0 = vcmask 1043456   ;;  %v6347_v47 = vld [vmem:[#allocation3] sm:$0xff]  ;;  %vm3913_vm7 = vcmask 64512  }
 0x343   : > { %v4056_v55 = vsel %vm3938_vm0, %v3686_v14, 0  ;;  %v6169_v2 = vld [vmem:[%s8369_s3 + $0x8] sm:$0xf]  ;;  %v3671_v41 = vld [vmem:[#allocation3 + $0x4] sm:$0xf] }
 0x344   : > { %4065 = vmatpush.bf16.msra.mxu2 %v4056_v55  ;;  %v4238_v19 = vsel %vm3938_vm0, %v6169_v2, 0  ;;  %v3687_v34 = vld [vmem:[#allocation3 + $0x8] sm:$0x1]  ;;  %v4107_v48 = vld [vmem:[#allocation3] sm:$0xe]  ;;  %v4133_v25 = vrot.slane %v3671_v41, 5 }
 0x345   : > { %4247 = vmatpush.bf16.msrb.mxu3 %v4238_v19  ;;  %v6161_v20 = vrot.slane %v4107_v48, 9  ;;  %v4136_v12 = vrot.slane %v3687_v34, 5  ;;  %v6219_v5 = vld [vmem:[%s8369_s3 + $0x10] sm:$0xf]  ;;  %v6112_v17 = vld [vmem:[%s8369_s3 + $0x4] sm:$0xf] }
 0x346   : > { %v4135_v13 = vrot.slane %v4133_v25, 4  ;;  %v4723_v62 = vsel %vm3938_vm0, %v6219_v5, 0  ;;  %v3940_v22 = vsel %vm3938_vm0, %v6112_v17, 0  ;;  %v3670_v16 = vld [vmem:[#allocation3] sm:$0xf]  ;;  %v3705_v45 = vshll.u32 %v3671_v41, 16 }
 0x347   : > { %6153 = vmatmul.msk.bf16.vlgmr.msra.gmra.mxu2 %vm3913_vm7, %v6347_v47  ;;  %v4134_v24 = vsel %vm6789_vm1, %v6161_v20, %v4133_v25  ;;  %3949 = vmatpush.bf16.msra.mxu1 %v3940_v22  ;;  %v3696_v8 = vshrl.u32 %v3670_v16, 16  ;;  %v3699_v40 = vshll.u32 %v3670_v16, 16  ;;  %v3709_v9 = vshrl.u32 %v3671_v41, 16  ;;  %v6178_v51 = vld [vmem:[%s8369_s3 + $0xc] sm:$0xf]  ;;  %v6348_v55 = vld [vmem:[#allocation3 + $0xc] sm:$0xff] }
 0x348   : > { %v4137_v0 = vsel %vm6789_vm1, %v4135_v13, %v4136_v12  ;;  %v4189_v28 = vunpack.c.l.b16 %v4134_v24  ;;  %4732 = vmatpush.bf16.msrb.mxu2 %v4723_v62  ;;  %v3707_v29 = vrot.slane %v3705_v45, 5  ;;  %v3715_v42 = vshll.u32 %v3687_v34, 16  ;;  %v3673_v61 = vld [vmem:[#allocation3 + $0x10] sm:$0xf]  ;;  %v3688_v50 = vld [vmem:[#allocation3 + $0x14] sm:$0x1] }
 0x349   : > { %v4190_v30 = vunpack.c.l.b16 %v4137_v0  ;;  %v3698_v3 = vrot.slane %v3696_v8, 4  ;;  %v3701_v11 = vrot.slane %v3699_v40, 5  ;;  %v3711_v31 = vrot.slane %v3709_v9, 4  ;;  %v4108_v38 = vld [vmem:[#allocation3 + $0xc] sm:$0xe] }
 0x34a   : > { %v4389_v18 = vsel %vm3938_vm0, %v6178_v51, 0  ;;  %v4140_v39 = vrot.slane %v3673_v61, 5  ;;  %v3672_v36 = vld [vmem:[#allocation3 + $0xc] sm:$0xf]  ;;  %v3717_v52 = vrot.slane %v3715_v42, 5  ;;  %v6162_v23 = vrot.slane %v4108_v38, 9 }
 0x34b   : > { %v4205_v4 = vpack.c.b16 %v4190_v30, %v4189_v28  ;;  %v3702_v54 = vor.u32 %v3701_v11, %v3698_v3  ;;  %v3712_v63 = vor.u32 %v3711_v31, %v3707_v29  ;;  %4398 = vmatpush.bf16.msrb.mxu1 %v4389_v18  ;;  %v4143_v27 = vrot.slane %v3688_v50, 5  ;;  %v3674_v25 = vld [vmem:[#allocation3 + $0x18] sm:$0xf]  ;;  %v3675_v20 = vld [vmem:[#allocation3 + $0x1c] sm:$0xf] }
 0x34c   : > { %v3720_v59 = vshrl.u32 %v3672_v36, 16  ;;  %v3723_v35 = vshll.u32 %v3672_v36, 16  ;;  %v4142_v26 = vrot.slane %v4140_v39, 4  ;;  %v3729_v44 = vshll.u32 %v3673_v61, 16  ;;  %v4109_v62 = vld [vmem:[#allocation3 + $0x18] sm:$0xe] }
 0x34d   : > { %6170 = vmatmul.msk.bf16.vlgmr.msrb.gmra.mxu3 %vm3913_vm7, %v4205_v4  ;;  %v3703_v15 = vrot.slane %v3702_v54, 4  ;;  %v3713_v1 = vrot.slane %v3712_v63, 4  ;;  %v3733_v58 = vshrl.u32 %v3673_v61, 16  ;;  %v4141_v53 = vsel %vm6789_vm1, %v6162_v23, %v4140_v39  ;;  %v3689_v8 = vld [vmem:[#allocation3 + $0x20] sm:$0x1]  ;;  %v6349_v39 = vld [vmem:[#allocation3 + $0x18] sm:$0xff] }
 0x34e   : > { %v3722_v56 = vrot.slane %v3720_v59, 4  ;;  %v3725_v60 = vrot.slane %v3723_v35, 5  ;;  %v3731_v46 = vrot.slane %v3729_v44, 5  ;;  %v4144_v37 = vsel %vm6789_vm1, %v4142_v26, %v4143_v27  ;;  %v3677_v4 = vld [vmem:[#allocation3 + $0x28] sm:$0xf] }
 0x34f   : > { %v3708_v10 = vsel %vm6752_vm13, %v3703_v15, %v3707_v29  ;;  %v3718_v21 = vsel %vm6752_vm13, %v3713_v1, %v3717_v52  ;;  %v3735_v49 = vrot.slane %v3733_v58, 4  ;;  %v3739_v7 = vshll.u32 %v3688_v50, 16  ;;  %v3676_v54 = vld [vmem:[#allocation3 + $0x24] sm:$0xf] }
 0x350   : > { %v3889_v33 = vunpack.c.l.b16 %v3708_v10  ;;  %v3890_v57 = vunpack.c.l.b16 %v3718_v21  ;;  %v3726_v6 = vor.u32 %v3725_v60, %v3722_v56  ;;  %v4191_v2 = vunpack.c.l.b16 %v4141_v53  ;;  %v3690_v60 = vld [vmem:[#allocation3 + $0x2c] sm:$0x1]  ;;  %v4110_v10 = vld [vmem:[#allocation3 + $0x24] sm:$0xe] }
 0x351   : > { %v3736_v47 = vor.u32 %v3735_v49, %v3731_v46  ;;  %v4192_v41 = vunpack.c.l.b16 %v4144_v37  ;;  %v3741_v48 = vrot.slane %v3739_v7, 5  ;;  %v3744_v17 = vshrl.u32 %v3674_v25, 16 }
 0x352   : > { %v3905_v14 = vpack.c.b16 %v3890_v57, %v3889_v33  ;;  %v3727_v19 = vrot.slane %v3726_v6, 4  ;;  %v3747_v22 = vshll.u32 %v3674_v25, 16  ;;  %v3753_v16 = vshll.u32 %v3675_v20, 16 }
 0x353   : > { %v3737_v34 = vrot.slane %v3736_v47, 4  ;;  %v4206_v12 = vpack.c.b16 %v4192_v41, %v4191_v2  ;;  %v3757_v45 = vshrl.u32 %v3675_v20, 16  ;;  %v4147_v24 = vrot.slane %v3675_v20, 5 }
 0x354   : > { %6113 = vmatmul.msk.bf16.vlgmr.msra.gmra.mxu1 %vm3913_vm7, %v3905_v14  ;;  %v3732_v5 = vsel %vm6752_vm13, %v3727_v19, %v3731_v46  ;;  %v6163_v51 = vrot.slane %v4109_v62, 9  ;;  %v3746_v0 = vrot.slane %v3744_v17, 4  ;;  %v3749_v28 = vrot.slane %v3747_v22, 5  ;;  %v3679_v17 = vld [vmem:[#allocation3 + $0x34] sm:$0xf] }
 0x355   : > { %v3742_v13 = vsel %vm6752_vm13, %v3737_v34, %v3741_v48  ;;  %v3891_v40 = vunpack.c.l.b16 %v3732_v5  ;;  %v3755_v29 = vrot.slane %v3753_v16, 5  ;;  %v3759_v42 = vrot.slane %v3757_v45, 4  ;;  %v6350_v34 = vld [vmem:[#allocation3 + $0x24] sm:$0xff]  ;;  %v4111_v16 = vld [vmem:[#allocation3 + $0x30] sm:$0xe] }
 0x356   : > { %v3892_v9 = vunpack.c.l.b16 %v3742_v13  ;;  %v4149_v61 = vrot.slane %v4147_v24, 4  ;;  %v4150_v50 = vrot.slane %v3689_v8, 5  ;;  %v4148_v3 = vsel %vm6789_vm1, %v6163_v51, %v4147_v24  ;;  %v3678_v13 = vld [vmem:[#allocation3 + $0x30] sm:$0xf] }
 0x357   : > { %6154 = vmatmul.msk.bf16.gmra.mxu2 %vm3913_vm7, %v6348_v55  ;;  %v3750_v11 = vor.u32 %v3749_v28, %v3746_v0  ;;  %v3760_v31 = vor.u32 %v3759_v42, %v3755_v29  ;;  %v3763_v38 = vshll.u32 %v3689_v8, 16  ;;  %v4193_v36 = vunpack.c.l.b16 %v4148_v3  ;;  %v3691_v0 = vld [vmem:[#allocation3 + $0x38] sm:$0x1] }
 0x358   : > { %v3906_v30 = vpack.c.b16 %v3892_v9, %v3891_v40  ;;  %v4151_v18 = vsel %vm6789_vm1, %v4149_v61, %v4150_v50  ;;  %v3768_v59 = vshrl.u32 %v3676_v54, 16  ;;  %v3771_v35 = vshll.u32 %v3676_v54, 16 }
 0x359   : > { %v4194_v63 = vunpack.c.l.b16 %v4151_v18  ;;  %v3751_v52 = vrot.slane %v3750_v11, 4  ;;  %v3761_v23 = vrot.slane %v3760_v31, 4  ;;  %v3765_v27 = vrot.slane %v3763_v38, 5 }
 0x35a   : > { %v3777_v15 = vshll.u32 %v3677_v4, 16  ;;  %v3781_v1 = vshrl.u32 %v3677_v4, 16  ;;  %v4154_v58 = vrot.slane %v3677_v4, 5  ;;  %v3770_v21 = vrot.slane %v3768_v59, 4 }
 0x35b   : > { %v4207_v26 = vpack.c.b16 %v4194_v63, %v4193_v36  ;;  %v3756_v44 = vsel %vm6752_vm13, %v3751_v52, %v3755_v29  ;;  %v3766_v56 = vsel %vm6752_vm13, %v3761_v23, %v3765_v27  ;;  %v3773_v46 = vrot.slane %v3771_v35, 5  ;;  %v6351_v63 = vld [vmem:[#allocation3 + $0x30] sm:$0xff] }
 0x35c   : > { %v3779_v33 = vrot.slane %v3777_v15, 5  ;;  %v3783_v57 = vrot.slane %v3781_v1, 4  ;;  %v3893_v6 = vunpack.c.l.b16 %v3756_v44  ;;  %v3894_v49 = vunpack.c.l.b16 %v3766_v56  ;;  %v3681_v15 = vld [vmem:[#allocation3 + $0x40] sm:$0xf]  ;;  %v3680_v1 = vld [vmem:[#allocation3 + $0x3c] sm:$0xf] }
 0x35d   : > { %6171 = vmatmul.msk.bf16.gmra.mxu3 %vm3913_vm7, %v4206_v12  ;;  %v6164_v53 = vrot.slane %v4110_v10, 9  ;;  %v4156_v37 = vrot.slane %v4154_v58, 4  ;;  %v4157_v7 = vrot.slane %v3690_v60, 5  ;;  %v3774_v14 = vor.u32 %v3773_v46, %v3770_v21 }
 0x35e   : > { %v3784_v47 = vor.u32 %v3783_v57, %v3779_v33  ;;  %v3787_v55 = vshll.u32 %v3690_v60, 16  ;;  %v3907_v2 = vpack.c.b16 %v3894_v49, %v3893_v6  ;;  %v3792_v45 = vshrl.u32 %v3678_v13, 16  ;;  %v4112_v60 = vld [vmem:[#allocation3 + $0x3c] sm:$0xe]  ;;  %v3692_v57 = vld [vmem:[#allocation3 + $0x44] sm:$0x1] }
 0x35f   : > { %v4155_v41 = vsel %vm6789_vm1, %v6164_v53, %v4154_v58  ;;  %v4158_v19 = vsel %vm6789_vm1, %v4156_v37, %v4157_v7  ;;  %v3775_v48 = vrot.slane %v3774_v14, 4  ;;  %v3795_v24 = vshll.u32 %v3678_v13, 16  ;;  %v3682_v13 = vld [vmem:[#allocation3 + $0x48] sm:$0xf] }
 0x360   : > { %v3785_v25 = vrot.slane %v3784_v47, 4  ;;  %v3789_v20 = vrot.slane %v3787_v55, 5  ;;  %v4195_v12 = vunpack.c.l.b16 %v4155_v41  ;;  %v4196_v5 = vunpack.c.l.b16 %v4158_v19 }
 0x361   : > { %v3780_v62 = vsel %vm6752_vm13, %v3775_v48, %v3779_v33  ;;  %v3801_v8 = vshll.u32 %v3679_v17, 16  ;;  %v3805_v40 = vshrl.u32 %v3679_v17, 16  ;;  %v4161_v51 = vrot.slane %v3679_v17, 5  ;;  %v3683_v17 = vld [vmem:[#allocation3 + $0x4c] sm:$0xf] }
 0x362   : > { %v3790_v22 = vsel %vm6752_vm13, %v3785_v25, %v3789_v20  ;;  %v4208_v9 = vpack.c.b16 %v4196_v5, %v4195_v12  ;;  %v3895_v28 = vunpack.c.l.b16 %v3780_v62  ;;  %v6165_v42 = vrot.slane %v4111_v16, 9  ;;  %v6352_v12 = vld [vmem:[#allocation3 + $0x3c] sm:$0xff] }
 0x363   : > { %v3896_v29 = vunpack.c.l.b16 %v3790_v22  ;;  %v3794_v61 = vrot.slane %v3792_v45, 4  ;;  %v3797_v50 = vrot.slane %v3795_v24, 5  ;;  %v3807_v3 = vrot.slane %v3805_v40, 4 }
 0x364   : > { %6114 = vmatmul.msk.bf16.gmra.mxu1 %vm3913_vm7, %v3906_v30  ;;  %v3803_v30 = vrot.slane %v3801_v8, 5  ;;  %v4163_v11 = vrot.slane %v4161_v51, 4  ;;  %v4164_v31 = vrot.slane %v3691_v0, 5  ;;  %v4162_v18 = vsel %vm6789_vm1, %v6165_v42, %v4161_v51 }
 0x365   : > { %v3908_v38 = vpack.c.b16 %v3896_v29, %v3895_v28  ;;  %v3811_v4 = vshll.u32 %v3691_v0, 16  ;;  %v4197_v52 = vunpack.c.l.b16 %v4162_v18  ;;  %v3816_v58 = vshrl.u32 %v3680_v1, 16  ;;  %v3693_v29 = vld [vmem:[#allocation3 + $0x50] sm:$0x1] }
 0x366   : > { %v3808_v36 = vor.u32 %v3807_v3, %v3803_v30  ;;  %v4165_v54 = vsel %vm6789_vm1, %v4163_v11, %v4164_v31  ;;  %v3819_v10 = vshll.u32 %v3680_v1, 16  ;;  %v3825_v21 = vshll.u32 %v3681_v15, 16 }
 0x367   : > { %6155 = vmatmul.msk.bf16.gmra.mxu2 %vm3913_vm7, %v6349_v39  ;;  %v3798_v39 = vor.u32 %v3797_v50, %v3794_v61  ;;  %v4198_v23 = vunpack.c.l.b16 %v4165_v54  ;;  %v3813_v35 = vrot.slane %v3811_v4, 5  ;;  %v3829_v46 = vshrl.u32 %v3681_v15, 16  ;;  %v4113_v61 = vld [vmem:[#allocation3 + $0x48] sm:$0xe] }
 0x368   : > { %v3809_v59 = vrot.slane %v3808_v36, 4  ;;  %v4168_v33 = vrot.slane %v3681_v15, 5  ;;  %v6166_v53 = vrot.slane %v4112_v60, 9  ;;  %v3818_v37 = vrot.slane %v3816_v58, 4  ;;  %v3685_v60 = vld [vmem:[#allocation3 + $0x58] sm:$0xf] }
 0x369   : > { %v3799_v27 = vrot.slane %v3798_v39, 4  ;;  %v3821_v7 = vrot.slane %v3819_v10, 5  ;;  %v3827_v14 = vrot.slane %v3825_v21, 5  ;;  %v3831_v47 = vrot.slane %v3829_v46, 4  ;;  %v3684_v58 = vld [vmem:[#allocation3 + $0x54] sm:$0xf] }
 0x36a   : > { %v3814_v56 = vsel %vm6752_vm13, %v3809_v59, %v3813_v35  ;;  %v4170_v55 = vrot.slane %v4168_v33, 4  ;;  %v4169_v19 = vsel %vm6789_vm1, %v6166_v53, %v4168_v33  ;;  %v3835_v25 = vshll.u32 %v3692_v57, 16  ;;  %v6353_v59 = vld [vmem:[#allocation3 + $0x48] sm:$0xff] }
 0x36b   : > { %v3804_v44 = vsel %vm6752_vm13, %v3799_v27, %v3803_v30  ;;  %v3898_v49 = vunpack.c.l.b16 %v3814_v56  ;;  %v3832_v48 = vor.u32 %v3831_v47, %v3827_v14  ;;  %v4199_v5 = vunpack.c.l.b16 %v4169_v19  ;;  %v4456_v33 = vld [vmem:[#allocation3 + $0xc] sm:$0xf]  ;;  %v6303_v19 = vld [vmem:[%s8369_s3 + $0x20] sm:$0xf] }
 0x36c   : > { %v3897_v6 = vunpack.c.l.b16 %v3804_v44  ;;  %v3837_v45 = vrot.slane %v3835_v25, 5  ;;  %v3840_v24 = vshrl.u32 %v3682_v13, 16  ;;  %v3843_v8 = vshll.u32 %v3682_v13, 16 }
 0x36d   : > { %6172 = vmatmul.msk.bf16.gmra.mxu3 %vm3913_vm7, %v4207_v26  ;;  %v4209_v26 = vpack.c.b16 %v4198_v23, %v4197_v52  ;;  %v3833_v16 = vrot.slane %v3832_v48, 4  ;;  %v3849_v40 = vshll.u32 %v3683_v17, 16  ;;  %v4175_v42 = vrot.slane %v3683_v17, 5 }
 0x36e   : > { %v3909_v41 = vpack.c.b16 %v3898_v49, %v3897_v6  ;;  %v3842_v50 = vrot.slane %v3840_v24, 4  ;;  %v3845_v30 = vrot.slane %v3843_v8, 5  ;;  %v6167_v18 = vrot.slane %v4113_v61, 9 }
 0x36f   : > { %v3838_v28 = vsel %vm6752_vm13, %v3833_v16, %v3837_v45  ;;  %v3851_v3 = vrot.slane %v3849_v40, 5  ;;  %v4177_v39 = vrot.slane %v4175_v42, 4  ;;  %v4178_v36 = vrot.slane %v3693_v29, 5 }
 0x370   : > { %v3846_v4 = vor.u32 %v3845_v30, %v3842_v50  ;;  %v4176_v23 = vsel %vm6789_vm1, %v6167_v18, %v4175_v42  ;;  %v3867_v6 = vshll.u32 %v3684_v58, 16  ;;  %v3873_v49 = vshll.u32 %v3685_v60, 16  ;;  %v4458_v42 = vld [vmem:[#allocation3 + $0x14] sm:$0x1] }
 0x371   : > { %v4179_v27 = vsel %vm6789_vm1, %v4177_v39, %v4178_v36  ;;  %v4201_v44 = vunpack.c.l.b16 %v4176_v23  ;;  %v3877_v53 = vshrl.u32 %v3685_v60, 16  ;;  %v4484_v48 = vshll.u32 %v4456_v33, 16  ;;  %v6354_v30 = vld [vmem:[#allocation3 + $0x54] sm:$0xff]  ;;  %v6286_v36 = vld [vmem:[%s8369_s3 + $0x1c] sm:$0xf] }
 0x372   : > { %v3847_v35 = vrot.slane %v3846_v4, 4  ;;  %v4202_v56 = vunpack.c.l.b16 %v4179_v27  ;;  %v3875_v13 = vrot.slane %v3873_v49, 5  ;;  %v6245_v4 = vld [vmem:[%s8369_s3 + $0x18] sm:$0xf] }
 0x373   : > { %v4486_v40 = vrot.slane %v4484_v48, 5  ;;  %v5080_v23 = vsel %vm3938_vm0, %v6245_v4, 0 }
 0x374   : > { %6115 = vmatmul.msk.bf16.gmra.mxu1 %vm3913_vm7, %v3907_v2  ;;  %v4171_v2 = vrot.slane %v3692_v57, 5  ;;  %v3852_v21 = vsel %vm6752_vm13, %v3847_v35, %v3851_v3  ;;  %v3864_v57 = vshrl.u32 %v3684_v58, 16  ;;  %5089 = vmatpush.bf16.msra.mxu0 %v5080_v23 }
 0x376   : > { %v4172_v20 = vsel %vm6789_vm1, %v4170_v55, %v4171_v2  ;;  %v3694_v55 = vld [vmem:[#allocation3 + $0x5c] sm:$0x1]  ;;  %v4182_v2 = vrot.slane %v3685_v60, 5 }
 0x377   : > { %6156 = vmatmul.msk.bf16.gmra.mxu2 %vm3913_vm7, %v6350_v34  ;;  %v3822_v34 = vor.u32 %v3821_v7, %v3818_v37  ;;  %v4200_v62 = vunpack.c.l.b16 %v4172_v20  ;;  %v7961_v37 = vld [vmem:[#allocation3 + $0x10] sm:$0xf]  ;;  %v4211_v7 = vpack.c.b16 %v4202_v56, %v4201_v44  ;;  %v4185_v45 = vrot.slane %v3694_v55, 5  ;;  %v4459_v56 = vld [vmem:[#allocation3 + $0x18] sm:$0xf] }
 0x378   : > { %v4490_v25 = vshll.u32 %v7961_v37, 16  ;;  %v4494_v20 = vshrl.u32 %v7961_v37, 16  ;;  %v4184_v16 = vrot.slane %v4182_v2, 4  ;;  %v3883_v24 = vshll.u32 %v3694_v55, 16  ;;  %v7988_v60 = vld [vmem:[#allocation3 + $0x1c] sm:$0xf] }
 0x379   : > { %v3823_v22 = vrot.slane %v3822_v34, 4  ;;  %v4210_v51 = vpack.c.b16 %v4200_v62, %v4199_v5  ;;  %v4114_v34 = vld [vmem:[#allocation3 + $0x54] sm:$0xe]  ;;  %v3866_v5 = vrot.slane %v3864_v57, 4  ;;  %v3879_v62 = vrot.slane %v3877_v53, 4 }
 0x37a   : > { %v4186_v50 = vsel %vm6789_vm1, %v4184_v16, %v4185_v45  ;;  %v4824_v58 = vrot.slane %v7961_v37, 5  ;;  %v4790_v57 = vld [vmem:[#allocation3 + $0xc] sm:$0xe]  ;;  %v4508_v49 = vshll.u32 %v4459_v56, 16  ;;  %v4514_v53 = vshll.u32 %v7988_v60, 16 }
 0x37b   : > { %v3828_v0 = vsel %vm6752_vm13, %v3823_v22, %v3827_v14  ;;  %v3901_v14 = vunpack.c.l.b16 %v3852_v21  ;;  %v6168_v22 = vrot.slane %v4114_v34, 9  ;;  %v6228_v37 = vrot.slane %v4790_v57, 9 }
 0x37c   : > { %v3899_v31 = vunpack.c.l.b16 %v3828_v0  ;;  %v4510_v34 = vrot.slane %v4508_v49, 5  ;;  %v4516_v48 = vrot.slane %v4514_v53, 5 }
 0x37d   : > { %6173 = vmatmul.msk.bf16.gmra.mxu3 %vm3913_vm7, %v4208_v9  ;;  %v3853_v9 = vshrl.u32 %v3683_v17, 16  ;;  %v3869_v17 = vrot.slane %v3867_v6, 5  ;;  %v4183_v61 = vsel %vm6789_vm1, %v6168_v22, %v4182_v2  ;;  %v4505_v6 = vshrl.u32 %v4459_v56, 16 }
 0x37f   : > { %v3855_v11 = vrot.slane %v3853_v9, 4  ;;  %v4492_v9 = vrot.slane %v4490_v25, 5 }
 0x381   : > { %v3856_v54 = vor.u32 %v3855_v11, %v3851_v3  ;;  %v3885_v3 = vrot.slane %v3883_v24, 5  ;;  %v4462_v24 = vld [vmem:[#allocation3 + $0x24] sm:$0xf] }
 0x383   : > { %v3857_v15 = vrot.slane %v3856_v54, 4  ;;  %v4203_v54 = vunpack.c.l.b16 %v4183_v61  ;;  %v4791_v61 = vld [vmem:[#allocation3 + $0x18] sm:$0xe] }
 0x384   : > { %6116 = vmatmul.msk.bf16.gmra.mxu1 %vm3913_vm7, %v3908_v38  ;;  %v3900_v38 = vunpack.c.l.b16 %v3838_v28  ;;  %v3870_v28 = vor.u32 %v3869_v17, %v3866_v5 }
 0x386   : > { %v3910_v52 = vpack.c.b16 %v3900_v38, %v3899_v31  ;;  %v4500_v38 = vshll.u32 %v4458_v42, 16  ;;  %v3871_v18 = vrot.slane %v3870_v28, 4 }
 0x387   : > { %6157 = vmatmul.msk.bf16.gmra.mxu2 %vm3913_vm7, %v6351_v63  ;;  %v3859_v63 = vshll.u32 %v3693_v29, 16  ;;  %v3880_v29 = vor.u32 %v3879_v62, %v3875_v13 }
 0x388   : > { %v4502_v35 = vrot.slane %v4500_v38, 5 }
 0x389   : > { %v3861_v1 = vrot.slane %v3859_v63, 5  ;;  %v3881_v39 = vrot.slane %v3880_v29, 4  ;;  %v4204_v63 = vunpack.c.l.b16 %v4186_v50  ;;  %v4831_v29 = vrot.slane %v7988_v60, 5 }
 0x38a   : > { %v4529_v50 = vshrl.u32 %v4462_v24, 16 }
 0x38b   : > { %v3862_v46 = vsel %vm6752_vm13, %v3857_v15, %v3861_v1  ;;  %v3876_v15 = vsel %vm6752_vm13, %v3871_v18, %v3875_v13  ;;  %v3886_v1 = vsel %vm6752_vm13, %v3881_v39, %v3885_v3  ;;  %v4212_v44 = vpack.c.b16 %v4204_v63, %v4203_v54 }
 0x38c   : > { %v3902_v47 = vunpack.c.l.b16 %v3862_v46  ;;  %v3904_v21 = vunpack.c.l.b16 %v3886_v1  ;;  %v6229_v18 = vrot.slane %v4791_v61, 9  ;;  %v4833_v39 = vrot.slane %v4831_v29, 4  ;;  %v4467_v61 = vld [vmem:[#allocation3 + $0x38] sm:$0x1] }
 0x38d   : > { %6174 = vmatmul.msk.bf16.gmra.mxu3 %vm3913_vm7, %v4209_v26  ;;  %v6236_v26 = vld [vmem:[%s8369_s3 + $0x14] sm:$0xf]  ;;  %v4531_v4 = vrot.slane %v4529_v50, 4 }
 0x38e   : > { %v4929_v10 = vsel %vm3938_vm0, %v6236_v26, 0  ;;  %v3911_v0 = vpack.c.b16 %v3902_v47, %v3901_v14  ;;  %v6363_v26 = vld [vmem:[#allocation3 + $0x18] sm:$0xff]  ;;  %v4826_v14 = vrot.slane %v4824_v58, 4  ;;  %v4827_v47 = vrot.slane %v4458_v42, 5 }
 0x38f   : > { %4938 = vmatpush.bf16.msra.mxu3 %v4929_v10  ;;  %6278 = vmatmul.msk.bf16.vlgmr.msra.gmra.mxu0 %vm3913_vm7, %v6363_v26  ;;  %v3903_v10 = vunpack.c.l.b16 %v3876_v15  ;;  %v6355_v15 = vld [vmem:[#allocation3 + $0xc] sm:$0xff]  ;;  %v4832_v26 = vsel %vm6789_vm1, %v6229_v18, %v4831_v29 }
 0x390   : > { %v4828_v5 = vsel %vm6789_vm1, %v4826_v14, %v4827_v47  ;;  %v4882_v57 = vunpack.c.l.b16 %v4832_v26  ;;  %v6365_v14 = vld [vmem:[#allocation3 + $0x30] sm:$0xff] }
 0x391   : > { %v3912_v55 = vpack.c.b16 %v3904_v21, %v3903_v10  ;;  %v4881_v45 = vunpack.c.l.b16 %v4828_v5  ;;  %v4465_v47 = vld [vmem:[#allocation3 + $0x30] sm:$0xf] }
 0x392   : > { %v4553_v5 = vshrl.u32 %v4465_v47, 16 }
 0x394   : > { %6117 = vmatmul.msk.bf16.gmra.mxu1 %vm3913_vm7, %v3909_v41  ;;  %v4481_v41 = vshrl.u32 %v4456_v33, 16 }
 0x396   : > { %v4483_v8 = vrot.slane %v4481_v41, 4 }
 0x397   : > { %6158 = vmatmul.msk.bf16.gmra.mxu2 %vm3913_vm7, %v6352_v12  ;;  %v5620_v12 = vsel %vm3938_vm0, %v6303_v19, 0  ;;  %v4507_v19 = vrot.slane %v4505_v6, 4 }
 0x398   : > { %5629 = vmatpush.bf16.msra.mxu2 %v5620_v12  ;;  %v4487_v11 = vor.u32 %v4486_v40, %v4483_v8  ;;  %v4825_v12 = vsel %vm6789_vm1, %v6228_v37, %v4824_v58  ;;  %v8005_v8 = vld [vmem:[#allocation3 + $0x28] sm:$0xf] }
 0x399   : > { %v4511_v13 = vor.u32 %v4510_v34, %v4507_v19  ;;  %v4880_v16 = vunpack.c.l.b16 %v4825_v12  ;;  %v4538_v3 = vshll.u32 %v8005_v8, 16  ;;  %v4792_v12 = vld [vmem:[#allocation3 + $0x24] sm:$0xe] }
 0x39a   : > { %v4488_v27 = vrot.slane %v4487_v11, 4  ;;  %v4542_v11 = vshrl.u32 %v8005_v8, 16 }
 0x39b   : > { %v4512_v40 = vrot.slane %v4511_v13, 4  ;;  %v4896_v28 = vpack.c.b16 %v4881_v45, %v4880_v16  ;;  %v4540_v63 = vrot.slane %v4538_v3, 5 }
 0x39c   : > { %v4493_v46 = vsel %vm6752_vm13, %v4488_v27, %v4492_v9 }
 0x39d   : > { %6175 = vmatmul.msk.bf16.gmra.mxu3 %vm3913_vm7, %v4210_v51  ;;  %v4496_v51 = vrot.slane %v4494_v20, 4  ;;  %v4674_v2 = vunpack.c.l.b16 %v4493_v46  ;;  %v4461_v20 = vld [vmem:[#allocation3 + $0x20] sm:$0x1] }
 0x39e   : > { %v4524_v22 = vshll.u32 %v4461_v20, 16 }
 0x39f   : > { %v4497_v31 = vor.u32 %v4496_v51, %v4492_v9 }
 0x3a0   : > { %v4526_v51 = vrot.slane %v4524_v22, 5 }
 0x3a4   : > { %6118 = vmatmul.msk.bf16.gmra.mxu1 %vm3913_vm7, %v3910_v52  ;;  %v5414_v52 = vsel %vm3938_vm0, %v6286_v36, 0  ;;  %v4834_v36 = vrot.slane %v4461_v20, 5  ;;  %v4838_v20 = vrot.slane %v8005_v8, 5 }
 0x3a5   : > { %5423 = vmatpush.bf16.msra.mxu1 %v5414_v52  ;;  %v4544_v52 = vrot.slane %v4542_v11, 4 }
 0x3a7   : > { %6159 = vmatmul.msk.bf16.gmra.mxu2 %vm3913_vm7, %v6353_v59  ;;  %v4498_v59 = vrot.slane %v4497_v31, 4  ;;  %v4517_v31 = vsel %vm6752_vm13, %v4512_v40, %v4516_v48  ;;  %v4545_v10 = vor.u32 %v4544_v52, %v4540_v63  ;;  %v4840_v40 = vrot.slane %v4838_v20, 4 }
 0x3a8   : > { %v4676_v23 = vunpack.c.l.b16 %v4517_v31 }
 0x3a9   : > { %v4503_v33 = vsel %vm6752_vm13, %v4498_v59, %v4502_v35  ;;  %v4464_v59 = vld [vmem:[#allocation3 + $0x2c] sm:$0x1]  ;;  %v4546_v53 = vrot.slane %v4545_v10, 4 }
 0x3aa   : > { %v4675_v41 = vunpack.c.l.b16 %v4503_v33  ;;  %v4548_v21 = vshll.u32 %v4464_v59, 16 }
 0x3ac   : > { %v4690_v17 = vpack.c.b16 %v4675_v41, %v4674_v2 }
 0x3ad   : > { %6176 = vmatmul.msk.bf16.gmra.mxu3 %vm3913_vm7, %v4211_v7  ;;  %v4518_v7 = vshrl.u32 %v7988_v60, 16 }
 0x3af   : > { %v4520_v25 = vrot.slane %v4518_v7, 4  ;;  %v4550_v7 = vrot.slane %v4548_v21, 5 }
 0x3b1   : > { %v4521_v62 = vor.u32 %v4520_v25, %v4516_v48  ;;  %v4551_v25 = vsel %vm6752_vm13, %v4546_v53, %v4550_v7 }
 0x3b2   : > { %v4679_v45 = vunpack.c.l.b16 %v4551_v25 }
 0x3b3   : > { %v4522_v9 = vrot.slane %v4521_v62, 4 }
 0x3b4   : > { %6119 = vmatmul.msk.bf16.gmra.mxu1 %vm3913_vm7, %v3911_v0  ;;  %v6364_v0 = vld [vmem:[#allocation3 + $0x24] sm:$0xff] }
 0x3b5   : > { %6279 = vmatmul.msk.bf16.gmra.mxu0 %vm3913_vm7, %v6364_v0  ;;  %v4527_v38 = vsel %vm6752_vm13, %v4522_v9, %v4526_v51  ;;  %v4841_v9 = vrot.slane %v4464_v59, 5  ;;  %v4555_v51 = vrot.slane %v4553_v5, 4  ;;  %v4470_v5 = vld [vmem:[#allocation3 + $0x44] sm:$0x1] }
 0x3b6   : > { %v4677_v27 = vunpack.c.l.b16 %v4527_v38 }
 0x3b7   : > { %6160 = vmatmul.msk.bf16.gmra.mxu2 %vm3913_vm7, %v6354_v30  ;;  %v4532_v30 = vshll.u32 %v4462_v24, 16  ;;  %v6230_v24 = vrot.slane %v4792_v12, 9  ;;  %v4842_v31 = vsel %vm6789_vm1, %v4840_v40, %v4841_v9 }
 0x3b8   : > { %v4691_v46 = vpack.c.b16 %v4677_v27, %v4676_v23 }
 0x3b9   : > { %v4534_v54 = vrot.slane %v4532_v30, 5  ;;  %v4839_v11 = vsel %vm6789_vm1, %v6230_v24, %v4838_v20 }
 0x3bb   : > { %v4535_v58 = vor.u32 %v4534_v54, %v4531_v4  ;;  %v4884_v54 = vunpack.c.l.b16 %v4839_v11 }
 0x3bd   : > { %6177 = vmatmul.msk.bf16.gmra.mxu3 %vm3913_vm7, %v4212_v44  ;;  %v4835_v44 = vsel %vm6789_vm1, %v4833_v39, %v4834_v36  ;;  %v4536_v49 = vrot.slane %v4535_v58, 4  ;;  %v4572_v36 = vshll.u32 %v4467_v61, 16 }
 0x3be   : > { %v4883_v6 = vunpack.c.l.b16 %v4835_v44  ;;  %v8045_v44 = vld [vmem:[#allocation3 + $0x40] sm:$0xf] }
 0x3bf   : > { %v4541_v48 = vsel %vm6752_vm13, %v4536_v49, %v4540_v63  ;;  %v4885_v63 = vunpack.c.l.b16 %v4842_v31  ;;  %v4574_v27 = vrot.slane %v4572_v36, 5  ;;  %v4586_v53 = vshll.u32 %v8045_v44, 16 }
 0x3c0   : > { %v4897_v41 = vpack.c.b16 %v4883_v6, %v4882_v57  ;;  %v4678_v16 = vunpack.c.l.b16 %v4541_v48  ;;  %v4590_v7 = vshrl.u32 %v8045_v44, 16 }
 0x3c1   : > { %v4898_v26 = vpack.c.b16 %v4885_v63, %v4884_v54  ;;  %v4588_v25 = vrot.slane %v4586_v53, 5  ;;  %v4794_v54 = vld [vmem:[#allocation3 + $0x3c] sm:$0xe] }
 0x3c2   : > { %v4692_v38 = vpack.c.b16 %v4679_v45, %v4678_v16  ;;  %v4592_v20 = vrot.slane %v4590_v7, 4 }
 0x3c4   : > { %6120 = vmatmul.msk.bf16.gmra.mxu1 %vm3913_vm7, %v3912_v55  ;;  %v8024_v55 = vld [vmem:[#allocation3 + $0x34] sm:$0xf]  ;;  %v4593_v9 = vor.u32 %v4592_v20, %v4588_v25 }
 0x3c5   : > { %6280 = vmatmul.msk.bf16.gmra.mxu0 %vm3913_vm7, %v6365_v14  ;;  %v4562_v13 = vshll.u32 %v8024_v55, 16  ;;  %v4566_v62 = vshrl.u32 %v8024_v55, 16  ;;  %v4845_v58 = vrot.slane %v8024_v55, 5 }
 0x3c7   : > { %6220 = vmatmul.msk.bf16.vlgmr.msrb.gmra.mxu2 %vm3913_vm7, %v4690_v17  ;;  %v4556_v17 = vshll.u32 %v4465_v47, 16  ;;  %v4564_v0 = vrot.slane %v4562_v13, 5  ;;  %v4847_v14 = vrot.slane %v4845_v58, 4  ;;  %v4848_v47 = vrot.slane %v4467_v61, 5 }
 0x3c9   : > { %v4558_v8 = vrot.slane %v4556_v17, 5  ;;  %v4849_v16 = vsel %vm6789_vm1, %v4847_v14, %v4848_v47 }
 0x3ca   : > { %v4067_v42 = vpop.f32.mrf.mxu2 }
 0x3cb   : > { %v4559_v18 = vor.u32 %v4558_v8, %v4555_v51  ;;  %v4596_v51 = vshll.u32 %v4470_v5, 16 }
 0x3cd   : > { %6237 = vmatmul.msk.bf16.vlgmr.msra.gmra.mxu3 %vm3913_vm7, %v4896_v28  ;;  %v4568_v28 = vrot.slane %v4566_v62, 4  ;;  %v4560_v52 = vrot.slane %v4559_v18, 4 }
 0x3cf   : > { %v4569_v39 = vor.u32 %v4568_v28, %v4564_v0  ;;  %v4565_v10 = vsel %vm6752_vm13, %v4560_v52, %v4564_v0  ;;  %v4887_v0 = vunpack.c.l.b16 %v4849_v16  ;;  %v4471_v28 = vld [vmem:[#allocation3 + $0x48] sm:$0xf]  ;;  %v8087_v16 = vld [vmem:[#allocation3 + $0x58] sm:$0xf] }
 0x3d0   : > { %v4249_v35 = vpop.f32.mrf.mxu3  ;;  %v4680_v55 = vunpack.c.l.b16 %v4565_v10  ;;  %v4601_v18 = vshrl.u32 %v4471_v28, 16  ;;  %v4604_v63 = vshll.u32 %v4471_v28, 16 }
 0x3d1   : > { %v3951_v1 = vpop.f32.mrf.mxu1  ;;  %v4570_v23 = vrot.slane %v4569_v39, 4 }
 0x3d2   : > { %v4068_v56 = vadd.f32 %v4067_v42, %v3951_v1  ;;  %v4069_v60 = vpop.f32.mrf.mxu2  ;;  %v6356_v42 = vld [vmem:[#allocation3 + $0x18] sm:$0xff] }
 0x3d3   : > { %v4575_v21 = vsel %vm6752_vm13, %v4570_v23, %v4574_v27 }
 0x3d4   : > { %v8020_v33 = vadd.f32 %v4249_v35, %v4068_v56  ;;  %6211 = vmatmul.msk.bf16.vlgmr.msrb.gmra.mxu1 %vm3913_vm7, %v6355_v15  ;;  %v6366_v35 = vld [vmem:[#allocation3 + $0x3c] sm:$0xff] }
 0x3d5   : > { %v4468_v15 = vld [vmem:[#allocation3 + $0x3c] sm:$0xf]  ;;  %6281 = vmatmul.msk.bf16.gmra.mxu0 %vm3913_vm7, %v6366_v35 }
 0x3d6   : > { %v4577_v57 = vshrl.u32 %v4468_v15, 16  ;;  %v4580_v49 = vshll.u32 %v4468_v15, 16  ;;  %v6232_v15 = vrot.slane %v4794_v54, 9 }
 0x3d7   : > { %6221 = vmatmul.msk.bf16.gmra.mxu2 %vm3913_vm7, %v4691_v46  ;;  %v4793_v46 = vld [vmem:[#allocation3 + $0x30] sm:$0xe] }
 0x3d8   : > { %v4251_v37 = vpop.f32.mrf.mxu3  ;;  %v4582_v48 = vrot.slane %v4580_v49, 5  ;;  %v6358_v49 = vld [vmem:[#allocation3 + $0x30] sm:$0xff] }
 0x3d9   : > { %v3953_v2 = vpop.f32.mrf.mxu1 }
 0x3da   : > { %v4070_v19 = vadd.f32 %v4069_v60, %v3953_v2  ;;  %v4072_v34 = vpop.f32.mrf.mxu2  ;;  %v4681_v2 = vunpack.c.l.b16 %v4575_v21 }
 0x3dc   : > { %v8034_v22 = vadd.f32 %v4251_v37, %v4070_v19  ;;  %v6231_v37 = vrot.slane %v4793_v46, 9  ;;  %v6357_v19 = vld [vmem:[#allocation3 + $0x24] sm:$0xff]  ;;  %v4693_v45 = vpack.c.b16 %v4681_v2, %v4680_v55  ;;  %v4473_v46 = vld [vmem:[#allocation3 + $0x50] sm:$0x1] }
 0x3dd   : > { %6238 = vmatmul.msk.bf16.gmra.mxu3 %vm3913_vm7, %v4897_v41 }
 0x3de   : > { %v4846_v62 = vsel %vm6789_vm1, %v6231_v37, %v4845_v58 }
 0x3df   : > { %v4886_v8 = vunpack.c.l.b16 %v4846_v62  ;;  %v4474_v62 = vld [vmem:[#allocation3 + $0x54] sm:$0xf] }
 0x3e0   : > { %v4254_v29 = vpop.f32.mrf.mxu3 }
 0x3e1   : > { %v3956_v50 = vpop.f32.mrf.mxu1  ;;  %v4899_v31 = vpack.c.b16 %v4887_v0, %v4886_v8 }
 0x3e2   : > { %v4073_v30 = vadd.f32 %v4072_v34, %v3956_v50  ;;  %v4074_v3 = vpop.f32.mrf.mxu2  ;;  %v4579_v34 = vrot.slane %v4577_v57, 4  ;;  %v4594_v50 = vrot.slane %v4593_v9, 4 }
 0x3e4   : > { %v8041_v4 = vadd.f32 %v4254_v29, %v4073_v30  ;;  %6212 = vmatmul.msk.bf16.gmra.mxu1 %vm3913_vm7, %v6356_v42  ;;  %v4583_v40 = vor.u32 %v4582_v48, %v4579_v34  ;;  %v8066_v29 = vld [vmem:[#allocation3 + $0x4c] sm:$0xf]  ;;  %v4598_v30 = vrot.slane %v4596_v51, 5 }
 0x3e5   : > { %v4610_v52 = vshll.u32 %v8066_v29, 16  ;;  %v4614_v23 = vshrl.u32 %v8066_v29, 16  ;;  %v4859_v28 = vrot.slane %v8066_v29, 5 }
 0x3e6   : > { %v4584_v61 = vrot.slane %v4583_v40, 4  ;;  %v4599_v35 = vsel %vm6752_vm13, %v4594_v50, %v4598_v30  ;;  %v4628_v50 = vshll.u32 %v4474_v62, 16  ;;  %v4634_v30 = vshll.u32 %v8087_v16, 16 }
 0x3e7   : > { %6222 = vmatmul.msk.bf16.gmra.mxu2 %vm3913_vm7, %v4692_v38  ;;  %v4852_v38 = vrot.slane %v8045_v44, 5  ;;  %v4603_v44 = vrot.slane %v4601_v18, 4  ;;  %v4616_v58 = vrot.slane %v4614_v23, 4  ;;  %v4683_v21 = vunpack.c.l.b16 %v4599_v35  ;;  %v4476_v35 = vld [vmem:[#allocation3 + $0x5c] sm:$0x1] }
 0x3e8   : > { %v4256_v59 = vpop.f32.mrf.mxu3  ;;  %v4630_v29 = vrot.slane %v4628_v50, 5 }
 0x3e9   : > { %v3958_v1 = vpop.f32.mrf.mxu1  ;;  %v4853_v7 = vsel %vm6789_vm1, %v6232_v15, %v4852_v38 }
 0x3ea   : > { %v4075_v56 = vadd.f32 %v4074_v3, %v3958_v1  ;;  %v4077_v60 = vpop.f32.mrf.mxu2  ;;  %v6367_v3 = vld [vmem:[#allocation3 + $0x48] sm:$0xff]  ;;  %v4854_v1 = vrot.slane %v4852_v38, 4  ;;  %v4888_v48 = vunpack.c.l.b16 %v4853_v7 }
 0x3eb   : > { %6282 = vmatmul.msk.bf16.gmra.mxu0 %vm3913_vm7, %v6367_v3  ;;  %v4638_v3 = vshrl.u32 %v8087_v16, 16 }
 0x3ec   : > { %v8053_v6 = vadd.f32 %v4256_v59, %v4075_v56  ;;  %v4589_v59 = vsel %vm6752_vm13, %v4584_v61, %v4588_v25  ;;  %v4606_v56 = vrot.slane %v4604_v63, 5  ;;  %v4625_v61 = vshrl.u32 %v4474_v62, 16 }
 0x3ed   : > { %6239 = vmatmul.msk.bf16.gmra.mxu3 %vm3913_vm7, %v4898_v26  ;;  %v4855_v26 = vrot.slane %v4470_v5, 5  ;;  %v4682_v10 = vunpack.c.l.b16 %v4589_v59  ;;  %v4636_v63 = vrot.slane %v4634_v30, 5  ;;  %v6359_v59 = vld [vmem:[#allocation3 + $0x3c] sm:$0xff] }
 0x3ee   : > { %v4607_v55 = vor.u32 %v4606_v56, %v4603_v44  ;;  %v4627_v54 = vrot.slane %v4625_v61, 4  ;;  %v6360_v61 = vld [vmem:[#allocation3 + $0x48] sm:$0xff] }
 0x3ef   : > { %v4856_v37 = vsel %vm6789_vm1, %v4854_v1, %v4855_v26 }
 0x3f0   : > { %v4259_v41 = vpop.f32.mrf.mxu3  ;;  %v4889_v25 = vunpack.c.l.b16 %v4856_v37  ;;  %v4608_v20 = vrot.slane %v4607_v55, 4  ;;  %v4477_v55 = vld [vmem:[#allocation3 + $0x60] sm:$0xf] }
 0x3f1   : > { %v3961_v12 = vpop.f32.mrf.mxu1 }
 0x3f2   : > { %v4078_v17 = vadd.f32 %v4077_v60, %v3961_v12  ;;  %v4079_v13 = vpop.f32.mrf.mxu2  ;;  %v4612_v60 = vrot.slane %v4610_v52, 5  ;;  %v4900_v40 = vpack.c.b16 %v4889_v25, %v4888_v48  ;;  %v4640_v52 = vrot.slane %v4638_v3, 4 }
 0x3f4   : > { %v8062_v24 = vadd.f32 %v4259_v41, %v4078_v17  ;;  %6213 = vmatmul.msk.bf16.gmra.mxu1 %vm3913_vm7, %v6357_v19  ;;  %v4617_v2 = vor.u32 %v4616_v58, %v4612_v60  ;;  %v4620_v41 = vshll.u32 %v4473_v46, 16  ;;  %v4694_v19 = vpack.c.b16 %v4683_v21, %v4682_v10 }
 0x3f5   : > { %v4613_v8 = vsel %vm6752_vm13, %v4608_v20, %v4612_v60  ;;  %v4631_v58 = vor.u32 %v4630_v29, %v4627_v54  ;;  %v4641_v10 = vor.u32 %v4640_v52, %v4636_v63  ;;  %v4644_v21 = vshll.u32 %v4476_v35, 16 }
 0x3f6   : > { %v4618_v12 = vrot.slane %v4617_v2, 4  ;;  %v4622_v5 = vrot.slane %v4620_v41, 5  ;;  %v4866_v20 = vrot.slane %v8087_v16, 5 }
 0x3f7   : > { %6223 = vmatmul.msk.bf16.gmra.mxu2 %vm3913_vm7, %v4693_v45  ;;  %v4642_v7 = vrot.slane %v4641_v10, 4  ;;  %v4646_v37 = vrot.slane %v4644_v21, 5 }
 0x3f8   : > { %v4261_v42 = vpop.f32.mrf.mxu3  ;;  %v4623_v0 = vsel %vm6752_vm13, %v4618_v12, %v4622_v5 }
 0x3f9   : > { %v3963_v11 = vpop.f32.mrf.mxu1  ;;  %v4685_v38 = vunpack.c.l.b16 %v4623_v0  ;;  %v4647_v5 = vsel %vm6752_vm13, %v4642_v7, %v4646_v37  ;;  %v4797_v7 = vld [vmem:[#allocation3 + $0x60] sm:$0xe] }
 0x3fa   : > { %v4080_v39 = vadd.f32 %v4079_v13, %v3963_v11  ;;  %v4082_v36 = vpop.f32.mrf.mxu2  ;;  %v6368_v13 = vld [vmem:[#allocation3 + $0x54] sm:$0xff] }
 0x3fb   : > { %6283 = vmatmul.msk.bf16.gmra.mxu0 %vm3913_vm7, %v6368_v13  ;;  %v4649_v13 = vshrl.u32 %v4477_v55, 16 }
 0x3fc   : > { %v8072_v27 = vadd.f32 %v4261_v42, %v4080_v39  ;;  %v4795_v42 = vld [vmem:[#allocation3 + $0x48] sm:$0xe]  ;;  %v4861_v39 = vrot.slane %v4859_v28, 4 }
 0x3fd   : > { %6240 = vmatmul.msk.bf16.gmra.mxu3 %vm3913_vm7, %v4899_v31  ;;  %v4684_v31 = vunpack.c.l.b16 %v4613_v8  ;;  %v6233_v18 = vrot.slane %v4795_v42, 9  ;;  %v4869_v8 = vrot.slane %v4476_v35, 5  ;;  %v4651_v50 = vrot.slane %v4649_v13, 4 }
 0x3ff   : > { %v4860_v44 = vsel %vm6789_vm1, %v6233_v18, %v4859_v28  ;;  %v4695_v60 = vpack.c.b16 %v4685_v38, %v4684_v31  ;;  %v4687_v28 = vunpack.c.l.b16 %v4647_v5  ;;  %v4479_v18 = vld [vmem:[#allocation3 + $0x68] sm:$0x1]  ;;  %v5148_v5 = vld [vmem:[#allocation3 + $0x1c] sm:$0xf] }
 0x400   : > { %v4264_v57 = vpop.f32.mrf.mxu3  ;;  %v4668_v35 = vshll.u32 %v4479_v18, 16 }
 0x401   : > { %v3966_v53 = vpop.f32.mrf.mxu1 }
 0x402   : > { %v4083_v14 = vadd.f32 %v4082_v36, %v3966_v53  ;;  %v4084_v47 = vpop.f32.mrf.mxu2  ;;  %v4862_v36 = vrot.slane %v4473_v46, 5  ;;  %v4632_v53 = vrot.slane %v4631_v58, 4  ;;  %v6370_v58 = vld [vmem:[#allocation3 + $0x6c] sm:$0xff] }
 0x404   : > { %v8083_v34 = vadd.f32 %v4264_v57, %v4083_v14  ;;  %6214 = vmatmul.msk.bf16.gmra.mxu1 %vm3913_vm7, %v6358_v49  ;;  %v4863_v56 = vsel %vm6789_vm1, %v4861_v39, %v4862_v36  ;;  %v4890_v57 = vunpack.c.l.b16 %v4860_v44  ;;  %v4637_v12 = vsel %vm6752_vm13, %v4632_v53, %v4636_v63 }
 0x405   : > { %v4891_v49 = vunpack.c.l.b16 %v4863_v56  ;;  %v4686_v0 = vunpack.c.l.b16 %v4637_v12 }
 0x407   : > { %6224 = vmatmul.msk.bf16.gmra.mxu2 %vm3913_vm7, %v4694_v19  ;;  %v4901_v41 = vpack.c.b16 %v4891_v49, %v4890_v57  ;;  %v8108_v19 = vld [vmem:[#allocation3 + $0x64] sm:$0xf]  ;;  %v4696_v63 = vpack.c.b16 %v4687_v28, %v4686_v0 }
 0x408   : > { %v4266_v17 = vpop.f32.mrf.mxu3  ;;  %v4873_v53 = vrot.slane %v8108_v19, 5 }
 0x409   : > { %v3968_v45 = vpop.f32.mrf.mxu1 }
 0x40a   : > { %v4085_v9 = vadd.f32 %v4084_v47, %v3968_v45  ;;  %v4087_v51 = vpop.f32.mrf.mxu2  ;;  %v6369_v47 = vld [vmem:[#allocation3 + $0x60] sm:$0xff]  ;;  %v4652_v45 = vshll.u32 %v4477_v55, 16  ;;  %v6235_v55 = vrot.slane %v4797_v7, 9 }
 0x40b   : > { %6284 = vmatmul.msk.bf16.gmra.mxu0 %vm3913_vm7, %v6369_v47 }
 0x40c   : > { %v8097_v11 = vadd.f32 %v4266_v17, %v4085_v9  ;;  %v4796_v17 = vld [vmem:[#allocation3 + $0x54] sm:$0xe]  ;;  %v4662_v9 = vshrl.u32 %v8108_v19, 16  ;;  %v4654_v30 = vrot.slane %v4652_v45, 5  ;;  %v4874_v45 = vsel %vm6789_vm1, %v6235_v55, %v4873_v53 }
 0x40d   : > { %6241 = vmatmul.msk.bf16.gmra.mxu3 %vm3913_vm7, %v4900_v40  ;;  %v4658_v40 = vshll.u32 %v8108_v19, 16  ;;  %v6234_v16 = vrot.slane %v4796_v17, 9  ;;  %v6361_v19 = vld [vmem:[#allocation3 + $0x54] sm:$0xff]  ;;  %v4894_v0 = vunpack.c.l.b16 %v4874_v45 }
 0x40e   : > { %v4664_v31 = vrot.slane %v4662_v9, 4 }
 0x40f   : > { %v4660_v3 = vrot.slane %v4658_v40, 5  ;;  %v4867_v54 = vsel %vm6789_vm1, %v6234_v16, %v4866_v20  ;;  %v5147_v16 = vld [vmem:[#allocation3 + $0x18] sm:$0xf] }
 0x410   : > { %v4269_v23 = vpop.f32.mrf.mxu3 }
 0x411   : > { %v3971_v15 = vpop.f32.mrf.mxu1 }
 0x412   : > { %v4088_v1 = vadd.f32 %v4087_v51, %v3971_v15  ;;  %v4089_v26 = vpop.f32.mrf.mxu2  ;;  %v4868_v51 = vrot.slane %v4866_v20, 4  ;;  %v4892_v15 = vunpack.c.l.b16 %v4867_v54 }
 0x414   : > { %v8104_v46 = vadd.f32 %v4269_v23, %v4088_v1  ;;  %6215 = vmatmul.msk.bf16.gmra.mxu1 %vm3913_vm7, %v6359_v59  ;;  %v4870_v29 = vsel %vm6789_vm1, %v4868_v51, %v4869_v8  ;;  %v4655_v23 = vor.u32 %v4654_v30, %v4651_v50  ;;  %v4665_v59 = vor.u32 %v4664_v31, %v4660_v3 }
 0x415   : > { %v4893_v1 = vunpack.c.l.b16 %v4870_v29  ;;  %v5515_v8 = vrot.slane %v5148_v5, 5  ;;  %v5172_v50 = vshrl.u32 %v5147_v16, 16  ;;  %v5175_v30 = vshll.u32 %v5147_v16, 16 }
 0x416   : > { %v4656_v44 = vrot.slane %v4655_v23, 4  ;;  %v4666_v56 = vrot.slane %v4665_v59, 4  ;;  %v5185_v31 = vshrl.u32 %v5148_v5, 16 }
 0x417   : > { %6225 = vmatmul.msk.bf16.gmra.mxu2 %vm3913_vm7, %v4695_v60  ;;  %v4670_v60 = vrot.slane %v4668_v35, 5  ;;  %v4902_v21 = vpack.c.b16 %v4893_v1, %v4892_v15  ;;  %v5174_v59 = vrot.slane %v5172_v50, 4  ;;  %v5177_v35 = vrot.slane %v5175_v30, 5 }
 0x418   : > { %v4271_v14 = vpop.f32.mrf.mxu3  ;;  %v5187_v1 = vrot.slane %v5185_v31, 4 }
 0x419   : > { %v3973_v2 = vpop.f32.mrf.mxu1  ;;  %v4671_v47 = vsel %vm6752_vm13, %v4666_v56, %v4670_v60  ;;  %v5178_v60 = vor.u32 %v5177_v35, %v5174_v59 }
 0x41a   : > { %v4090_v48 = vadd.f32 %v4089_v26, %v3973_v2  ;;  %v4092_v25 = vpop.f32.mrf.mxu2  ;;  %v4875_v2 = vrot.slane %v4873_v53, 4  ;;  %v6362_v53 = vld [vmem:[#allocation3 + $0x60] sm:$0xff] }
 0x41b   : > { %6285 = vmatmul.msk.bf16.gmra.mxu0 %vm3913_vm7, %v6370_v58 }
 0x41c   : > { %v8116_v62 = vadd.f32 %v4271_v14, %v4090_v48  ;;  %v4661_v14 = vsel %vm6752_vm13, %v4656_v44, %v4660_v3  ;;  %v5181_v3 = vshll.u32 %v5148_v5, 16  ;;  %v5150_v5 = vld [vmem:[#allocation3 + $0x24] sm:$0xf] }
 0x41d   : > { %6242 = vmatmul.msk.bf16.gmra.mxu3 %vm3913_vm7, %v4901_v41  ;;  %v4876_v41 = vrot.slane %v4479_v18, 5  ;;  %v4688_v48 = vunpack.c.l.b16 %v4661_v14  ;;  %v5151_v14 = vld [vmem:[#allocation3 + $0x28] sm:$0xf]  ;;  %v5199_v16 = vshll.u32 %v5150_v5, 16 }
 0x41e   : > { %v5183_v15 = vrot.slane %v5181_v3, 5 }
 0x41f   : > { %v4877_v40 = vsel %vm6789_vm1, %v4875_v2, %v4876_v41  ;;  %v5179_v2 = vrot.slane %v5178_v60, 4 }
 0x420   : > { %v4274_v42 = vpop.f32.mrf.mxu3  ;;  %v4895_v28 = vunpack.c.l.b16 %v4877_v40 }
 0x421   : > { %v3976_v38 = vpop.f32.mrf.mxu1 }
 0x422   : > { %v4093_v39 = vadd.f32 %v4092_v25, %v3976_v38  ;;  %v4094_v36 = vpop.f32.mrf.mxu2  ;;  %v4689_v25 = vunpack.c.l.b16 %v4671_v47  ;;  %v4903_v29 = vpack.c.b16 %v4895_v28, %v4894_v0  ;;  %v5205_v28 = vshll.u32 %v5151_v14, 16 }
 0x424   : > { %v8125_v52 = vadd.f32 %v4274_v42, %v4093_v39  ;;  %6216 = vmatmul.msk.bf16.gmra.mxu1 %vm3913_vm7, %v6360_v61  ;;  %v4697_v9 = vpack.c.b16 %v4689_v25, %v4688_v48  ;;  %v5149_v42 = vld [vmem:[#allocation3 + $0x20] sm:$0x1]  ;;  %v5481_v61 = vld [vmem:[#allocation3 + $0x18] sm:$0xe]  ;;  %v5517_v39 = vrot.slane %v5515_v8, 4 }
 0x425   : > { %v6295_v18 = vrot.slane %v5481_v61, 9 }
 0x427   : > { %6226 = vmatmul.msk.bf16.gmra.mxu2 %vm3913_vm7, %v4696_v63  ;;  %v5516_v44 = vsel %vm6789_vm1, %v6295_v18, %v5515_v8 }
 0x428   : > { %v4276_v26 = vpop.f32.mrf.mxu3  ;;  %v5571_v58 = vunpack.c.l.b16 %v5516_v44 }
 0x429   : > { %v3978_v10 = vpop.f32.mrf.mxu1 }
 0x42a   : > { %v4095_v57 = vadd.f32 %v4094_v36, %v3978_v10  ;;  %v4097_v49 = vpop.f32.mrf.mxu2  ;;  %v5518_v36 = vrot.slane %v5149_v42, 5 }
 0x42c   : > { %v8131_v37 = vadd.f32 %v4276_v26, %v4095_v57  ;;  %v5519_v56 = vsel %vm6789_vm1, %v5517_v39, %v5518_v36  ;;  %v5191_v57 = vshll.u32 %v5149_v42, 16  ;;  %v5209_v42 = vshrl.u32 %v5151_v14, 16 }
 0x42d   : > { %6243 = vmatmul.msk.bf16.gmra.mxu3 %vm3913_vm7, %v4902_v21  ;;  %v5572_v10 = vunpack.c.l.b16 %v5519_v56  ;;  %v5188_v21 = vor.u32 %v5187_v1, %v5183_v15  ;;  %v5201_v36 = vrot.slane %v5199_v16, 5 }
 0x42e   : > { %v5193_v25 = vrot.slane %v5191_v57, 5 }
 0x42f   : > { %v5587_v41 = vpack.c.b16 %v5572_v10, %v5571_v58  ;;  %v5189_v48 = vrot.slane %v5188_v21, 4  ;;  %v5154_v58 = vld [vmem:[#allocation3 + $0x34] sm:$0xf] }
 0x430   : > { %v4279_v20 = vpop.f32.mrf.mxu3 }
 0x431   : > { %v3981_v12 = vpop.f32.mrf.mxu1  ;;  %v5194_v45 = vsel %vm6752_vm13, %v5189_v48, %v5193_v25 }
 0x432   : > { %v4098_v17 = vadd.f32 %v4097_v49, %v3981_v12  ;;  %v4099_v13 = vpop.f32.mrf.mxu2  ;;  %v5522_v12 = vrot.slane %v5151_v14, 5 }
 0x434   : > { %v8142_v51 = vadd.f32 %v4279_v20, %v4098_v17  ;;  %6217 = vmatmul.msk.bf16.gmra.mxu1 %vm3913_vm7, %v6361_v19  ;;  %v5482_v19 = vld [vmem:[#allocation3 + $0x24] sm:$0xe]  ;;  %v5152_v17 = vld [vmem:[#allocation3 + $0x2c] sm:$0x1]  ;;  %v5524_v8 = vrot.slane %v5522_v12, 4 }
 0x435   : > { %v6296_v40 = vrot.slane %v5482_v19, 9  ;;  %v5525_v0 = vrot.slane %v5152_v17, 5  ;;  %v5215_v56 = vshll.u32 %v5152_v17, 16 }
 0x437   : > { %6227 = vmatmul.msk.bf16.gmra.mxu2 %vm3913_vm7, %v4697_v9  ;;  %v5196_v9 = vshrl.u32 %v5150_v5, 16  ;;  %v5523_v18 = vsel %vm6789_vm1, %v6296_v40, %v5522_v12  ;;  %v5217_v14 = vrot.slane %v5215_v56, 5  ;;  %v5233_v40 = vshrl.u32 %v5154_v58, 16 }
 0x438   : > { %v4281_v38 = vpop.f32.mrf.mxu3  ;;  %v5573_v59 = vunpack.c.l.b16 %v5523_v18 }
 0x439   : > { %v3983_v54 = vpop.f32.mrf.mxu1  ;;  %v5198_v39 = vrot.slane %v5196_v9, 4 }
 0x43a   : > { %v4100_v63 = vadd.f32 %v4099_v13, %v3983_v54  ;;  %v4102_v23 = vpop.f32.mrf.mxu2  ;;  %v5184_v13 = vsel %vm6752_vm13, %v5179_v2, %v5183_v15  ;;  %v5483_v2 = vld [vmem:[#allocation3 + $0x30] sm:$0xe] }
 0x43b   : > { %v5365_v31 = vunpack.c.l.b16 %v5184_v13  ;;  %v5202_v15 = vor.u32 %v5201_v36, %v5198_v39  ;;  %v6297_v25 = vrot.slane %v5483_v2, 9 }
 0x43c   : > { %v8146_v26 = vadd.f32 %v4281_v38, %v4100_v63  ;;  %v5366_v38 = vunpack.c.l.b16 %v5194_v45  ;;  %v5207_v63 = vrot.slane %v5205_v28, 5  ;;  %v5229_v45 = vshll.u32 %v5154_v58, 16 }
 0x43d   : > { %6244 = vmatmul.msk.bf16.gmra.mxu3 %vm3913_vm7, %v4903_v29  ;;  %v5526_v29 = vsel %vm6789_vm1, %v5524_v8, %v5525_v0 }
 0x43e   : > { %v5574_v35 = vunpack.c.l.b16 %v5526_v29  ;;  %v5381_v1 = vpack.c.b16 %v5366_v38, %v5365_v31  ;;  %v5235_v31 = vrot.slane %v5233_v40, 4 }
 0x440   : > { %v4284_v49 = vpop.f32.mrf.mxu3  ;;  %v5588_v57 = vpack.c.b16 %v5574_v35, %v5573_v59 }
 0x441   : > { %v3986_v7 = vpop.f32.mrf.mxu1 }
 0x442   : > { %v4103_v47 = vadd.f32 %v4102_v23, %v3986_v7  ;;  %v4104_v55 = vpop.f32.mrf.mxu2  ;;  %v5211_v23 = vrot.slane %v5209_v42, 4 }
 0x444   : > { %v8153_v20 = vadd.f32 %v4284_v49, %v4103_v47  ;;  %6218 = vmatmul.msk.bf16.gmra.mxu1 %vm3913_vm7, %v6362_v53  ;;  %v5212_v44 = vor.u32 %v5211_v23, %v5207_v63  ;;  %v5203_v49 = vrot.slane %v5202_v15, 4  ;;  %v5529_v47 = vrot.slane %v5154_v58, 5  ;;  %v5157_v23 = vld [vmem:[#allocation3 + $0x40] sm:$0xf] }
 0x445   : > { %v5536_v56 = vrot.slane %v5157_v23, 5 }
 0x446   : > { %v5213_v7 = vrot.slane %v5212_v44, 4  ;;  %v5208_v48 = vsel %vm6752_vm13, %v5203_v49, %v5207_v63  ;;  %v5531_v19 = vrot.slane %v5529_v47, 4  ;;  %v5530_v42 = vsel %vm6789_vm1, %v6297_v25, %v5529_v47 }
 0x447   : > { %6304 = vmatmul.msk.bf16.vlgmr.msra.gmra.mxu2 %vm3913_vm7, %v5587_v41  ;;  %v5153_v41 = vld [vmem:[#allocation3 + $0x30] sm:$0xf]  ;;  %v5367_v8 = vunpack.c.l.b16 %v5208_v48  ;;  %v5575_v38 = vunpack.c.l.b16 %v5530_v42  ;;  %v5253_v47 = vshll.u32 %v5157_v23, 16 }
 0x448   : > { %v4286_v50 = vpop.f32.mrf.mxu3  ;;  %v5220_v17 = vshrl.u32 %v5153_v41, 16  ;;  %v5223_v13 = vshll.u32 %v5153_v41, 16 }
 0x449   : > { %v3988_v61 = vpop.f32.mrf.mxu1 }
 0x44a   : > { %v4105_v30 = vadd.f32 %v4104_v55, %v3988_v61  ;;  %v4734_v3 = vpop.f32.mrf.mxu2  ;;  %v5155_v55 = vld [vmem:[#allocation3 + $0x38] sm:$0x1] }
 0x44b   : > { %v5532_v12 = vrot.slane %v5155_v55, 5  ;;  %v5239_v63 = vshll.u32 %v5155_v55, 16  ;;  %v5538_v55 = vrot.slane %v5536_v56, 4 }
 0x44c   : > { %v8163_v54 = vadd.f32 %v4286_v50, %v4105_v30  ;;  %v5222_v50 = vrot.slane %v5220_v17, 4  ;;  %v5225_v30 = vrot.slane %v5223_v13, 5  ;;  %v5255_v13 = vrot.slane %v5253_v47, 5 }
 0x44d   : > { %v5533_v61 = vsel %vm6789_vm1, %v5531_v19, %v5532_v12 }
 0x44e   : > { %v5576_v18 = vunpack.c.l.b16 %v5533_v61 }
 0x450   : > { %v5589_v15 = vpack.c.b16 %v5576_v18, %v5575_v38 }
 0x451   : > { %v4400_v60 = vpop.f32.mrf.mxu1 }
 0x452   : > { %v4440_v10 = vadd.f32 %v4400_v60, %v8020_v33  ;;  %v4736_v21 = vpop.f32.mrf.mxu2  ;;  %v5218_v33 = vsel %vm6752_vm13, %v5213_v7, %v5217_v14  ;;  %v5156_v60 = vld [vmem:[#allocation3 + $0x3c] sm:$0xf] }
 0x453   : > { %v5368_v28 = vunpack.c.l.b16 %v5218_v33  ;;  %v5244_v7 = vshrl.u32 %v5156_v60, 16  ;;  %v5247_v14 = vshll.u32 %v5156_v60, 16 }
 0x454   : > { %6287 = vmatmul.msk.bf16.vlgmr.msra.gmra.mxu1 %vm3913_vm7, %v5381_v1  ;;  %v8169_v53 = vadd.f32 %v4734_v3, %v4440_v10  ;;  %v5231_v3 = vrot.slane %v5229_v45, 5  ;;  %v5484_v1 = vld [vmem:[#allocation3 + $0x3c] sm:$0xe] }
 0x455   : > { %v5382_v39 = vpack.c.b16 %v5368_v28, %v5367_v8  ;;  %v6298_v49 = vrot.slane %v5484_v1, 9  ;;  %v5249_v17 = vrot.slane %v5247_v14, 5 }
 0x456   : > { %v5236_v29 = vor.u32 %v5235_v31, %v5231_v3  ;;  %v5160_v31 = vld [vmem:[#allocation3 + $0x4c] sm:$0xf] }
 0x457   : > { %6305 = vmatmul.msk.bf16.gmra.mxu2 %vm3913_vm7, %v5588_v57  ;;  %v5158_v57 = vld [vmem:[#allocation3 + $0x44] sm:$0x1]  ;;  %v5537_v12 = vsel %vm6789_vm1, %v6298_v49, %v5536_v56  ;;  %v5277_v49 = vshll.u32 %v5160_v31, 16 }
 0x458   : > { %v5237_v10 = vrot.slane %v5236_v29, 4  ;;  %v5539_v2 = vrot.slane %v5158_v57, 5  ;;  %v5577_v28 = vunpack.c.l.b16 %v5537_v12 }
 0x459   : > { %v4402_v5 = vpop.f32.mrf.mxu1 }
 0x45a   : > { %v4441_v9 = vadd.f32 %v4402_v5, %v8034_v22  ;;  %v4739_v16 = vpop.f32.mrf.mxu2  ;;  %v5226_v22 = vor.u32 %v5225_v30, %v5222_v50  ;;  %v5246_v5 = vrot.slane %v5244_v7, 4  ;;  %v5540_v8 = vsel %vm6789_vm1, %v5538_v55, %v5539_v2 }
 0x45b   : > { %v5578_v42 = vunpack.c.l.b16 %v5540_v8  ;;  %v5281_v7 = vshrl.u32 %v5160_v31, 16  ;;  %v5163_v8 = vld [vmem:[#allocation3 + $0x58] sm:$0xf] }
 0x45c   : > { %v8177_v0 = vadd.f32 %v4736_v21, %v4441_v9  ;;  %v5227_v58 = vrot.slane %v5226_v22, 4  ;;  %v5241_v21 = vrot.slane %v5239_v63, 5  ;;  %v5250_v61 = vor.u32 %v5249_v17, %v5246_v5 }
 0x45d   : > { %v5283_v12 = vrot.slane %v5281_v7, 4 }
 0x45e   : > { %v5232_v48 = vsel %vm6752_vm13, %v5227_v58, %v5231_v3  ;;  %v5242_v33 = vsel %vm6752_vm13, %v5237_v10, %v5241_v21 }
 0x45f   : > { %v5369_v9 = vunpack.c.l.b16 %v5232_v48 }
 0x461   : > { %v4405_v36 = vpop.f32.mrf.mxu1 }
 0x462   : > { %v4442_v59 = vadd.f32 %v4405_v36, %v8041_v4  ;;  %v4741_v35 = vpop.f32.mrf.mxu2  ;;  %v5257_v4 = vshrl.u32 %v5157_v23, 16  ;;  %v5251_v36 = vrot.slane %v5250_v61, 4  ;;  %v5485_v23 = vld [vmem:[#allocation3 + $0x48] sm:$0xe] }
 0x463   : > { %v6299_v56 = vrot.slane %v5485_v23, 9  ;;  %v5305_v23 = vshrl.u32 %v5163_v8, 16 }
 0x464   : > { %6288 = vmatmul.msk.bf16.gmra.mxu1 %vm3913_vm7, %v5382_v39  ;;  %v8185_v44 = vadd.f32 %v4739_v16, %v4442_v59  ;;  %v5259_v45 = vrot.slane %v5257_v4, 4  ;;  %v5370_v16 = vunpack.c.l.b16 %v5242_v33  ;;  %v5590_v39 = vpack.c.b16 %v5578_v42, %v5577_v28 }
 0x465   : > { %v5543_v59 = vrot.slane %v5160_v31, 5  ;;  %v5256_v1 = vsel %vm6752_vm13, %v5251_v36, %v5255_v13 }
 0x466   : > { %v5260_v50 = vor.u32 %v5259_v45, %v5255_v13  ;;  %v5383_v30 = vpack.c.b16 %v5370_v16, %v5369_v9  ;;  %v5371_v4 = vunpack.c.l.b16 %v5256_v1 }
 0x467   : > { %6306 = vmatmul.msk.bf16.gmra.mxu2 %vm3913_vm7, %v5589_v15  ;;  %v5159_v15 = vld [vmem:[#allocation3 + $0x48] sm:$0xf]  ;;  %v5545_v60 = vrot.slane %v5543_v59, 4  ;;  %v5544_v2 = vsel %vm6789_vm1, %v6299_v56, %v5543_v59 }
 0x468   : > { %v5261_v22 = vrot.slane %v5260_v50, 4  ;;  %v5268_v10 = vshrl.u32 %v5159_v15, 16  ;;  %v5271_v21 = vshll.u32 %v5159_v15, 16  ;;  %v5579_v5 = vunpack.c.l.b16 %v5544_v2  ;;  %v5162_v50 = vld [vmem:[#allocation3 + $0x54] sm:$0xf] }
 0x469   : > { %v4407_v41 = vpop.f32.mrf.mxu1  ;;  %v5292_v36 = vshrl.u32 %v5162_v50, 16 }
 0x46a   : > { %v4443_v25 = vadd.f32 %v4407_v41, %v8053_v6  ;;  %v4744_v19 = vpop.f32.mrf.mxu2  ;;  %v5263_v6 = vshll.u32 %v5158_v57, 16  ;;  %v5270_v33 = vrot.slane %v5268_v10, 4 }
 0x46c   : > { %v8195_v40 = vadd.f32 %v4741_v35, %v4443_v25  ;;  %v5265_v29 = vrot.slane %v5263_v6, 5  ;;  %v5161_v35 = vld [vmem:[#allocation3 + $0x50] sm:$0x1]  ;;  %v5273_v25 = vrot.slane %v5271_v21, 5 }
 0x46d   : > { %v5546_v58 = vrot.slane %v5161_v35, 5  ;;  %v5287_v16 = vshll.u32 %v5161_v35, 16 }
 0x46e   : > { %v5274_v45 = vor.u32 %v5273_v25, %v5270_v33 }
 0x46f   : > { %v5547_v48 = vsel %vm6789_vm1, %v5545_v60, %v5546_v58  ;;  %v5294_v58 = vrot.slane %v5292_v36, 4 }
 0x470   : > { %v5580_v17 = vunpack.c.l.b16 %v5547_v48 }
 0x471   : > { %v4410_v3 = vpop.f32.mrf.mxu1 }
 0x472   : > { %v4444_v38 = vadd.f32 %v4410_v3, %v8062_v24  ;;  %v4746_v18 = vpop.f32.mrf.mxu2  ;;  %v5266_v24 = vsel %vm6752_vm13, %v5261_v22, %v5265_v29  ;;  %v5591_v61 = vpack.c.b16 %v5580_v17, %v5579_v5  ;;  %v5550_v3 = vrot.slane %v5163_v8, 5 }
 0x473   : > { %v5372_v55 = vunpack.c.l.b16 %v5266_v24  ;;  %v5295_v22 = vshll.u32 %v5162_v50, 16  ;;  %v5301_v29 = vshll.u32 %v5163_v8, 16  ;;  %v5487_v8 = vld [vmem:[#allocation3 + $0x60] sm:$0xe] }
 0x474   : > { %6289 = vmatmul.msk.bf16.gmra.mxu1 %vm3913_vm7, %v5383_v30  ;;  %v8201_v63 = vadd.f32 %v4744_v19, %v4444_v38  ;;  %v5279_v19 = vrot.slane %v5277_v49, 5  ;;  %v5275_v30 = vrot.slane %v5274_v45, 4  ;;  %v5289_v38 = vrot.slane %v5287_v16, 5 }
 0x475   : > { %v5384_v13 = vpack.c.b16 %v5372_v55, %v5371_v4  ;;  %v5552_v35 = vrot.slane %v5550_v3, 4  ;;  %v5297_v10 = vrot.slane %v5295_v22, 5  ;;  %v5307_v49 = vrot.slane %v5305_v23, 4 }
 0x476   : > { %v5284_v9 = vor.u32 %v5283_v12, %v5279_v19  ;;  %v5166_v12 = vld [vmem:[#allocation3 + $0x64] sm:$0xf] }
 0x477   : > { %6307 = vmatmul.msk.bf16.gmra.mxu2 %vm3913_vm7, %v5590_v39  ;;  %v5486_v39 = vld [vmem:[#allocation3 + $0x54] sm:$0xe]  ;;  %v5298_v55 = vor.u32 %v5297_v10, %v5294_v58  ;;  %v5329_v36 = vshrl.u32 %v5166_v12, 16 }
 0x478   : > { %v5285_v31 = vrot.slane %v5284_v9, 4  ;;  %v6300_v59 = vrot.slane %v5486_v39, 9  ;;  %v5325_v39 = vshll.u32 %v5166_v12, 16 }
 0x479   : > { %v4412_v57 = vpop.f32.mrf.mxu1  ;;  %v5331_v58 = vrot.slane %v5329_v36, 4 }
 0x47a   : > { %v4445_v14 = vadd.f32 %v4412_v57, %v8072_v27  ;;  %v4749_v47 = vpop.f32.mrf.mxu2  ;;  %v5290_v24 = vsel %vm6752_vm13, %v5285_v31, %v5289_v38  ;;  %v5303_v57 = vrot.slane %v5301_v29, 5 }
 0x47c   : > { %v8211_v41 = vadd.f32 %v4746_v18, %v4445_v14  ;;  %v5164_v18 = vld [vmem:[#allocation3 + $0x5c] sm:$0x1]  ;;  %v5374_v14 = vunpack.c.l.b16 %v5290_v24  ;;  %v5308_v33 = vor.u32 %v5307_v49, %v5303_v57 }
 0x47d   : > { %v5553_v15 = vrot.slane %v5164_v18, 5 }
 0x47f   : > { %v5554_v4 = vsel %vm6789_vm1, %v5552_v35, %v5553_v15 }
 0x480   : > { %v5582_v48 = vunpack.c.l.b16 %v5554_v4  ;;  %v5169_v4 = vld [vmem:[#allocation3 + $0x70] sm:$0xf] }
 0x481   : > { %v4415_v27 = vpop.f32.mrf.mxu1 }
 0x482   : > { %v4446_v28 = vadd.f32 %v4415_v27, %v8083_v34  ;;  %v4751_v42 = vpop.f32.mrf.mxu2  ;;  %v5280_v34 = vsel %vm6752_vm13, %v5275_v30, %v5279_v19  ;;  %v5309_v27 = vrot.slane %v5308_v33, 4  ;;  %v6301_v30 = vrot.slane %v5487_v8, 9 }
 0x483   : > { %v5373_v21 = vunpack.c.l.b16 %v5280_v34 }
 0x484   : > { %6290 = vmatmul.msk.bf16.gmra.mxu1 %vm3913_vm7, %v5384_v13  ;;  %v8217_v6 = vadd.f32 %v4749_v47, %v4446_v28  ;;  %v5551_v47 = vsel %vm6789_vm1, %v6300_v59, %v5550_v3  ;;  %v5299_v13 = vrot.slane %v5298_v55, 4  ;;  %v5557_v28 = vrot.slane %v5166_v12, 5 }
 0x485   : > { %v5581_v2 = vunpack.c.l.b16 %v5551_v47  ;;  %v5385_v25 = vpack.c.b16 %v5374_v14, %v5373_v21  ;;  %v5564_v12 = vrot.slane %v5169_v4, 5 }
 0x486   : > { %v5304_v50 = vsel %vm6752_vm13, %v5299_v13, %v5303_v57  ;;  %v5559_v38 = vrot.slane %v5557_v28, 4  ;;  %v5558_v35 = vsel %vm6789_vm1, %v6301_v30, %v5557_v28  ;;  %v5168_v13 = vld [vmem:[#allocation3 + $0x6c] sm:$0xf]  ;;  %v4940_v30 = vpop.f32.mrf.mxu3 }
 0x487   : > { %6308 = vmatmul.msk.bf16.gmra.mxu2 %vm3913_vm7, %v5591_v61  ;;  %v5592_v45 = vpack.c.b16 %v5582_v48, %v5581_v2  ;;  %v5167_v61 = vld [vmem:[#allocation3 + $0x68] sm:$0x1]  ;;  %v5375_v34 = vunpack.c.l.b16 %v5304_v50  ;;  %v5583_v10 = vunpack.c.l.b16 %v5558_v35  ;;  %v5349_v50 = vshll.u32 %v5169_v4, 16  ;;  %v5091_v35 = vpop.f32.mrf.mxu0 }
 0x488   : > { %v5335_v14 = vshll.u32 %v5167_v61, 16 }
 0x489   : > { %v4417_v1 = vpop.f32.mrf.mxu1 }
 0x48a   : > { %v4447_v56 = vadd.f32 %v4417_v1, %v8097_v11  ;;  %v4754_v60 = vpop.f32.mrf.mxu2  ;;  %v5311_v11 = vshll.u32 %v5164_v18, 16  ;;  %v5560_v18 = vrot.slane %v5167_v61, 5  ;;  %v5343_v61 = vshll.u32 %v5168_v13, 16 }
 0x48c   : > { %v8225_v7 = vadd.f32 %v4751_v42, %v4447_v56  ;;  %v5313_v9 = vrot.slane %v5311_v11, 5  ;;  %v5165_v42 = vld [vmem:[#allocation3 + $0x60] sm:$0xf]  ;;  %v5561_v56 = vsel %vm6789_vm1, %v5559_v38, %v5560_v18 }
 0x48d   : > { %v5316_v3 = vshrl.u32 %v5165_v42, 16  ;;  %v5319_v31 = vshll.u32 %v5165_v42, 16  ;;  %v5584_v21 = vunpack.c.l.b16 %v5561_v56  ;;  %v5340_v42 = vshrl.u32 %v5168_v13, 16 }
 0x48f   : > { %v5318_v15 = vrot.slane %v5316_v3, 4  ;;  %v5321_v1 = vrot.slane %v5319_v31, 5  ;;  %v5593_v48 = vpack.c.b16 %v5584_v21, %v5583_v10 }
 0x491   : > { %v4420_v19 = vpop.f32.mrf.mxu1  ;;  %v5322_v57 = vor.u32 %v5321_v1, %v5318_v15 }
 0x492   : > { %v4448_v5 = vadd.f32 %v4420_v19, %v8104_v46  ;;  %v4756_v17 = vpop.f32.mrf.mxu2  ;;  %v5314_v46 = vsel %vm6752_vm13, %v5309_v27, %v5313_v9  ;;  %v5337_v19 = vrot.slane %v5335_v14, 5  ;;  %v5566_v9 = vrot.slane %v5564_v12, 4 }
 0x493   : > { %v5376_v59 = vunpack.c.l.b16 %v5314_v46  ;;  %v5323_v33 = vrot.slane %v5322_v57, 4  ;;  %v5353_v46 = vshrl.u32 %v5169_v4, 16 }
 0x494   : > { %6291 = vmatmul.msk.bf16.gmra.mxu1 %vm3913_vm7, %v5385_v25  ;;  %v8233_v16 = vadd.f32 %v4754_v60, %v4448_v5  ;;  %v5327_v60 = vrot.slane %v5325_v39, 5  ;;  %v5170_v5 = vld [vmem:[#allocation3 + $0x74] sm:$0x1] }
 0x495   : > { %v5386_v49 = vpack.c.b16 %v5376_v59, %v5375_v34  ;;  %v5567_v8 = vrot.slane %v5170_v5, 5  ;;  %v5351_v34 = vrot.slane %v5349_v50, 5  ;;  %v5355_v59 = vrot.slane %v5353_v46, 4 }
 0x496   : > { %v5359_v10 = vshll.u32 %v5170_v5, 16 }
 0x497   : > { %6309 = vmatmul.msk.bf16.gmra.mxu2 %vm3913_vm7, %v5592_v45  ;;  %v5328_v45 = vsel %vm6752_vm13, %v5323_v33, %v5327_v60 }
 0x498   : > { %v5377_v38 = vunpack.c.l.b16 %v5328_v45  ;;  %v5361_v4 = vrot.slane %v5359_v10, 5 }
 0x499   : > { %v4422_v22 = vpop.f32.mrf.mxu1 }
 0x49a   : > { %v4449_v29 = vadd.f32 %v4422_v22, %v8116_v62  ;;  %v4759_v23 = vpop.f32.mrf.mxu2  ;;  %v5332_v62 = vor.u32 %v5331_v58, %v5327_v60  ;;  %v5568_v22 = vsel %vm6789_vm1, %v5566_v9, %v5567_v8  ;;  %v5356_v58 = vor.u32 %v5355_v59, %v5351_v34 }
 0x49b   : > { %v5586_v1 = vunpack.c.l.b16 %v5568_v22 }
 0x49c   : > { %v8243_v24 = vadd.f32 %v4756_v17, %v4449_v29  ;;  %v5333_v25 = vrot.slane %v5332_v62, 4  ;;  %v5488_v17 = vld [vmem:[#allocation3 + $0x6c] sm:$0xe]  ;;  %v5342_v29 = vrot.slane %v5340_v42, 4  ;;  %v4942_v62 = vpop.f32.mrf.mxu3 }
 0x49d   : > { %v6302_v27 = vrot.slane %v5488_v17, 9  ;;  %v4981_v22 = vadd.f32 %v4942_v62, %v8177_v0 }
 0x49f   : > { %v5565_v36 = vsel %vm6789_vm1, %v6302_v27, %v5564_v12 }
 0x4a0   : > { %v5585_v15 = vunpack.c.l.b16 %v5565_v36 }
 0x4a1   : > { %v4425_v47 = vpop.f32.mrf.mxu1 }
 0x4a2   : > { %v4450_v55 = vadd.f32 %v4425_v47, %v8125_v52  ;;  %v4761_v2 = vpop.f32.mrf.mxu2  ;;  %v5338_v52 = vsel %vm6752_vm13, %v5333_v25, %v5337_v19  ;;  %v5357_v47 = vrot.slane %v5356_v58, 4 }
 0x4a3   : > { %v5378_v39 = vunpack.c.l.b16 %v5338_v52 }
 0x4a4   : > { %6292 = vmatmul.msk.bf16.gmra.mxu1 %vm3913_vm7, %v5386_v49  ;;  %v8249_v11 = vadd.f32 %v4759_v23, %v4450_v55  ;;  %v5345_v23 = vrot.slane %v5343_v61, 5  ;;  %v5594_v49 = vpack.c.b16 %v5586_v1, %v5585_v15  ;;  %v5093_v55 = vpop.f32.mrf.mxu0  ;;  %v4945_v17 = vpop.f32.mrf.mxu3  ;;  %v4980_v61 = vadd.f32 %v4940_v30, %v8169_v53 }
 0x4a5   : > { %v5387_v56 = vpack.c.b16 %v5378_v39, %v5377_v38  ;;  %v8286_v39 = vld [vmem:[%s8370_s4] ss:$0 sm:$0xff]  ;;  %v5132_v30 = vadd.f32 %v5093_v55, %v4981_v22  ;;  %v4982_v15 = vadd.f32 %v4945_v17, %v8185_v44 }
 0x4a6   : > { %v5346_v60 = vor.u32 %v5345_v23, %v5342_v29 }
 0x4a7   : > { %6310 = vmatmul.msk.bf16.gmra.mxu2 %vm3913_vm7, %v5593_v48 }
 0x4a8   : > { %v5347_v14 = vrot.slane %v5346_v60, 4 }
 0x4a9   : > { %v4427_v28 = vpop.f32.mrf.mxu1 }
 0x4aa   : > { %v4451_v3 = vadd.f32 %v4427_v28, %v8131_v37  ;;  %v4764_v31 = vpop.f32.mrf.mxu2  ;;  %v5352_v48 = vsel %vm6752_vm13, %v5347_v14, %v5351_v34 }
 0x4ab   : > { %v5379_v12 = vunpack.c.l.b16 %v5352_v48 }
 0x4ac   : > { %v8257_v18 = vadd.f32 %v4761_v2, %v4451_v3  ;;  %v5096_v9 = vpop.f32.mrf.mxu0  ;;  %v4947_v43 = vpop.f32.mrf.mxu3  ;;  %v5131_v3 = vadd.f32 %v5091_v35, %v4980_v61 }
 0x4ad   : > { %v5133_v0 = vadd.f32 %v5096_v9, %v4982_v15 }
 0x4b1   : > { %v4430_v37 = vpop.f32.mrf.mxu1 }
 0x4b2   : > { %v4452_v21 = vadd.f32 %v4430_v37, %v8142_v51  ;;  %v4766_v57 = vpop.f32.mrf.mxu2  ;;  %v5362_v51 = vsel %vm6752_vm13, %v5357_v47, %v5361_v4 }
 0x4b3   : > { %v5380_v5 = vunpack.c.l.b16 %v5362_v51 }
 0x4b4   : > { %6293 = vmatmul.msk.bf16.gmra.mxu1 %vm3913_vm7, %v5387_v56  ;;  %v8265_v32 = vadd.f32 %v4764_v31, %v4452_v21  ;;  %v5098_v46 = vpop.f32.mrf.mxu0 }
 0x4b5   : > { %v5388_v13 = vpack.c.b16 %v5380_v5, %v5379_v12 }
 0x4b7   : > { %6311 = vmatmul.msk.bf16.gmra.mxu2 %vm3913_vm7, %v5594_v49  ;;  %v4983_v49 = vadd.f32 %v4947_v43, %v8195_v40 }
 0x4b9   : > { %v4432_v2 = vpop.f32.mrf.mxu1  ;;  %v5134_v47 = vadd.f32 %v5098_v46, %v4983_v49 }
 0x4ba   : > { %v4453_v33 = vadd.f32 %v4432_v2, %v8146_v26  ;;  %v4769_v25 = vpop.f32.mrf.mxu2 }
 0x4bc   : > { %v8273_v19 = vadd.f32 %v4766_v57, %v4453_v33  ;;  %v5101_v53 = vpop.f32.mrf.mxu0 }
 0x4c1   : > { %v4435_v45 = vpop.f32.mrf.mxu1 }
 0x4c2   : > { %v4454_v52 = vadd.f32 %v4435_v45, %v8153_v20  ;;  %v4771_v27 = vpop.f32.mrf.mxu2  ;;  %v4950_v20 = vpop.f32.mrf.mxu3 }
 0x4c3   : > { %v4984_v33 = vadd.f32 %v4950_v20, %v8201_v63 }
 0x4c4   : > { %6294 = vmatmul.msk.bf16.gmra.mxu1 %vm3913_vm7, %v5388_v13  ;;  %v8277_v8 = vadd.f32 %v4769_v25, %v4454_v52  ;;  %v5103_v58 = vpop.f32.mrf.mxu0 }
 0x4c5   : > { %v5135_v40 = vadd.f32 %v5101_v53, %v4984_v33 }
 0x4c9   : > { %v4437_v28 = vpop.f32.mrf.mxu1 }
 0x4ca   : > { %v4455_v26 = vadd.f32 %v4437_v28, %v8163_v54  ;;  %v5631_v42 = vpop.f32.mrf.mxu2  ;;  %v4952_v1 = vpop.f32.mrf.mxu3 }
 0x4cc   : > { %v8281_v50 = vadd.f32 %v4771_v27, %v4455_v26  ;;  %v5106_v51 = vpop.f32.mrf.mxu0  ;;  %v4985_v27 = vadd.f32 %v4952_v1, %v8211_v41 }
 0x4ce   : > { %v5136_v63 = vadd.f32 %v5103_v58, %v4985_v27 }
 0x4d1   : > { %v5425_v31 = vpop.f32.mrf.mxu1 }
 0x4d2   : > { %v5465_v38 = vadd.f32 %v5425_v31, %v5131_v3  ;;  %v5633_v36 = vpop.f32.mrf.mxu2  ;;  %v4955_v14 = vpop.f32.mrf.mxu3 }
 0x4d3   : > { %v4986_v31 = vadd.f32 %v4955_v14, %v8217_v6 }
 0x4d4   : > { %v5671_v54 = vadd.f32 %v5631_v42, %v5465_v38  ;;  %v5108_v43 = vpop.f32.mrf.mxu0 }
 0x4d6   : > { %v5691_v29 = vadd.f32 %v8286_v39, %v5671_v54 }
 0x4d8   : > { %v5707_v23 = vmax.f32 %v5691_v29, 0.0 }
 0x4d9   : > { %v5427_v34 = vpop.f32.mrf.mxu1 }
 0x4da   : > { %5723 = vst.msk [vmem:[%s6554_s14] sm:$0xff] %vm3913_vm7, %v5707_v23  ;;  %v5466_v59 = vadd.f32 %v5427_v34, %v5132_v30  ;;  %v5636_v35 = vpop.f32.mrf.mxu2  ;;  %v4957_v5 = vpop.f32.mrf.mxu3 }
 0x4db   : > { %v4987_v30 = vadd.f32 %v4957_v5, %v8225_v7 }
 0x4dc   : > { %v5672_v56 = vadd.f32 %v5633_v36, %v5466_v59  ;;  %v5111_v41 = vpop.f32.mrf.mxu0  ;;  %v5137_v36 = vadd.f32 %v5106_v51, %v4986_v31 }
 0x4dd   : > { %v5138_v6 = vadd.f32 %v5108_v43, %v4987_v30 }
 0x4de   : > { %v5692_v37 = vadd.f32 %v8286_v39, %v5672_v56 }
 0x4e0   : > { %v5708_v60 = vmax.f32 %v5692_v37, 0.0 }
 0x4e1   : > { %v5430_v10 = vpop.f32.mrf.mxu1 }
 0x4e2   : > { %5724 = vst.msk [vmem:[%s6554_s14 + $0x8] sm:$0xff] %vm3913_vm7, %v5708_v60  ;;  %v5467_v21 = vadd.f32 %v5430_v10, %v5133_v0  ;;  %v5638_v57 = vpop.f32.mrf.mxu2  ;;  %v4960_v61 = vpop.f32.mrf.mxu3 }
 0x4e3   : > { %v4988_v0 = vadd.f32 %v4960_v61, %v8233_v16 }
 0x4e4   : > { %v5673_v62 = vadd.f32 %v5636_v35, %v5467_v21  ;;  %v5113_v15 = vpop.f32.mrf.mxu0 }
 0x4e5   : > { %v5139_v10 = vadd.f32 %v5111_v41, %v4988_v0 }
 0x4e6   : > { %v5693_v44 = vadd.f32 %v8286_v39, %v5673_v62 }
 0x4e8   : > { %v5709_v4 = vmax.f32 %v5693_v44, 0.0 }
 0x4e9   : > { %v5432_v55 = vpop.f32.mrf.mxu1 }
 0x4ea   : > { %5725 = vst.msk [vmem:[%s6554_s14 + $0x10] sm:$0xff] %vm3913_vm7, %v5709_v4  ;;  %v5468_v2 = vadd.f32 %v5432_v55, %v5134_v47  ;;  %v5641_v48 = vpop.f32.mrf.mxu2  ;;  %v4962_v23 = vpop.f32.mrf.mxu3 }
 0x4eb   : > { %v4989_v44 = vadd.f32 %v4962_v23, %v8243_v24 }
 0x4ec   : > { %v5674_v25 = vadd.f32 %v5638_v57, %v5468_v2  ;;  %v5116_v14 = vpop.f32.mrf.mxu0 }
 0x4ed   : > { %v5140_v16 = vadd.f32 %v5113_v15, %v4989_v44 }
 0x4ee   : > { %v5694_v12 = vadd.f32 %v8286_v39, %v5674_v25 }
 0x4f0   : > { %v5710_v17 = vmax.f32 %v5694_v12, 0.0 }
 0x4f1   : > { %v5435_v13 = vpop.f32.mrf.mxu1 }
 0x4f2   : > { %5726 = vst.msk [vmem:[%s6554_s14 + $0x18] sm:$0xff] %vm3913_vm7, %v5710_v17  ;;  %v5469_v45 = vadd.f32 %v5435_v13, %v5135_v40  ;;  %v5643_v52 = vpop.f32.mrf.mxu2  ;;  %v4965_v58 = vpop.f32.mrf.mxu3 }
 0x4f3   : > { %v4990_v25 = vadd.f32 %v4965_v58, %v8249_v11 }
 0x4f4   : > { %v5675_v9 = vadd.f32 %v5641_v48, %v5469_v45  ;;  %v5118_v40 = vpop.f32.mrf.mxu0 }
 0x4f5   : > { %v5141_v24 = vadd.f32 %v5116_v14, %v4990_v25 }
 0x4f6   : > { %v5695_v28 = vadd.f32 %v8286_v39, %v5675_v9 }
 0x4f8   : > { %v5711_v26 = vmax.f32 %v5695_v28, 0.0 }
 0x4f9   : > { %v5437_v42 = vpop.f32.mrf.mxu1 }
 0x4fa   : > { %5727 = vst.msk [vmem:[%s6554_s14 + $0x20] sm:$0xff] %vm3913_vm7, %v5711_v26  ;;  %v5470_v46 = vadd.f32 %v5437_v42, %v5136_v63  ;;  %v5646_v3 = vpop.f32.mrf.mxu2  ;;  %v4967_v55 = vpop.f32.mrf.mxu3 }
 0x4fb   : > { %v4991_v9 = vadd.f32 %v4967_v55, %v8257_v18 }
 0x4fc   : > { %v5676_v20 = vadd.f32 %v5643_v52, %v5470_v46  ;;  %v5121_v11 = vpop.f32.mrf.mxu0 }
 0x4fd   : > { %v5142_v63 = vadd.f32 %v5118_v40, %v4991_v9 }
 0x4fe   : > { %v5696_v38 = vadd.f32 %v8286_v39, %v5676_v20 }
 0x500   : > { %v5712_v22 = vmax.f32 %v5696_v38, 0.0 }
 0x501   : > { %v5440_v54 = vpop.f32.mrf.mxu1 }
 0x502   : > { %5728 = vst.msk [vmem:[%s6554_s14 + $0x28] sm:$0xff] %vm3913_vm7, %v5712_v22  ;;  %v5471_v29 = vadd.f32 %v5440_v54, %v5137_v36  ;;  %v5648_v53 = vpop.f32.mrf.mxu2  ;;  %v4970_v45 = vpop.f32.mrf.mxu3 }
 0x503   : > { %v4992_v46 = vadd.f32 %v4970_v45, %v8265_v32 }
 0x504   : > { %v5677_v34 = vadd.f32 %v5646_v3, %v5471_v29  ;;  %v5123_v36 = vpop.f32.mrf.mxu0 }
 0x505   : > { %v5143_v18 = vadd.f32 %v5121_v11, %v4992_v46 }
 0x506   : > { %v5697_v59 = vadd.f32 %v8286_v39, %v5677_v34 }
 0x508   : > { %v5713_v35 = vmax.f32 %v5697_v59, 0.0 }
 0x509   : > { %v5442_v1 = vpop.f32.mrf.mxu1 }
 0x50a   : > { %5729 = vst.msk [vmem:[%s6554_s14 + $0x30] sm:$0xff] %vm3913_vm7, %v5713_v35  ;;  %v5472_v56 = vadd.f32 %v5442_v1, %v5138_v6  ;;  %v5651_v37 = vpop.f32.mrf.mxu2  ;;  %v4972_v3 = vpop.f32.mrf.mxu3 }
 0x50b   : > { %v4993_v29 = vadd.f32 %v4972_v3, %v8273_v19 }
 0x50c   : > { %v5678_v60 = vadd.f32 %v5648_v53, %v5472_v56  ;;  %v5126_v15 = vpop.f32.mrf.mxu0 }
 0x50d   : > { %v5144_v34 = vadd.f32 %v5123_v36, %v4993_v29 }
 0x50e   : > { %v5698_v7 = vadd.f32 %v8286_v39, %v5678_v60 }
 0x510   : > { %v5714_v21 = vmax.f32 %v5698_v7, 0.0 }
 0x511   : > { %v5445_v57 = vpop.f32.mrf.mxu1 }
 0x512   : > { %5730 = vst.msk [vmem:[%s6554_s14 + $0x38] sm:$0xff] %vm3913_vm7, %v5714_v21  ;;  %v5473_v49 = vadd.f32 %v5445_v57, %v5139_v10  ;;  %v5653_v62 = vpop.f32.mrf.mxu2  ;;  %v4975_v30 = vpop.f32.mrf.mxu3 }
 0x513   : > { %v4994_v1 = vadd.f32 %v4975_v30, %v8277_v8 }
 0x514   : > { %v5679_v47 = vadd.f32 %v5651_v37, %v5473_v49  ;;  %v5128_v49 = vpop.f32.mrf.mxu0 }
 0x515   : > { %v5145_v19 = vadd.f32 %v5126_v15, %v4994_v1 }
 0x516   : > { %v5699_v4 = vadd.f32 %v8286_v39, %v5679_v47 }
 0x518   : > { %v5715_v2 = vmax.f32 %v5699_v4, 0.0 }
 0x519   : > { %v5447_v48 = vpop.f32.mrf.mxu1 }
 0x51a   : > { %5731 = vst.msk [vmem:[%s6554_s14 + $0x40] sm:$0xff] %vm3913_vm7, %v5715_v2  ;;  %v5474_v51 = vadd.f32 %v5447_v48, %v5140_v16  ;;  %v5656_v33 = vpop.f32.mrf.mxu2  ;;  %v4977_v0 = vpop.f32.mrf.mxu3 }
 0x51b   : > { %v4995_v21 = vadd.f32 %v4977_v0, %v8281_v50 }
 0x51c   : > { %v5680_v12 = vadd.f32 %v5653_v62, %v5474_v51 }
 0x51d   : > { %v5146_v8 = vadd.f32 %v5128_v49, %v4995_v21 }
 0x51e   : > { %v5700_v5 = vadd.f32 %v8286_v39, %v5680_v12 }
 0x520   : > { %v5716_v17 = vmax.f32 %v5700_v5, 0.0 }
 0x521   : > { %v5450_v13 = vpop.f32.mrf.mxu1 }
 0x522   : > { %5732 = vst.msk [vmem:[%s6554_s14 + $0x48] sm:$0xff] %vm3913_vm7, %v5716_v17  ;;  %v5475_v52 = vadd.f32 %v5450_v13, %v5141_v24  ;;  %v5658_v27 = vpop.f32.mrf.mxu2 }
 0x524   : > { %v5681_v43 = vadd.f32 %v5656_v33, %v5475_v52 }
 0x526   : > { %v5701_v28 = vadd.f32 %v8286_v39, %v5681_v43 }
 0x528   : > { %v5717_v26 = vmax.f32 %v5701_v28, 0.0 }
 0x529   : > { %v5452_v42 = vpop.f32.mrf.mxu1 }
 0x52a   : > { %5733 = vst.msk [vmem:[%s6554_s14 + $0x50] sm:$0xff] %vm3913_vm7, %v5717_v26  ;;  %v5476_v61 = vadd.f32 %v5452_v42, %v5142_v63  ;;  %v5661_v20 = vpop.f32.mrf.mxu2 }
 0x52c   : > { %v5682_v31 = vadd.f32 %v5658_v27, %v5476_v61 }
 0x52e   : > { %v5702_v38 = vadd.f32 %v8286_v39, %v5682_v31 }
 0x530   : > { %v5718_v41 = vmax.f32 %v5702_v38, 0.0 }
 0x531   : > { %v5455_v22 = vpop.f32.mrf.mxu1 }
 0x532   : > { %5734 = vst.msk [vmem:[%s6554_s14 + $0x58] sm:$0xff] %vm3913_vm7, %v5718_v41  ;;  %v5477_v54 = vadd.f32 %v5455_v22, %v5143_v18  ;;  %v5663_v32 = vpop.f32.mrf.mxu2 }
 0x534   : > { %v5683_v53 = vadd.f32 %v5661_v20, %v5477_v54 }
 0x536   : > { %v5703_v23 = vadd.f32 %v8286_v39, %v5683_v53 }
 0x538   : > { %v5719_v59 = vmax.f32 %v5703_v23, 0.0 }
 0x539   : > { %v5457_v6 = vpop.f32.mrf.mxu1 }
 0x53a   : > { %5735 = vst.msk [vmem:[%s6554_s14 + $0x60] sm:$0xff] %vm3913_vm7, %v5719_v59  ;;  %v5478_v35 = vadd.f32 %v5457_v6, %v5144_v34  ;;  %v5666_v58 = vpop.f32.mrf.mxu2 }
 0x53c   : > { %v5684_v56 = vadd.f32 %v5663_v32, %v5478_v35 }
 0x53e   : > { %v5704_v37 = vadd.f32 %v8286_v39, %v5684_v56 }
 0x540   : > { %v5720_v60 = vmax.f32 %v5704_v37, 0.0 }
 0x541   : > { %v5460_v7 = vpop.f32.mrf.mxu1 }
 0x542   : > { %5736 = vst.msk [vmem:[%s6554_s14 + $0x68] sm:$0xff] %vm3913_vm7, %v5720_v60  ;;  %v5479_v10 = vadd.f32 %v5460_v7, %v5145_v19  ;;  %v5668_v4 = vpop.f32.mrf.mxu2 }
 0x544   : > { %v5685_v57 = vadd.f32 %v5666_v58, %v5479_v10 }
 0x546   : > { %v5705_v62 = vadd.f32 %v8286_v39, %v5685_v57 }
 0x548   : > { %v5721_v14 = vmax.f32 %v5705_v62, 0.0 }
 0x549   : > { %v5462_v44 = vpop.f32.mrf.mxu1 }
 0x54a   : > { %5737 = vst.msk [vmem:[%s6554_s14 + $0x70] sm:$0xff] %vm3913_vm7, %v5721_v14  ;;  %v5480_v47 = vadd.f32 %v5462_v44, %v5146_v8 }
 0x54c   : > { %v5686_v16 = vadd.f32 %v5668_v4, %v5480_v47 }
 0x54e   : > { %v5706_v55 = vadd.f32 %v8286_v39, %v5686_v16 }
 0x550   : > { %v5722_v2 = vmax.f32 %v5706_v55, 0.0 }
 0x552   : > { %5738 = vst.msk [vmem:[%s6554_s14 + $0x78] sm:$0xff] %vm3913_vm7, %v5722_v2 }
 0x553 PF: > { %s15_s22 = sadd.s32 1, %s6466_s22   ;;  %s8416_s18 = smov %s6458_s20 }
 0x554   : > { %p12_p11 = scmp.ge.s32.totalorder %s15_s22, 6   ;;  %s8417_s19 = smov %s6462_s21 }
 0x555   : > { %s8418_s20 = smov %s8421_s23  ;;  %s8419_s21 = smov %s8425_s24 }
 0x556   :  { %14 = sbr.rel (!%p12_p11) target bundleno = 3 (0x3), region = 120 }

</bundles_post_ra>
